<compile_context>
chip_gen: v5e
topology: v5e:2x2
jax: 0.10.0
libtpu: 0.0.40
codegen_flags: <defaults>
</compile_context>

<pallas_src>
import jax
import jax.numpy as jnp
from jax.experimental import pallas as pl
from jax.experimental.pallas import tpu as pltpu

_LANE = 128                        # lane width; feature dims are padded to this
_VMEM_TARGET = 48 * 1024 * 1024    # working-set target, safe on v7x's 64 MiB VMEM


def _round_up(n, m):
    return ((n + m - 1) // m) * m


def _pad2(a, rows, cols):
    return jnp.pad(a, ((0, rows - a.shape[0]), (0, cols - a.shape[1])))


# --------------------------------------------------------------------------- kernel
def mlp_kernel(x_ref, w1_ref, b1_ref, w2_ref, b2_ref, w3_ref, b3_ref, o_ref):
    """Fused 3-layer MLP on one (tile_b, INp) batch tile.

    Matmuls run on the MXU in the storage dtype (bf16) with f32 accumulation;
    bias add + ReLU stay in f32 on the VPU; the store is lane-dense.
    """
    cdt = x_ref.dtype                                               # compute/storage dtype
    x = x_ref[...]                                                  # (tile_b, INp)
    h1 = jnp.dot(x, w1_ref[...], preferred_element_type=jnp.float32) + b1_ref[...]
    h1 = jnp.maximum(h1, 0.0).astype(cdt)                           # ReLU, back to bf16
    h2 = jnp.dot(h1, w2_ref[...], preferred_element_type=jnp.float32) + b2_ref[...]
    h2 = jnp.maximum(h2, 0.0).astype(cdt)
    y = jnp.dot(h2, w3_ref[...], preferred_element_type=jnp.float32) + b3_ref[...]
    o_ref[...] = y.astype(o_ref.dtype)                              # lane-dense store


# ------------------------------------------------------------------- param prepack
def prepare_params(w1, b1, w2, b2, w3, b3, *, compute_dtype=jnp.bfloat16):
    """One-time transpose / zero-pad / cast of PyTorch-convention (out, in) weights.

    NOTE(v6e/v7x): for best MXU utilization prefer hidden/feature sizes that are
    multiples of 256 (2x256x256 MXU); padding here only guarantees 128-alignment.
    """
    H1, IN = w1.shape
    H2 = w2.shape[0]
    OUT = w3.shape[0]
    INp, H1p, H2p, OUTp = (_round_up(d, _LANE) for d in (IN, H1, H2, OUT))

    return dict(
        IN=IN, H1=H1, H2=H2, OUT=OUT,
        INp=INp, H1p=H1p, H2p=H2p, OUTp=OUTp,
        compute_dtype=compute_dtype,
        w1t=_pad2(w1.T, INp, H1p).astype(compute_dtype),
        w2t=_pad2(w2.T, H1p, H2p).astype(compute_dtype),
        w3t=_pad2(w3.T, H2p, OUTp).astype(compute_dtype),
        b1=_pad2(b1.reshape(1, -1), 1, H1p).astype(jnp.float32),
        b2=_pad2(b2.reshape(1, -1), 1, H2p).astype(jnp.float32),
        b3=_pad2(b3.reshape(1, -1), 1, OUTp).astype(jnp.float32),
    )


def _vmem_bytes(tile_b, INp, H1p, H2p, OUTp, csize, osize, wbuf):
    x_bytes = 2 * tile_b * INp * csize                     # streamed input, double-buffered
    o_bytes = 2 * tile_b * OUTp * osize                    # streamed output, double-buffered
    w_bytes = wbuf * (INp * H1p + H1p * H2p + H2p * OUTp) * csize
    b_bytes = wbuf * (H1p + H2p + OUTp) * 4
    act_bytes = tile_b * (H1p + H2p) * (4 + csize)         # f32 h1/h2 + bf16 re-casts
    return x_bytes + o_bytes + w_bytes + b_bytes + act_bytes


# ----------------------------------------------------------------------- forward
def mlp_forward(x, params, *, tile_b=512, vmem_cap_bytes=_VMEM_TARGET):
    """x: (B, IN) float array; params: output of prepare_params. Returns (B, OUT)."""
    B, IN = x.shape
    assert IN == params["IN"], f"expected input dim {params['IN']}, got {IN}"
    INp, H1p, H2p, OUTp = params["INp"], params["H1p"], params["H2p"], params["OUTp"]
    OUT = params["OUT"]
    cdt = params["compute_dtype"]
    csize = jnp.dtype(cdt).itemsize
    out_dtype = x.dtype
    osize = jnp.dtype(out_dtype).itemsize
    single_buffer = hasattr(pl, "Buffered")
    wbuf = 1 if single_buffer else 2

    # ---- batch-tile sizing against the VMEM budget (counts h1/h2 intermediates) ----
    tile_b = max(8, min(_round_up(tile_b, 8), _round_up(B, 8)))
    while tile_b > 8 and _vmem_bytes(tile_b, INp, H1p, H2p, OUTp, csize, osize, wbuf) > vmem_cap_bytes:
        tile_b = max(8, (tile_b // 2) // 8 * 8)
    Bp = _round_up(B, tile_b)
    # Keep >= 2 "parallel" grid steps when possible: v7x has 2 TensorCores per chip.
    while Bp // tile_b < 2 and tile_b > 128:
        tile_b = max(8, (tile_b // 2) // 8 * 8)
        Bp = _round_up(B, tile_b)

    need = _vmem_bytes(tile_b, INp, H1p, H2p, OUTp, csize, osize, wbuf)
    vmem_limit = int(min(64 * 1024 * 1024,
                         max(16 * 1024 * 1024, need * 1.3 + 4 * 1024 * 1024)))

    # ---- activations: pad only when the shapes actually need it ----
    xp = x
    if Bp != B or INp != IN:
        xp = jnp.pad(x, ((0, Bp - B), (0, INp - IN)))
    if xp.dtype != cdt:
        xp = xp.astype(cdt)

    grid = (Bp // tile_b,)

    def build(use_single_buffer):
        def resident(shape):
            idx = lambda i: (0,) * len(shape)
            if use_single_buffer:
                # Constant index_map -> a second pipeline buffer is wasted VMEM.
                return pl.BlockSpec(shape, idx, pipeline_mode=pl.Buffered(1))
            return pl.BlockSpec(shape, idx)

        return pl.pallas_call(
            mlp_kernel,
            out_shape=jax.ShapeDtypeStruct((Bp, OUTp), out_dtype),
            grid_spec=pltpu.PrefetchScalarGridSpec(
                num_scalar_prefetch=0,
                grid=grid,
                in_specs=[
                    pl.BlockSpec((tile_b, INp), lambda i: (i, 0)),   # x: tiled over batch
                    resident((INp, H1p)),                            # w1^T (resident)
                    resident((1, H1p)),                              # b1
                    resident((H1p, H2p)),                            # w2^T (resident)
                    resident((1, H2p)),                              # b2
                    resident((H2p, OUTp)),                           # w3^T (resident)
                    resident((1, OUTp)),                             # b3
                ],
                out_specs=pl.BlockSpec((tile_b, OUTp), lambda i: (i, 0)),
            ),
            compiler_params=pltpu.CompilerParams(
                dimension_semantics=("parallel",),
                vmem_limit_bytes=vmem_limit,
            ),
        )

    args = (xp, params["w1t"], params["b1"], params["w2t"], params["b2"],
            params["w3t"], params["b3"])
    try:
        out = build(single_buffer)(*args)
    except Exception:
        if not single_buffer:
            raise
        out = build(False)(*args)     # fall back to default double-buffering

    if Bp != B or OUTp != OUT:
        out = out[:B, :OUT]
    return out


# ---------------------------------------------------------------------- reference
def mlp_reference(x, w1, b1, w2, b2, w3, b3):
    """Mirrors the kernel's numerics: bf16-quantized matmul operands, f32 accumulate."""
    p = jax.lax.Precision.HIGHEST

    def lin(a, w, b):
        aq = a.astype(jnp.bfloat16).astype(jnp.float32)
        wq = w.T.astype(jnp.bfloat16).astype(jnp.float32)
        return jnp.dot(aq, wq, precision=p) + b

    h1 = jnp.maximum(lin(x, w1, b1), 0.0)
    h2 = jnp.maximum(lin(h1, w2, b2), 0.0)
    return lin(h2, w3, b3)


def init_linear(key, out_features, in_features):
    """Deterministic Kaiming-uniform-style init (nn.Linear conventions)."""
    kw, kb = jax.random.split(key)
    bound = 1.0 / jnp.sqrt(in_features)
    w = jax.random.uniform(kw, (out_features, in_features), jnp.float32, -bound, bound)
    b = jax.random.uniform(kb, (out_features,), jnp.float32, -bound, bound)
    return w, b


if __name__ == "__main__":
    key = jax.random.PRNGKey(0)

    def run_case(B, IN, H1, H2, OUT, case_key):
        kx, k1, k2, k3 = jax.random.split(case_key, 4)
        x = jax.random.normal(kx, (B, IN), jnp.float32)
        w1, b1 = init_linear(k1, H1, IN)
        w2, b2 = init_linear(k2, H2, H1)
        w3, b3 = init_linear(k3, OUT, H2)

        params = prepare_params(w1, b1, w2, b2, w3, b3)   # hoisted one-time prepack
        out = jax.block_until_ready(mlp_forward(x, params))

        ref = mlp_reference(x, w1, b1, w2, b2, w3, b3)
        assert out.shape == (B, OUT), (out.shape, (B, OUT))
        max_err = float(jnp.max(jnp.abs(out.astype(jnp.float32) - ref)))
        assert jnp.allclose(out.astype(jnp.float32), ref, atol=2e-3, rtol=2e-3), \
            f"Pallas output mismatch vs reference (max abs err {max_err})"

    kA, kB = jax.random.split(key)
    # Aligned config: 256-multiple dims (MXU-friendly), 2 "parallel" batch tiles.
    run_case(512, 256, 256, 256, 256, kA)
    # Tiny ragged config: exercises the zero-padding / output-slice path.
    run_case(5, 12, 33, 20, 7, kB)

    print("KERNEL_OK")
</pallas_src>

<mosaic_0001>
module attributes {stable_mosaic.version = 11 : i64} {
  func.func @mlp_kernel(%arg0: i32, %arg1: memref<256x256xbf16, #tpu.memory_space<vmem>>, %arg2: memref<256x256xbf16, #tpu.memory_space<vmem>>, %arg3: memref<1x256xf32, #tpu.memory_space<vmem>>, %arg4: memref<256x256xbf16, #tpu.memory_space<vmem>>, %arg5: memref<1x256xf32, #tpu.memory_space<vmem>>, %arg6: memref<256x256xbf16, #tpu.memory_space<vmem>>, %arg7: memref<1x256xf32, #tpu.memory_space<vmem>>, %arg8: memref<256x256xf32, #tpu.memory_space<vmem>>) attributes {dimension_semantics = [#tpu.dimension_semantics<parallel>], iteration_bounds = array<i64: 2>, scalar_prefetch = 0 : i64, scratch_operands = 0 : i64, tpu.core_type = #tpu.core_type<tc>, window_params = [{transform_indices = @transform_0, window_bounds = array<i64: 256, 256>}, {pipeline_mode = #tpu.pipeline_mode<synchronous>, transform_indices = @transform_1, window_bounds = array<i64: 256, 256>}, {pipeline_mode = #tpu.pipeline_mode<synchronous>, transform_indices = @transform_2, window_bounds = array<i64: 1, 256>}, {pipeline_mode = #tpu.pipeline_mode<synchronous>, transform_indices = @transform_3, window_bounds = array<i64: 256, 256>}, {pipeline_mode = #tpu.pipeline_mode<synchronous>, transform_indices = @transform_4, window_bounds = array<i64: 1, 256>}, {pipeline_mode = #tpu.pipeline_mode<synchronous>, transform_indices = @transform_5, window_bounds = array<i64: 256, 256>}, {pipeline_mode = #tpu.pipeline_mode<synchronous>, transform_indices = @transform_6, window_bounds = array<i64: 1, 256>}, {transform_indices = @transform_7, window_bounds = array<i64: 256, 256>}]} {
    %c0 = arith.constant 0 : index
    %c0_0 = arith.constant 0 : index
    %0 = vector.load %arg1[%c0, %c0_0] : memref<256x256xbf16, #tpu.memory_space<vmem>>, vector<256x256xbf16>
    %c0_1 = arith.constant 0 : index
    %c0_2 = arith.constant 0 : index
    %1 = vector.load %arg2[%c0_1, %c0_2] : memref<256x256xbf16, #tpu.memory_space<vmem>>, vector<256x256xbf16>
    %cst = arith.constant dense<0.000000e+00> : vector<256x256xf32>
    %2 = tpu.matmul %0, %1, %cst {dimension_numbers = #tpu.dot_dimension_numbers<[1], [0], [0], [1], [0, 0, 1, 1], [], []>} : vector<256x256xbf16>, vector<256x256xbf16>, vector<256x256xf32> -> vector<256x256xf32>
    %c0_3 = arith.constant 0 : index
    %c0_4 = arith.constant 0 : index
    %3 = vector.load %arg3[%c0_3, %c0_4] : memref<1x256xf32, #tpu.memory_space<vmem>>, vector<1x256xf32>
    %4 = vector.broadcast %3 : vector<1x256xf32> to vector<256x256xf32>
    %5 = arith.addf %2, %4 : vector<256x256xf32>
    %cst_5 = arith.constant 0.000000e+00 : f32
    %6 = vector.broadcast %cst_5 : f32 to vector<256x256xf32>
    %7 = arith.maximumf %5, %6 : vector<256x256xf32>
    %8 = arith.truncf %7 : vector<256x256xf32> to vector<256x256xbf16>
    %c0_6 = arith.constant 0 : index
    %c0_7 = arith.constant 0 : index
    %9 = vector.load %arg4[%c0_6, %c0_7] : memref<256x256xbf16, #tpu.memory_space<vmem>>, vector<256x256xbf16>
    %cst_8 = arith.constant dense<0.000000e+00> : vector<256x256xf32>
    %10 = tpu.matmul %8, %9, %cst_8 {dimension_numbers = #tpu.dot_dimension_numbers<[1], [0], [0], [1], [0, 0, 1, 1], [], []>} : vector<256x256xbf16>, vector<256x256xbf16>, vector<256x256xf32> -> vector<256x256xf32>
    %c0_9 = arith.constant 0 : index
    %c0_10 = arith.constant 0 : index
    %11 = vector.load %arg5[%c0_9, %c0_10] : memref<1x256xf32, #tpu.memory_space<vmem>>, vector<1x256xf32>
    %12 = vector.broadcast %11 : vector<1x256xf32> to vector<256x256xf32>
    %13 = arith.addf %10, %12 : vector<256x256xf32>
    %cst_11 = arith.constant 0.000000e+00 : f32
    %14 = vector.broadcast %cst_11 : f32 to vector<256x256xf32>
    %15 = arith.maximumf %13, %14 : vector<256x256xf32>
    %16 = arith.truncf %15 : vector<256x256xf32> to vector<256x256xbf16>
    %c0_12 = arith.constant 0 : index
    %c0_13 = arith.constant 0 : index
    %17 = vector.load %arg6[%c0_12, %c0_13] : memref<256x256xbf16, #tpu.memory_space<vmem>>, vector<256x256xbf16>
    %cst_14 = arith.constant dense<0.000000e+00> : vector<256x256xf32>
    %18 = tpu.matmul %16, %17, %cst_14 {dimension_numbers = #tpu.dot_dimension_numbers<[1], [0], [0], [1], [0, 0, 1, 1], [], []>} : vector<256x256xbf16>, vector<256x256xbf16>, vector<256x256xf32> -> vector<256x256xf32>
    %c0_15 = arith.constant 0 : index
    %c0_16 = arith.constant 0 : index
    %19 = vector.load %arg7[%c0_15, %c0_16] : memref<1x256xf32, #tpu.memory_space<vmem>>, vector<1x256xf32>
    %20 = vector.broadcast %19 : vector<1x256xf32> to vector<256x256xf32>
    %21 = arith.addf %18, %20 : vector<256x256xf32>
    %c0_17 = arith.constant 0 : index
    %c0_18 = arith.constant 0 : index
    %22 = vector.load %arg8[%c0_17, %c0_18] : memref<256x256xf32, #tpu.memory_space<vmem>>, vector<256x256xf32>
    tpu.vector_store %arg8[%c0_17, %c0_18], %21 {strides = array<i32>} : memref<256x256xf32, #tpu.memory_space<vmem>>, vector<256x256xf32>,
    return
  }
  func.func @transform_0(%arg0: i32) -> (i32, i32) {
    %c0_i32 = arith.constant 0 : i32
    %c0_i32_0 = arith.constant 0 : i32
    return %arg0, %c0_i32 : i32, i32
  }
  func.func @transform_1(%arg0: i32) -> (i32, i32) {
    %c0_i32 = arith.constant 0 : i32
    %c0_i32_0 = arith.constant 0 : i32
    %c0_i32_1 = arith.constant 0 : i32
    return %c0_i32, %c0_i32_0 : i32, i32
  }
  func.func @transform_2(%arg0: i32) -> (i32, i32) {
    %c0_i32 = arith.constant 0 : i32
    %c0_i32_0 = arith.constant 0 : i32
    %c0_i32_1 = arith.constant 0 : i32
    return %c0_i32, %c0_i32_0 : i32, i32
  }
  func.func @transform_3(%arg0: i32) -> (i32, i32) {
    %c0_i32 = arith.constant 0 : i32
    %c0_i32_0 = arith.constant 0 : i32
    %c0_i32_1 = arith.constant 0 : i32
    return %c0_i32, %c0_i32_0 : i32, i32
  }
  func.func @transform_4(%arg0: i32) -> (i32, i32) {
    %c0_i32 = arith.constant 0 : i32
    %c0_i32_0 = arith.constant 0 : i32
    %c0_i32_1 = arith.constant 0 : i32
    return %c0_i32, %c0_i32_0 : i32, i32
  }
  func.func @transform_5(%arg0: i32) -> (i32, i32) {
    %c0_i32 = arith.constant 0 : i32
    %c0_i32_0 = arith.constant 0 : i32
    %c0_i32_1 = arith.constant 0 : i32
    return %c0_i32, %c0_i32_0 : i32, i32
  }
  func.func @transform_6(%arg0: i32) -> (i32, i32) {
    %c0_i32 = arith.constant 0 : i32
    %c0_i32_0 = arith.constant 0 : i32
    %c0_i32_1 = arith.constant 0 : i32
    return %c0_i32, %c0_i32_0 : i32, i32
  }
  func.func @transform_7(%arg0: i32) -> (i32, i32) {
    %c0_i32 = arith.constant 0 : i32
    %c0_i32_0 = arith.constant 0 : i32
    return %arg0, %c0_i32 : i32, i32
  }
}

module attributes {stable_mosaic.version = 11 : i64} {
  func.func @mlp_kernel(%arg0: i32, %arg1: memref<256x256xbf16, #tpu.memory_space<vmem>>, %arg2: memref<256x256xbf16, #tpu.memory_space<vmem>>, %arg3: memref<1x256xf32, #tpu.memory_space<vmem>>, %arg4: memref<256x256xbf16, #tpu.memory_space<vmem>>, %arg5: memref<1x256xf32, #tpu.memory_space<vmem>>, %arg6: memref<256x256xbf16, #tpu.memory_space<vmem>>, %arg7: memref<1x256xf32, #tpu.memory_space<vmem>>, %arg8: memref<256x256xf32, #tpu.memory_space<vmem>>) attributes {dimension_semantics = [#tpu.dimension_semantics<parallel>], iteration_bounds = array<i64: 2>, scalar_prefetch = 0 : i64, scratch_operands = 0 : i64, tpu.core_type = #tpu.core_type<tc>, window_params = [{transform_indices = @transform_0, window_bounds = array<i64: 256, 256>}, {pipeline_mode = #tpu.pipeline_mode<synchronous>, transform_indices = @transform_1, window_bounds = array<i64: 256, 256>}, {pipeline_mode = #tpu.pipeline_mode<synchronous>, transform_indices = @transform_2, window_bounds = array<i64: 1, 256>}, {pipeline_mode = #tpu.pipeline_mode<synchronous>, transform_indices = @transform_3, window_bounds = array<i64: 256, 256>}, {pipeline_mode = #tpu.pipeline_mode<synchronous>, transform_indices = @transform_4, window_bounds = array<i64: 1, 256>}, {pipeline_mode = #tpu.pipeline_mode<synchronous>, transform_indices = @transform_5, window_bounds = array<i64: 256, 256>}, {pipeline_mode = #tpu.pipeline_mode<synchronous>, transform_indices = @transform_6, window_bounds = array<i64: 1, 256>}, {transform_indices = @transform_7, window_bounds = array<i64: 256, 256>}]} {
    %c0 = arith.constant 0 : index
    %c0_0 = arith.constant 0 : index
    %0 = vector.load %arg1[%c0, %c0_0] : memref<256x256xbf16, #tpu.memory_space<vmem>>, vector<256x256xbf16>
    %c0_1 = arith.constant 0 : index
    %c0_2 = arith.constant 0 : index
    %1 = vector.load %arg2[%c0_1, %c0_2] : memref<256x256xbf16, #tpu.memory_space<vmem>>, vector<256x256xbf16>
    %cst = arith.constant dense<0.000000e+00> : vector<256x256xf32>
    %2 = tpu.matmul %0, %1, %cst {dimension_numbers = #tpu.dot_dimension_numbers<[1], [0], [0], [1], [0, 0, 1, 1], [], []>} : vector<256x256xbf16>, vector<256x256xbf16>, vector<256x256xf32> -> vector<256x256xf32>
    %c0_3 = arith.constant 0 : index
    %c0_4 = arith.constant 0 : index
    %3 = vector.load %arg3[%c0_3, %c0_4] : memref<1x256xf32, #tpu.memory_space<vmem>>, vector<1x256xf32>
    %4 = vector.broadcast %3 : vector<1x256xf32> to vector<256x256xf32>
    %5 = arith.addf %2, %4 : vector<256x256xf32>
    %cst_5 = arith.constant 0.000000e+00 : f32
    %6 = vector.broadcast %cst_5 : f32 to vector<256x256xf32>
    %7 = arith.maximumf %5, %6 : vector<256x256xf32>
    %8 = arith.truncf %7 : vector<256x256xf32> to vector<256x256xbf16>
    %c0_6 = arith.constant 0 : index
    %c0_7 = arith.constant 0 : index
    %9 = vector.load %arg4[%c0_6, %c0_7] : memref<256x256xbf16, #tpu.memory_space<vmem>>, vector<256x256xbf16>
    %cst_8 = arith.constant dense<0.000000e+00> : vector<256x256xf32>
    %10 = tpu.matmul %8, %9, %cst_8 {dimension_numbers = #tpu.dot_dimension_numbers<[1], [0], [0], [1], [0, 0, 1, 1], [], []>} : vector<256x256xbf16>, vector<256x256xbf16>, vector<256x256xf32> -> vector<256x256xf32>
    %c0_9 = arith.constant 0 : index
    %c0_10 = arith.constant 0 : index
    %11 = vector.load %arg5[%c0_9, %c0_10] : memref<1x256xf32, #tpu.memory_space<vmem>>, vector<1x256xf32>
    %12 = vector.broadcast %11 : vector<1x256xf32> to vector<256x256xf32>
    %13 = arith.addf %10, %12 : vector<256x256xf32>
    %cst_11 = arith.constant 0.000000e+00 : f32
    %14 = vector.broadcast %cst_11 : f32 to vector<256x256xf32>
    %15 = arith.maximumf %13, %14 : vector<256x256xf32>
    %16 = arith.truncf %15 : vector<256x256xf32> to vector<256x256xbf16>
    %c0_12 = arith.constant 0 : index
    %c0_13 = arith.constant 0 : index
    %17 = vector.load %arg6[%c0_12, %c0_13] : memref<256x256xbf16, #tpu.memory_space<vmem>>, vector<256x256xbf16>
    %cst_14 = arith.constant dense<0.000000e+00> : vector<256x256xf32>
    %18 = tpu.matmul %16, %17, %cst_14 {dimension_numbers = #tpu.dot_dimension_numbers<[1], [0], [0], [1], [0, 0, 1, 1], [], []>} : vector<256x256xbf16>, vector<256x256xbf16>, vector<256x256xf32> -> vector<256x256xf32>
    %c0_15 = arith.constant 0 : index
    %c0_16 = arith.constant 0 : index
    %19 = vector.load %arg7[%c0_15, %c0_16] : memref<1x256xf32, #tpu.memory_space<vmem>>, vector<1x256xf32>
    %20 = vector.broadcast %19 : vector<1x256xf32> to vector<256x256xf32>
    %21 = arith.addf %18, %20 : vector<256x256xf32>
    %c0_17 = arith.constant 0 : index
    %c0_18 = arith.constant 0 : index
    %22 = vector.load %arg8[%c0_17, %c0_18] : memref<256x256xf32, #tpu.memory_space<vmem>>, vector<256x256xf32>
    tpu.vector_store %arg8[%c0_17, %c0_18], %21 {strides = array<i32>} : memref<256x256xf32, #tpu.memory_space<vmem>>, vector<256x256xf32>,
    return
  }
  func.func @transform_0(%arg0: i32) -> (i32, i32) {
    %c0_i32 = arith.constant 0 : i32
    %c0_i32_0 = arith.constant 0 : i32
    return %arg0, %c0_i32 : i32, i32
  }
  func.func @transform_1(%arg0: i32) -> (i32, i32) {
    %c0_i32 = arith.constant 0 : i32
    %c0_i32_0 = arith.constant 0 : i32
    %c0_i32_1 = arith.constant 0 : i32
    return %c0_i32, %c0_i32_0 : i32, i32
  }
  func.func @transform_2(%arg0: i32) -> (i32, i32) {
    %c0_i32 = arith.constant 0 : i32
    %c0_i32_0 = arith.constant 0 : i32
    %c0_i32_1 = arith.constant 0 : i32
    return %c0_i32, %c0_i32_0 : i32, i32
  }
  func.func @transform_3(%arg0: i32) -> (i32, i32) {
    %c0_i32 = arith.constant 0 : i32
    %c0_i32_0 = arith.constant 0 : i32
    %c0_i32_1 = arith.constant 0 : i32
    return %c0_i32, %c0_i32_0 : i32, i32
  }
  func.func @transform_4(%arg0: i32) -> (i32, i32) {
    %c0_i32 = arith.constant 0 : i32
    %c0_i32_0 = arith.constant 0 : i32
    %c0_i32_1 = arith.constant 0 : i32
    return %c0_i32, %c0_i32_0 : i32, i32
  }
  func.func @transform_5(%arg0: i32) -> (i32, i32) {
    %c0_i32 = arith.constant 0 : i32
    %c0_i32_0 = arith.constant 0 : i32
    %c0_i32_1 = arith.constant 0 : i32
    return %c0_i32, %c0_i32_0 : i32, i32
  }
  func.func @transform_6(%arg0: i32) -> (i32, i32) {
    %c0_i32 = arith.constant 0 : i32
    %c0_i32_0 = arith.constant 0 : i32
    %c0_i32_1 = arith.constant 0 : i32
    return %c0_i32, %c0_i32_0 : i32, i32
  }
  func.func @transform_7(%arg0: i32) -> (i32, i32) {
    %c0_i32 = arith.constant 0 : i32
    %c0_i32_0 = arith.constant 0 : i32
    return %arg0, %c0_i32 : i32, i32
  }
}

</mosaic_0001>

<bundles_post_ra>
// kernel: tpu_custom_call.1
= control target key start
LH: loop header
LB: loop body
LE: loop exit
PB: predicated region body
PF: predicated region fallthrough
CT: control target
= control target key end

     0   :  { %s4412_s0 = inlined_call_operand.hbm [shape: bf16[512,256], index: 0, kind: input, shape index: {}]   ;;  %s4413_s1 = inlined_call_operand.hbm [shape: bf16[256,256], index: 1, kind: input, shape index: {}]   ;;  %s4414_s2 = inlined_call_operand.hbm [shape: f32[1,256], index: 2, kind: input, shape index: {}]   ;;  %s4415_s3 = inlined_call_operand.hbm [shape: bf16[256,256], index: 3, kind: input, shape index: {}]   ;;  %s4416_s4 = inlined_call_operand.vmem [shape: f32[1,256], index: 4, kind: input, shape index: {}]   ;;  %s4417_s5 = inlined_call_operand.hbm [shape: bf16[256,256], index: 5, kind: input, shape index: {}]   ;;  %s4418_s6 = inlined_call_operand.vmem [shape: f32[1,256], index: 6, kind: input, shape index: {}]   ;;  %s4419_s7 = inlined_call_operand.hbm [shape: f32[512,256], index: 7, kind: output, shape index: {}]  }
   0x1   :  { %4422 = sst [smem:[#allocation16_spill]] %s4413_s1 }
   0x2   :  { %12 = vsyncpa [#allocation3], 0 }
   0x3   :  { %14 = vsyncpa [#allocation3 + $0x1], 0 }
   0x4   :  { %15 = vsyncpa [#allocation6], 0 }
   0x5   :  { %16 = vsyncpa [#allocation9], 0 }
   0x6   :  { %17 = vsyncpa [#allocation4], 0 }
   0x7   :  { %19 = vsyncpa [#allocation4 + $0x1], 0  ;;  %s3637_s24 = smov 0   ;;  %s3639_s25 = smov 0  }
   0x8   :  { %s3641_s26 = smov 0   ;;  %s3643_s27 = smov 0  }
   0x9 LB: > { %s3658_s28 = sadd.s32 4294967295, %s3587_s27   ;;  %s2604_s29 = sadd.s32 4294967294, %s3587_s27   ;;  %s3587_s27 = sphi %s3643_s27, %s4436_s27   ;;  %s3583_s26 = sphi %s3641_s26, %s4435_s26   ;;  %s3579_s25 = sphi %s3639_s25, %s4434_s25   ;;  %s3575_s24 = sphi %s3637_s24, %s4433_s24  }
   0xa   : > { %p45_p0 = scmp.ne.s32.totalorder %s3579_s25, %s3575_s24  ;;  %p46_p1 = scmp.eq.s32.totalorder %s3658_s28, 0 }
   0xb   : > { %p195_p2 = scmp.eq.s32.totalorder %s3658_s28, 1  ;;  %p201_p3 = scmp.eq.s32.totalorder %s2604_s29, 1 }
   0xc   : > { %p3667_p4 = por %p46_p1, %p45_p0  ;;  %p2605_p5 = scmp.ge.s32.totalorder %s3587_s27, 1 }
   0xd   : > { %p3672_p6 = por %p201_p3, %p45_p0  ;;  %p208_p7 = scmp.lt.s32.totalorder %s3587_s27, 3 }
   0xe   : > { %s4425_s1 = sld [smem:[#allocation16_spill]]  ;;  %s3589_s13 = smov [#allocation5]  }
   0xf   : > { %p3680_p8 = pnand %p2605_p5, %p208_p7  ;;  %s221_s14 = sshll.u32 %s3589_s13, 4  ;;  %s222_s14 = int_to_ptr.vmem [resolvable:$true] %s221_s14 }
  0x10   : > { %s245_s18 = sshll.u32 %s4415_s3, 4  ;;  %s4420_s19 = smov 128   ;;  %s246_s18 = int_to_ptr.hbm [resolvable:$true] %s245_s18 }
  0x11   : > { %p3292_p9 = pneg %p3680_p8  ;;  %s4421_s20 = smov 8  }
  0x12   : > { %s3592_s21 = smov [#allocation8]   ;;  %s234_s9 = sshll.u32 %s4414_s2, 4  ;;  %s235_s9 = int_to_ptr.hbm [resolvable:$true] %s234_s9 }
  0x13   : > { %p3688_p10 = pnand %p3292_p9, %p46_p1  ;;  %s247_s22 = sshll.u32 %s3592_s21, 4  ;;  %s248_s22 = int_to_ptr.vmem [resolvable:$true] %s247_s22 }
  0x14   : > { %s219_s11 = sshll.u32 %s4425_s1, 4  ;;  %s262_s13 = sshll.u32 %s4417_s5, 4  ;;  %s220_s11 = int_to_ptr.hbm [resolvable:$true] %s219_s11  ;;  %s263_s13 = int_to_ptr.hbm [resolvable:$true] %s262_s13 }
  0x15   : > { %3295 = dma.hbm_to_vmem [thread:$0]  (!%p3688_p10), %s220_s11, 4096, %s222_s14, [#allocation6], %s4420_s19, %s4420_s19, %s4421_s20  }
  0x16   : > { %3301 = dma.hbm_to_vmem [thread:$0]  (!%p3688_p10), %s246_s18, 4096, %s248_s22, [#allocation9], %s4420_s19, %s4420_s19, %s4421_s20  }
  0x17   : > { %s3593_s14 = smov [#allocation7]   ;;  %s3594_s17 = smov [#allocation10]  }
  0x18   : > { %s236_s16 = sshll.u32 %s3593_s14, 4  ;;  %s264_s21 = sshll.u32 %s3594_s17, 4  ;;  %s237_s16 = int_to_ptr.vmem [resolvable:$true] %s236_s16  ;;  %s265_s21 = int_to_ptr.vmem [resolvable:$true] %s264_s21 }
  0x19   : > { %3298 = dma.hbm_to_vmem [thread:$0]  (!%p3688_p10), %s235_s9, 32, %s237_s16, [#allocation6]  }
  0x1a   : > { %3304 = dma.hbm_to_vmem [thread:$0]  (!%p3688_p10), %s263_s13, 4096, %s265_s21, [#allocation9], %s4420_s19, %s4420_s19, %s4421_s20  }
  0x1b   : > { %s3720_s18 = sadd.s32 1, %s3587_s27   ;;  %s32_s22 = sadd.s32 1, %s3583_s26 }
  0x1c   : > { %s29_s23 = ssub.s32 %s3587_s27, %s3720_s18  ;;  %p39_p12 = scmp.ne.s32.totalorder %s3583_s26, %s3579_s25 }
  0x1d   : > { %p30_p13 = scmp.eq.s32.totalorder %s29_s23, 0  ;;  %p40_p0 = scmp.eq.s32.totalorder %s3587_s27, 0 }
  0x1e   : > { %p3730_p3 = por %p195_p2, %p39_p12  ;;  %p3317_p5 = scmp.lt.s32.totalorder %s3587_s27, 2 }
  0x1f   : > { %s3736_s9 = scalar_select %p30_p13, %s3583_s26, %s32_s22  }
  0x20   : > { %p41_p7 = por %p40_p0, %p39_p12  ;;  %s281_s15 = sand.u32 1, %s3583_s26  }
  0x21   : > { %s2611_s10 = sshll.u32 %s281_s15, 8  ;;  %s3141_s11 = sshll.u32 %s3587_s27, 8 }
  0x22   : > { %s291_s16 = scalar_lea.hbm %s4412_s0, %s3141_s11  ;;  %s285_s17 = scalar_lea.vmem [#allocation2], %s2611_s10 }
  0x23   : > { %s294_s21 = sshll.u32 %s285_s17, 4  ;;  %s292_s23 = sshll.u32 %s291_s16, 4  ;;  %s295_s21 = int_to_ptr.vmem [resolvable:$true] %s294_s21  ;;  %s293_s23 = int_to_ptr.hbm [resolvable:$true] %s292_s23 }
  0x24   : > { %p3743_p2 = pnand %p3317_p5, %p41_p7  ;;  %s282_s22 = scalar_lea.sflag [#allocation3], %s281_s15 }
  0x25   : > { %s3483_s20 = sshra.s32 %s293_s23, 4  ;;  %s3490_s13 = scalar_lea.hbm %s4412_s0, 512  ;;  %s3484_s20 = int_to_ptr.hbm [resolvable:$true] %s3483_s20 }
  0x26   : > { %s3485_s1 = scalar_lea.hbm %s3484_s20, 256  ;;  %p3487_p10 = pneg %p3743_p2 }
  0x27   : > { %p3486_p9 = scmp.ne.s32.totalorder %s3484_s20, %s3485_s1  ;;  %p3491_p0 = scmp.lt.s32.totalorder %s3484_s20, %s4412_s0 }
  0x28   : > { %p3492_p5 = scmp.lt.s32.totalorder %s3490_s13, %s3485_s1 }
  0x29   : > { %p3488_p12 = pnand %p3487_p10, %p3486_p9 }
  0x2a   : > { %p3493_p7 = por %p3492_p5, %p3491_p0 }
  0x2b   : > { %p3489_p13 = pneg %p3488_p12 }
  0x2d   : > { %p3494_p11 = pnand %p3493_p7, %p3489_p13 }
  0x2f   : > { %3497 = shalt.err (!%p3494_p11)
}
  0x30   : > { %s4430_s15 = smov 8   ;;  %s4431_s17 = smov 128  }
  0x31   : > { %3308 = dma.hbm_to_vmem [thread:$0]  (!%p3743_p2), %s293_s23, 4096, %s295_s21, %s282_s22, %s4431_s17, %s4431_s17, %s4430_s15  }
  0x32   : > { %306 = sbr.rel (%p3680_p8) target bundleno = 996 (0x3e4), region = 48  ;;  %s3763_s11 = sand.u32 (!%p3680_p8), 1, %s3579_s25  }
  0x33   : > { %s2616_s20 = sshll.u32 (!%p3680_p8), %s3763_s11, 8  ;;  %s309_s1 = scalar_lea.sflag (!%p3680_p8), [#allocation3], %s3763_s11 }
  0x34   : > { %s3767_s10 = scalar_lea.vmem (!%p3680_p8), [#allocation2], %s2616_s20 }
  0x37   : > { %3558 = dma.done.wait (%p3667_p4), %s309_s1, 4096  }
  0x38   : > { %3560 = vsyncadd (%p3667_p4), %s309_s1, 4294963200 }
  0x39   : > { %3562 = dma.done.wait (%p46_p1), [#allocation6], 4128  }
  0x3a   : > { %3564 = vsyncadd (%p46_p1), [#allocation6], 4294963168 }
  0x3b   : > { %3566 = dma.done.wait (%p46_p1), [#allocation9], 8192  }
  0x3c   : > { %3568 = vsyncadd (%p46_p1), [#allocation9], 4294959104  ;;  %v2808_v0 = vld [vmem:[#allocation5 + $0x70] sm:$0xf]  ;;  %v3189_v1 = vld [vmem:[#allocation5 + $0x74] sm:$0xf0] }
  0x3d   : > { %v2872_v2 = vld [vmem:[#allocation5 + $0xf0] sm:$0xf]  ;;  %v2809_v3 = vor.u32 %v3189_v1, %v2808_v0  ;;  %v3205_v4 = vld [vmem:[#allocation5 + $0xf4] sm:$0xf0]  ;;  %v3188_v5 = vld [vmem:[#allocation5 + $0x74] sm:$0xf] }
  0x3e   : > { %v2810_v6 = vld [vmem:[#allocation5 + $0x78] sm:$0xf0]  ;;  %v2873_v7 = vor.u32 %v3205_v4, %v2872_v2  ;;  %v3204_v9 = vld [vmem:[#allocation5 + $0xf4] sm:$0xf]  ;;  %v2800_v11 = vld [vmem:[#allocation5 + $0x60] sm:$0xf] }
  0x3f   : > { %v2813_v8 = vor.u32 %v3188_v5, %v2810_v6  ;;  %v2874_v10 = vld [vmem:[#allocation5 + $0xf8] sm:$0xf0]  ;;  %756 = vmatpush.bf16.msra.mxu0 %v2809_v3  ;;  %v3187_v13 = vld [vmem:[#allocation5 + $0x64] sm:$0xf0]  ;;  %v2864_v14 = vld [vmem:[#allocation5 + $0xe0] sm:$0xf] }
  0x40   : > { %v2877_v12 = vor.u32 %v3204_v9, %v2874_v10  ;;  %v3203_v15 = vld [vmem:[#allocation5 + $0xe4] sm:$0xf0]  ;;  %845 = vmatpush.bf16.msra.mxu1 %v2873_v7  ;;  %v2801_v16 = vor.u32 %v3187_v13, %v2800_v11  ;;  %v3186_v18 = vld [vmem:[#allocation5 + $0x64] sm:$0xf]  ;;  %v2802_v19 = vld [vmem:[#allocation5 + $0x68] sm:$0xf0] }
  0x41   : > { %934 = vmatpush.bf16.msra.mxu2 %v2813_v8  ;;  %v2865_v17 = vor.u32 %v3203_v15, %v2864_v14  ;;  %v3202_v20 = vld [vmem:[#allocation5 + $0xe4] sm:$0xf]  ;;  %v2805_v21 = vor.u32 %v3186_v18, %v2802_v19  ;;  %v2866_v22 = vld [vmem:[#allocation5 + $0xe8] sm:$0xf0]  ;;  %v2792_v23 = vld [vmem:[#allocation5 + $0x50] sm:$0xf] }
  0x42   : > { %1023 = vmatpush.bf16.msra.mxu3 %v2877_v12  ;;  %v3185_v24 = vld [vmem:[#allocation5 + $0x54] sm:$0xf0]  ;;  %v2869_v25 = vor.u32 %v3202_v20, %v2866_v22  ;;  %v2856_v26 = vld [vmem:[#allocation5 + $0xd0] sm:$0xf]  ;;  %v3184_v28 = vld [vmem:[#allocation5 + $0x54] sm:$0xf] }
  0x43   : > { %v3201_v27 = vld [vmem:[#allocation5 + $0xd4] sm:$0xf0]  ;;  %757 = vmatpush.bf16.msra.mxu0 %v2801_v16  ;;  %v2793_v29 = vor.u32 %v3185_v24, %v2792_v23  ;;  %v2794_v30 = vld [vmem:[#allocation5 + $0x58] sm:$0xf0]  ;;  %v3200_v31 = vld [vmem:[#allocation5 + $0xd4] sm:$0xf] }
  0x44   : > { %v2858_v32 = vld [vmem:[#allocation5 + $0xd8] sm:$0xf0]  ;;  %846 = vmatpush.bf16.msra.mxu1 %v2865_v17  ;;  %v2857_v33 = vor.u32 %v3201_v27, %v2856_v26  ;;  %v2797_v34 = vor.u32 %v3184_v28, %v2794_v30  ;;  %v2784_v35 = vld [vmem:[#allocation5 + $0x40] sm:$0xf]  ;;  %v3183_v36 = vld [vmem:[#allocation5 + $0x44] sm:$0xf0] }
  0x45   : > { %935 = vmatpush.bf16.msra.mxu2 %v2805_v21  ;;  %v2848_v37 = vld [vmem:[#allocation5 + $0xc0] sm:$0xf]  ;;  %v2861_v38 = vor.u32 %v3200_v31, %v2858_v32  ;;  %v3199_v39 = vld [vmem:[#allocation5 + $0xc4] sm:$0xf0]  ;;  %v3182_v40 = vld [vmem:[#allocation5 + $0x44] sm:$0xf]  ;;  %v2785_v44 = vor.u32 %v3183_v36, %v2784_v35 }
  0x46   : > { %1024 = vmatpush.bf16.msra.mxu3 %v2869_v25  ;;  %v2786_v41 = vld [vmem:[#allocation5 + $0x48] sm:$0xf0]  ;;  %v3198_v42 = vld [vmem:[#allocation5 + $0xc4] sm:$0xf]  ;;  %v2849_v45 = vor.u32 %v3199_v39, %v2848_v37  ;;  %v2776_v47 = vld [vmem:[#allocation5 + $0x30] sm:$0xf] }
  0x47   : > { %v2850_v43 = vld [vmem:[#allocation5 + $0xc8] sm:$0xf0]  ;;  %758 = vmatpush.bf16.msra.mxu0 %v2793_v29  ;;  %v2789_v46 = vor.u32 %v3182_v40, %v2786_v41  ;;  %v3181_v48 = vld [vmem:[#allocation5 + $0x34] sm:$0xf0]  ;;  %v2840_v49 = vld [vmem:[#allocation5 + $0xb0] sm:$0xf] }
  0x48   : > { %847 = vmatpush.bf16.msra.mxu1 %v2857_v33  ;;  %v2853_v50 = vor.u32 %v3198_v42, %v2850_v43  ;;  %v3197_v51 = vld [vmem:[#allocation5 + $0xb4] sm:$0xf0]  ;;  %v3180_v52 = vld [vmem:[#allocation5 + $0x34] sm:$0xf]  ;;  %v2778_v53 = vld [vmem:[#allocation5 + $0x38] sm:$0xf0]  ;;  %v2777_v56 = vor.u32 %v3181_v48, %v2776_v47 }
  0x49   : > { %936 = vmatpush.bf16.msra.mxu2 %v2797_v34  ;;  %v3196_v54 = vld [vmem:[#allocation5 + $0xb4] sm:$0xf]  ;;  %v2842_v55 = vld [vmem:[#allocation5 + $0xb8] sm:$0xf0]  ;;  %v2841_v57 = vor.u32 %v3197_v51, %v2840_v49  ;;  %v2781_v58 = vor.u32 %v3180_v52, %v2778_v53  ;;  %v2768_v59 = vld [vmem:[#allocation5 + $0x20] sm:$0xf] }
  0x4a   : > { %1025 = vmatpush.bf16.msra.mxu3 %v2861_v38  ;;  %v3179_v60 = vld [vmem:[#allocation5 + $0x24] sm:$0xf0]  ;;  %v2832_v61 = vld [vmem:[#allocation5 + $0xa0] sm:$0xf]  ;;  %v2845_v62 = vor.u32 %v3196_v54, %v2842_v55  ;;  %v3178_v0 = vld [vmem:[#allocation5 + $0x24] sm:$0xf] }
  0x4b   : > { %759 = vmatpush.bf16.msra.mxu0 %v2785_v44  ;;  %v3195_v63 = vld [vmem:[#allocation5 + $0xa4] sm:$0xf0]  ;;  %v2770_v1 = vld [vmem:[#allocation5 + $0x28] sm:$0xf0]  ;;  %v3194_v2 = vld [vmem:[#allocation5 + $0xa4] sm:$0xf]  ;;  %v2769_v4 = vor.u32 %v3179_v60, %v2768_v59 }
  0x4c   : > { %848 = vmatpush.bf16.msra.mxu1 %v2849_v45  ;;  %v2834_v3 = vld [vmem:[#allocation5 + $0xa8] sm:$0xf0]  ;;  %v2833_v5 = vor.u32 %v3195_v63, %v2832_v61  ;;  %v2773_v6 = vor.u32 %v3178_v0, %v2770_v1  ;;  %v2760_v7 = vld [vmem:[#allocation5 + $0x10] sm:$0xf]  ;;  %v3177_v8 = vld [vmem:[#allocation5 + $0x14] sm:$0xf0] }
  0x4d   : > { %937 = vmatpush.bf16.msra.mxu2 %v2789_v46  ;;  %v2824_v9 = vld [vmem:[#allocation5 + $0x90] sm:$0xf]  ;;  %v2837_v10 = vor.u32 %v3194_v2, %v2834_v3  ;;  %v3193_v11 = vld [vmem:[#allocation5 + $0x94] sm:$0xf0]  ;;  %v3176_v12 = vld [vmem:[#allocation5 + $0x14] sm:$0xf]  ;;  %v2761_v16 = vor.u32 %v3177_v8, %v2760_v7 }
  0x4e   : > { %1026 = vmatpush.bf16.msra.mxu3 %v2853_v50  ;;  %v2762_v13 = vld [vmem:[#allocation5 + $0x18] sm:$0xf0]  ;;  %v3192_v14 = vld [vmem:[#allocation5 + $0x94] sm:$0xf]  ;;  %v2752_v17 = vld [vmem:[#allocation5] sm:$0xf]  ;;  %v2825_v19 = vor.u32 %v3193_v11, %v2824_v9 }
  0x4f   : > { %760 = vmatpush.bf16.msra.mxu0 %v2777_v56  ;;  %v2826_v15 = vld [vmem:[#allocation5 + $0x98] sm:$0xf0]  ;;  %v3175_v18 = vld [vmem:[#allocation5 + $0x4] sm:$0xf0]  ;;  %v2765_v20 = vor.u32 %v3176_v12, %v2762_v13  ;;  %v2816_v21 = vld [vmem:[#allocation5 + $0x80] sm:$0xf] }
  0x50   : > { %849 = vmatpush.bf16.msra.mxu1 %v2841_v57  ;;  %v3191_v22 = vld [vmem:[#allocation5 + $0x84] sm:$0xf0]  ;;  %v3174_v23 = vld [vmem:[#allocation5 + $0x4] sm:$0xf]  ;;  %v2829_v24 = vor.u32 %v3192_v14, %v2826_v15  ;;  %v2754_v25 = vld [vmem:[#allocation5 + $0x8] sm:$0xf0]  ;;  %v2753_v31 = vor.u32 %v3175_v18, %v2752_v17 }
  0x51   : > { %938 = vmatpush.bf16.msra.mxu2 %v2781_v58  ;;  %v3190_v26 = vld [vmem:[#allocation5 + $0x84] sm:$0xf]  ;;  %v2818_v27 = vld [vmem:[#allocation5 + $0x88] sm:$0xf0]  ;;  %v2624_v28 = vld [vmem:[%s3767_s10] sm:$0xf]  ;;  %v2817_v35 = vor.u32 %v3191_v22, %v2816_v21  ;;  %v2757_v36 = vor.u32 %v3174_v23, %v2754_v25 }
  0x52   : > { %1027 = vmatpush.bf16.msra.mxu3 %v2845_v62  ;;  %v3220_v29 = vld [vmem:[#allocation8 + $0x74] sm:$0xf]  ;;  %v2938_v30 = vld [vmem:[#allocation8 + $0x78] sm:$0xf0]  ;;  %v3143_v32 = vld [vmem:[%s3767_s10 + $0x4] sm:$0xf0]  ;;  %v2821_v39 = vor.u32 %v3190_v26, %v2818_v27 }
  0x53   : > { %761 = vmatpush.bf16.msra.mxu0 %v2769_v4  ;;  %v3236_v33 = vld [vmem:[#allocation8 + $0xf4] sm:$0xf]  ;;  %v3002_v34 = vld [vmem:[#allocation8 + $0xf8] sm:$0xf0]  ;;  %v3142_v37 = vld [vmem:[%s3767_s10 + $0x4] sm:$0xf]  ;;  %v2941_v40 = vor.u32 %v3220_v29, %v2938_v30  ;;  %v2625_v43 = vor.u32 %v3143_v32, %v2624_v28 }
  0x54   : > { %850 = vmatpush.bf16.msra.mxu1 %v2833_v5  ;;  %v2626_v38 = vld [vmem:[%s3767_s10 + $0x8] sm:$0xf0]  ;;  %v2936_v41 = vld [vmem:[#allocation8 + $0x70] sm:$0xf]  ;;  %v3221_v42 = vld [vmem:[#allocation8 + $0x74] sm:$0xf0]  ;;  %v3005_v44 = vor.u32 %v3236_v33, %v3002_v34 }
  0x55   : > { %939 = vmatpush.bf16.msra.mxu2 %v2773_v6  ;;  %v3000_v45 = vld [vmem:[#allocation8 + $0xf0] sm:$0xf]  ;;  %v3237_v46 = vld [vmem:[#allocation8 + $0xf4] sm:$0xf0]  ;;  %v2629_v47 = vor.u32 %v3142_v37, %v2626_v38  ;;  %v2937_v48 = vor.u32 %v3221_v42, %v2936_v41  ;;  %v3218_v50 = vld [vmem:[#allocation8 + $0x64] sm:$0xf] }
  0x56   : > { %1028 = vmatpush.bf16.msra.mxu3 %v2837_v10  ;;  %v3001_v49 = vor.u32 %v3237_v46, %v3000_v45  ;;  %v2930_v51 = vld [vmem:[#allocation8 + $0x68] sm:$0xf0]  ;;  %v3234_v52 = vld [vmem:[#allocation8 + $0xe4] sm:$0xf]  ;;  %v2928_v55 = vld [vmem:[#allocation8 + $0x60] sm:$0xf] }
  0x57   : > { %762 = vmatpush.bf16.msra.mxu0 %v2761_v16  ;;  %v2933_v53 = vor.u32 %v3218_v50, %v2930_v51  ;;  %v2994_v54 = vld [vmem:[#allocation8 + $0xe8] sm:$0xf0]  ;;  %v3219_v56 = vld [vmem:[#allocation8 + $0x64] sm:$0xf0]  ;;  %v2992_v59 = vld [vmem:[#allocation8 + $0xe0] sm:$0xf] }
  0x58   : > { %851 = vmatpush.bf16.msra.mxu1 %v2825_v19  ;;  %v2997_v57 = vor.u32 %v3234_v52, %v2994_v54  ;;  %v2929_v58 = vor.u32 %v3219_v56, %v2928_v55  ;;  %v3235_v60 = vld [vmem:[#allocation8 + $0xe4] sm:$0xf0]  ;;  %v2632_v62 = vld [vmem:[%s3767_s10 + $0x10] sm:$0xf]  ;;  %v3145_v63 = vld [vmem:[%s3767_s10 + $0x14] sm:$0xf0] }
  0x59   : > { %940 = vmatpush.bf16.msra.mxu2 %v2765_v20  ;;  %v2993_v61 = vor.u32 %v3235_v60, %v2992_v59  ;;  %v3144_v0 = vld [vmem:[%s3767_s10 + $0x14] sm:$0xf]  ;;  %v2634_v1 = vld [vmem:[%s3767_s10 + $0x18] sm:$0xf0]  ;;  %v2633_v2 = vor.u32 %v3145_v63, %v2632_v62  ;;  %v2640_v4 = vld [vmem:[%s3767_s10 + $0x20] sm:$0xf] }
  0x5a   : > { %1029 = vmatpush.bf16.msra.mxu3 %v2829_v24  ;;  %v2637_v3 = vor.u32 %v3144_v0, %v2634_v1  ;;  %v3147_v5 = vld [vmem:[%s3767_s10 + $0x24] sm:$0xf0]  ;;  %v3146_v6 = vld [vmem:[%s3767_s10 + $0x24] sm:$0xf]  ;;  %v2642_v7 = vld [vmem:[%s3767_s10 + $0x28] sm:$0xf0] }
  0x5b   : > { %763 = vmatpush.bf16.msra.mxu0 %v2753_v31  ;;  %v2641_v8 = vor.u32 %v3147_v5, %v2640_v4  ;;  %v2645_v9 = vor.u32 %v3146_v6, %v2642_v7  ;;  %v3216_v10 = vld [vmem:[#allocation8 + $0x54] sm:$0xf]  ;;  %v2922_v11 = vld [vmem:[#allocation8 + $0x58] sm:$0xf0]  ;;  %v2920_v15 = vld [vmem:[#allocation8 + $0x50] sm:$0xf] }
  0x5c   : > { %852 = vmatpush.bf16.msra.mxu1 %v2817_v35  ;;  %v3232_v12 = vld [vmem:[#allocation8 + $0xd4] sm:$0xf]  ;;  %v2925_v13 = vor.u32 %v3216_v10, %v2922_v11  ;;  %v2986_v14 = vld [vmem:[#allocation8 + $0xd8] sm:$0xf0]  ;;  %v3217_v16 = vld [vmem:[#allocation8 + $0x54] sm:$0xf0] }
  0x5d   : > { %941 = vmatpush.bf16.msra.mxu2 %v2757_v36  ;;  %v2989_v17 = vor.u32 %v3232_v12, %v2986_v14  ;;  %v2921_v18 = vor.u32 %v3217_v16, %v2920_v15  ;;  %v2984_v19 = vld [vmem:[#allocation8 + $0xd0] sm:$0xf]  ;;  %v3233_v20 = vld [vmem:[#allocation8 + $0xd4] sm:$0xf0]  ;;  %v2656_v28 = vld [vmem:[%s3767_s10 + $0x40] sm:$0xf] }
  0x5e   : > { %1030 = vmatpush.bf16.msra.mxu3 %v2821_v39  ;;  %764 = vmatmul.bf16.vlgmr.msra.gmra.mxu0 %v2625_v43  ;;  %v2985_v21 = vor.u32 %v3233_v20, %v2984_v19  ;;  %v2648_v22 = vld [vmem:[%s3767_s10 + $0x30] sm:$0xf]  ;;  %v3149_v23 = vld [vmem:[%s3767_s10 + $0x34] sm:$0xf0]  ;;  %v3148_v24 = vld [vmem:[%s3767_s10 + $0x34] sm:$0xf] }
  0x5f   : > { %853 = vmatmul.bf16.vlgmr.msra.gmra.mxu1 %v2629_v47  ;;  %1406 = vmatpush.bf16.msrb.mxu0 %v2937_v48  ;;  %v2650_v25 = vld [vmem:[%s3767_s10 + $0x38] sm:$0xf0]  ;;  %v2649_v26 = vor.u32 %v3149_v23, %v2648_v22  ;;  %v3151_v29 = vld [vmem:[%s3767_s10 + $0x44] sm:$0xf0]  ;;  %v3150_v30 = vld [vmem:[%s3767_s10 + $0x44] sm:$0xf] }
  0x60   : > { %942 = vmatmul.bf16.vlgmr.msra.gmra.mxu2 %v2625_v43  ;;  %1495 = vmatpush.bf16.msrb.mxu1 %v3001_v49  ;;  %v2653_v27 = vor.u32 %v3148_v24, %v2650_v25  ;;  %v2658_v31 = vld [vmem:[%s3767_s10 + $0x48] sm:$0xf0]  ;;  %v2657_v32 = vor.u32 %v3151_v29, %v2656_v28  ;;  %v3214_v34 = vld [vmem:[#allocation8 + $0x44] sm:$0xf]  ;;  %v2912_v39 = vld [vmem:[#allocation8 + $0x40] sm:$0xf] }
  0x61   : > { %1584 = vmatpush.bf16.msrb.mxu2 %v2941_v40  ;;  %1031 = vmatmul.bf16.vlgmr.msra.gmra.mxu3 %v2629_v47  ;;  %v2661_v33 = vor.u32 %v3150_v30, %v2658_v31  ;;  %v2914_v35 = vld [vmem:[#allocation8 + $0x48] sm:$0xf0]  ;;  %v3230_v36 = vld [vmem:[#allocation8 + $0xc4] sm:$0xf]  ;;  %v3215_v40 = vld [vmem:[#allocation8 + $0x44] sm:$0xf0] }
  0x62   : > { %1673 = vmatpush.bf16.msrb.mxu3 %v3005_v44  ;;  %v2917_v37 = vor.u32 %v3214_v34, %v2914_v35  ;;  %v2978_v38 = vld [vmem:[#allocation8 + $0xc8] sm:$0xf0]  ;;  %v2913_v42 = vor.u32 %v3215_v40, %v2912_v39  ;;  %v2976_v43 = vld [vmem:[#allocation8 + $0xc0] sm:$0xf]  ;;  %v3231_v44 = vld [vmem:[#allocation8 + $0xc4] sm:$0xf0] }
  0x63   : > { %1407 = vmatpush.bf16.msrb.mxu0 %v2929_v58  ;;  %v2981_v41 = vor.u32 %v3230_v36, %v2978_v38  ;;  %v2977_v45 = vor.u32 %v3231_v44, %v2976_v43  ;;  %v2664_v46 = vld [vmem:[%s3767_s10 + $0x50] sm:$0xf]  ;;  %v3153_v47 = vld [vmem:[%s3767_s10 + $0x54] sm:$0xf0]  ;;  %v3152_v48 = vld [vmem:[%s3767_s10 + $0x54] sm:$0xf] }
  0x64   : > { %1496 = vmatpush.bf16.msrb.mxu1 %v2993_v61  ;;  %v2666_v49 = vld [vmem:[%s3767_s10 + $0x58] sm:$0xf0]  ;;  %v2665_v50 = vor.u32 %v3153_v47, %v2664_v46  ;;  %v2672_v52 = vld [vmem:[%s3767_s10 + $0x60] sm:$0xf]  ;;  %v3154_v54 = vld [vmem:[%s3767_s10 + $0x64] sm:$0xf] }
  0x65   : > { %1585 = vmatpush.bf16.msrb.mxu2 %v2933_v53  ;;  %v2669_v51 = vor.u32 %v3152_v48, %v2666_v49  ;;  %v3155_v53 = vld [vmem:[%s3767_s10 + $0x64] sm:$0xf0]  ;;  %v2674_v55 = vld [vmem:[%s3767_s10 + $0x68] sm:$0xf0]  ;;  %v3212_v58 = vld [vmem:[#allocation8 + $0x34] sm:$0xf] }
  0x66   : > { %1674 = vmatpush.bf16.msrb.mxu3 %v2997_v57  ;;  %v2673_v56 = vor.u32 %v3155_v53, %v2672_v52  ;;  %v2677_v57 = vor.u32 %v3154_v54, %v2674_v55  ;;  %v2906_v59 = vld [vmem:[#allocation8 + $0x38] sm:$0xf0]  ;;  %v3228_v60 = vld [vmem:[#allocation8 + $0xb4] sm:$0xf]  ;;  %v2680_v0 = vld [vmem:[%s3767_s10 + $0x70] sm:$0xf] }
  0x67   : > { %1408 = vmatpush.bf16.msrb.mxu0 %v2921_v18  ;;  %v2909_v61 = vor.u32 %v3212_v58, %v2906_v59  ;;  %v2970_v62 = vld [vmem:[#allocation8 + $0xb8] sm:$0xf0]  ;;  %v3157_v1 = vld [vmem:[%s3767_s10 + $0x74] sm:$0xf0]  ;;  %v2904_v5 = vld [vmem:[#allocation8 + $0x30] sm:$0xf] }
  0x68   : > { %1497 = vmatpush.bf16.msrb.mxu1 %v2985_v21  ;;  %v2973_v63 = vor.u32 %v3228_v60, %v2970_v62  ;;  %v2681_v4 = vor.u32 %v3157_v1, %v2680_v0  ;;  %v3213_v6 = vld [vmem:[#allocation8 + $0x34] sm:$0xf0]  ;;  %v2968_v7 = vld [vmem:[#allocation8 + $0xb0] sm:$0xf]  ;;  %v430_v12 = vld [vmem:[#allocation7] sm:$0x3] }
  0x69   : > { %1586 = vmatpush.bf16.msrb.mxu2 %v2925_v13  ;;  %v3229_v10 = vld [vmem:[#allocation8 + $0xb4] sm:$0xf0]  ;;  %v2688_v13 = vld [vmem:[%s3767_s10 + $0x80] sm:$0xf]  ;;  %v3159_v14 = vld [vmem:[%s3767_s10 + $0x84] sm:$0xf0] }
  0x6a   : > { %1675 = vmatpush.bf16.msrb.mxu3 %v2989_v17  ;;  %v2969_v11 = vor.u32 %v3229_v10, %v2968_v7  ;;  %v3815_v15 = vperm.slane %v430_v12, 0  ;;  %v3158_v16 = vld [vmem:[%s3767_s10 + $0x84] sm:$0xf]  ;;  %v2690_v17 = vld [vmem:[%s3767_s10 + $0x88] sm:$0xf0]  ;;  %v2689_v18 = vor.u32 %v3159_v14, %v2688_v13  ;;  %v3820_v24 = vperm.slane %v430_v12, 1 }
  0x6b   : > { %1409 = vmatpush.bf16.msrb.mxu0 %v2913_v42  ;;  %v2693_v20 = vor.u32 %v3158_v16, %v2690_v17  ;;  %v3210_v25 = vld [vmem:[#allocation8 + $0x24] sm:$0xf]  ;;  %v2962_v29 = vld [vmem:[#allocation8 + $0xa8] sm:$0xf0]  ;;  %v3161_v40 = vld [vmem:[%s3767_s10 + $0x94] sm:$0xf0] }
  0x6c   : > { %1498 = vmatpush.bf16.msrb.mxu1 %v2977_v45  ;;  %v3226_v28 = vld [vmem:[#allocation8 + $0xa4] sm:$0xf]  ;;  %v2696_v39 = vld [vmem:[%s3767_s10 + $0x90] sm:$0xf]  ;;  %v2698_v42 = vld [vmem:[%s3767_s10 + $0x98] sm:$0xf0] }
  0x6d   : > { %1587 = vmatpush.bf16.msrb.mxu2 %v2917_v37  ;;  %v2965_v31 = vor.u32 %v3226_v28, %v2962_v29  ;;  %v2896_v45 = vld [vmem:[#allocation8 + $0x20] sm:$0xf]  ;;  %v3211_v46 = vld [vmem:[#allocation8 + $0x24] sm:$0xf0]  ;;  %v2697_v52 = vor.u32 %v3161_v40, %v2696_v39  ;;  %s2621_s23 = sshll.u32 %s3763_s11, 9  ;;  %s3271_s13 = sshll.u32 %s3658_s28, 9 }
  0x6e   : > { %769 = vmatmul.bf16.gmra.mxu0 %v2633_v2  ;;  %1676 = vmatpush.bf16.msrb.mxu3 %v2981_v41  ;;  %v3160_v41 = vld [vmem:[%s3767_s10 + $0x94] sm:$0xf]  ;;  %v2897_v47 = vor.u32 %v3211_v46, %v2896_v45  ;;  %v2960_v48 = vld [vmem:[#allocation8 + $0xa0] sm:$0xf]  ;;  %v3227_v49 = vld [vmem:[#allocation8 + $0xa4] sm:$0xf0]  ;;  %s2489_s15 = scalar_lea.hbm %s4419_s7, %s3271_s13 }
  0x6f   : > { %858 = vmatmul.bf16.gmra.mxu1 %v2637_v3  ;;  %v2961_v53 = vor.u32 %v3227_v49, %v2960_v48  ;;  %v3163_v10 = vld [vmem:[%s3767_s10 + $0xa4] sm:$0xf0]  ;;  %v3162_v13 = vld [vmem:[%s3767_s10 + $0xa4] sm:$0xf]  ;;  %v2706_v14 = vld [vmem:[%s3767_s10 + $0xa8] sm:$0xf0] }
  0x70   : > { %947 = vmatmul.bf16.gmra.mxu2 %v2633_v2  ;;  %v3156_v2 = vld [vmem:[%s3767_s10 + $0x74] sm:$0xf]  ;;  %1499 = vmatpush.bf16.msrb.mxu1 %v2969_v11  ;;  %v2712_v45 = vld [vmem:[%s3767_s10 + $0xb0] sm:$0xf]  ;;  %v3165_v46 = vld [vmem:[%s3767_s10 + $0xb4] sm:$0xf0] }
  0x71   : > { %1036 = vmatmul.bf16.gmra.mxu3 %v2637_v3  ;;  %1588 = vmatpush.bf16.msrb.mxu2 %v2909_v61  ;;  %v2682_v3 = vld [vmem:[%s3767_s10 + $0x78] sm:$0xf0]  ;;  %s4218_s22 = scalar_lea.vmem [#allocation11], %s2621_s23  ;;  %s2492_s20 = sshll.u32 %s2489_s15, 4  ;;  %s2493_s20 = int_to_ptr.hbm [resolvable:$true] %s2492_s20 }
  0x72   : > { %1677 = vmatpush.bf16.msrb.mxu3 %v2973_v63  ;;  %v2714_v48 = vld [vmem:[%s3767_s10 + $0xb8] sm:$0xf0]  ;;  %s2490_s17 = sshll.u32 %s4218_s22, 4  ;;  %s2477_s28 = scalar_lea.sflag [#allocation4], %s3763_s11  ;;  %s2491_s17 = int_to_ptr.vmem [resolvable:$true] %s2490_s17 }
  0x73   : > { %s3527_s1 = sshra.s32 %s2493_s20, 4  ;;  %s3533_s19 = scalar_lea.hbm %s4419_s7, 1024  ;;  %s3528_s1 = int_to_ptr.hbm [resolvable:$true] %s3527_s1 }
  0x74   : > { %1500 = vmatpush.bf16.msrb.mxu1 %v2961_v53  ;;  %v3209_v53 = vld [vmem:[#allocation8 + $0x14] sm:$0xf0]  ;;  %p3534_p11 = scmp.lt.s32.totalorder %s3528_s1, %s4419_s7 }
  0x76   : > { %1678 = vmatpush.bf16.msrb.mxu3 %v2965_v31  ;;  %v2890_v31 = vld [vmem:[#allocation8 + $0x18] sm:$0xf0] }
  0x7e   : > { %774 = vmatmul.bf16.gmra.mxu0 %v2641_v8 }
  0x7f   : > { %863 = vmatmul.bf16.gmra.mxu1 %v2645_v9 }
  0x80   : > { %952 = vmatmul.bf16.gmra.mxu2 %v2641_v8  ;;  %v2685_v8 = vor.u32 %v3156_v2, %v2682_v3 }
  0x81   : > { %1041 = vmatmul.bf16.gmra.mxu3 %v2645_v9  ;;  %v2905_v9 = vor.u32 %v3213_v6, %v2904_v5 }
  0x83   : > { %1410 = vmatpush.bf16.msrb.mxu0 %v2905_v9  ;;  %v2704_v9 = vld [vmem:[%s3767_s10 + $0xa0] sm:$0xf] }
  0x84   : > { %v2705_v17 = vor.u32 %v3163_v10, %v2704_v9 }
  0x87   : > { %1411 = vmatpush.bf16.msrb.mxu0 %v2897_v47  ;;  %v3164_v47 = vld [vmem:[%s3767_s10 + $0xb4] sm:$0xf] }
  0x8e   : > { %779 = vmatmul.bf16.gmra.mxu0 %v2649_v26 }
  0x8f   : > { %868 = vmatmul.bf16.gmra.mxu1 %v2653_v27 }
  0x90   : > { %957 = vmatmul.bf16.gmra.mxu2 %v2649_v26  ;;  %v2898_v26 = vld [vmem:[#allocation8 + $0x28] sm:$0xf0] }
  0x91   : > { %1046 = vmatmul.bf16.gmra.mxu3 %v2653_v27  ;;  %v2901_v27 = vor.u32 %v3210_v25, %v2898_v26 }
  0x93   : > { %1589 = vmatpush.bf16.msrb.mxu2 %v2901_v27 }
  0x9e   : > { %784 = vmatmul.bf16.gmra.mxu0 %v2657_v32 }
  0x9f   : > { %873 = vmatmul.bf16.gmra.mxu1 %v2661_v33 }
  0xa0   : > { %962 = vmatmul.bf16.gmra.mxu2 %v2657_v32 }
  0xa1   : > { %1051 = vmatmul.bf16.gmra.mxu3 %v2661_v33 }
  0xae   : > { %789 = vmatmul.bf16.gmra.mxu0 %v2665_v50 }
  0xaf   : > { %878 = vmatmul.bf16.gmra.mxu1 %v2669_v51 }
  0xb0   : > { %967 = vmatmul.bf16.gmra.mxu2 %v2665_v50 }
  0xb1   : > { %1056 = vmatmul.bf16.gmra.mxu3 %v2669_v51 }
  0xbe   : > { %794 = vmatmul.bf16.gmra.mxu0 %v2673_v56 }
  0xbf   : > { %883 = vmatmul.bf16.gmra.mxu1 %v2677_v57 }
  0xc0   : > { %972 = vmatmul.bf16.gmra.mxu2 %v2673_v56 }
  0xc1   : > { %1061 = vmatmul.bf16.gmra.mxu3 %v2677_v57  ;;  %v2701_v57 = vor.u32 %v3160_v41, %v2698_v42 }
  0xce   : > { %799 = vmatmul.bf16.gmra.mxu0 %v2681_v4 }
  0xcf   : > { %888 = vmatmul.bf16.gmra.mxu1 %v2685_v8 }
  0xd0   : > { %977 = vmatmul.bf16.gmra.mxu2 %v2681_v4 }
  0xd1   : > { %1066 = vmatmul.bf16.gmra.mxu3 %v2685_v8 }
  0xdb   : > { %v765_v19 = vpop.f32.mrf.mxu0 }
  0xdc   : > { %v766_v21 = vadd.f32 %v765_v19, %v3815_v15  ;;  %v854_v22 = vpop.f32.mrf.mxu1 }
  0xde   : > { %v855_v23 = vadd.f32 %v854_v22, %v766_v21  ;;  %804 = vmatmul.bf16.gmra.mxu0 %v2689_v18  ;;  %v2709_v22 = vor.u32 %v3162_v13, %v2706_v14 }
  0xdf   : > { %893 = vmatmul.bf16.gmra.mxu1 %v2693_v20 }
  0xe0   : > { %982 = vmatmul.bf16.gmra.mxu2 %v2689_v18  ;;  %v1112_v43 = vmax.f32 %v855_v23, 0.0 }
  0xe1   : > { %1071 = vmatmul.bf16.gmra.mxu3 %v2693_v20 }
  0xe3   : > { %v943_v30 = vpop.f32.mrf.mxu2  ;;  %v767_v34 = vpop.f32.mrf.mxu0 }
  0xe4   : > { %v944_v32 = vadd.f32 %v943_v30, %v3820_v24  ;;  %v1032_v33 = vpop.f32.mrf.mxu3  ;;  %v768_v35 = vadd.f32 %v767_v34, %v3815_v15  ;;  %v856_v36 = vpop.f32.mrf.mxu1  ;;  %v3208_v30 = vld [vmem:[#allocation8 + $0x14] sm:$0xf]  ;;  %v2954_v34 = vld [vmem:[#allocation8 + $0x98] sm:$0xf0] }
  0xe6   : > { %v1033_v37 = vadd.f32 %v1032_v33, %v944_v32  ;;  %v857_v38 = vadd.f32 %v856_v36, %v768_v35  ;;  %v2893_v32 = vor.u32 %v3208_v30, %v2890_v31  ;;  %v3224_v33 = vld [vmem:[#allocation8 + $0x94] sm:$0xf] }
  0xe8   : > { %v1114_v44 = vmax.f32 %v857_v38, 0.0  ;;  %v1113_v62 = vmax.f32 %v1033_v37, 0.0  ;;  %v2957_v37 = vor.u32 %v3224_v33, %v2954_v34  ;;  %1590 = vmatpush.bf16.msrb.mxu2 %v2893_v32 }
  0xea   : > { %v3828_v50 = vpack.c.bf16 %v1114_v44, %v1112_v43  ;;  %1679 = vmatpush.bf16.msrb.mxu3 %v2957_v37 }
  0xeb   : > { %v945_v51 = vpop.f32.mrf.mxu2  ;;  %v770_v56 = vpop.f32.mrf.mxu0 }
  0xec   : > { %v946_v54 = vadd.f32 %v945_v51, %v3820_v24  ;;  %v1034_v55 = vpop.f32.mrf.mxu3  ;;  %v771_v58 = vadd.f32 %v770_v56, %v3815_v15  ;;  %v859_v59 = vpop.f32.mrf.mxu1  ;;  %v3225_v56 = vld [vmem:[#allocation8 + $0x94] sm:$0xf0] }
  0xee   : > { %v1035_v60 = vadd.f32 %v1034_v55, %v946_v54  ;;  %v860_v61 = vadd.f32 %v859_v59, %v771_v58  ;;  %809 = vmatmul.bf16.gmra.mxu0 %v2697_v52  ;;  %v2952_v55 = vld [vmem:[#allocation8 + $0x90] sm:$0xf]  ;;  %v2713_v58 = vor.u32 %v3165_v46, %v2712_v45 }
  0xef   : > { %898 = vmatmul.bf16.gmra.mxu1 %v2701_v57  ;;  %v2953_v59 = vor.u32 %v3225_v56, %v2952_v55  ;;  %v2728_v56 = vld [vmem:[%s3767_s10 + $0xd0] sm:$0xf] }
  0xf0   : > { %v1115_v63 = vmax.f32 %v1035_v60, 0.0  ;;  %987 = vmatmul.bf16.gmra.mxu2 %v2697_v52  ;;  %v1116_v11 = vmax.f32 %v860_v61, 0.0  ;;  %v2888_v52 = vld [vmem:[#allocation8 + $0x10] sm:$0xf] }
  0xf1   : > { %1076 = vmatmul.bf16.gmra.mxu3 %v2701_v57  ;;  %v2889_v54 = vor.u32 %v3209_v53, %v2888_v52  ;;  %1501 = vmatpush.bf16.msrb.mxu1 %v2953_v59  ;;  %v2730_v59 = vld [vmem:[%s3767_s10 + $0xd8] sm:$0xf0] }
  0xf2   : > { %v3832_v0 = vpack.c.bf16 %v1115_v63, %v1113_v62 }
  0xf3   : > { %v948_v1 = vpop.f32.mrf.mxu2  ;;  %v772_v4 = vpop.f32.mrf.mxu0  ;;  %1412 = vmatpush.bf16.msrb.mxu0 %v2889_v54 }
  0xf4   : > { %v949_v2 = vadd.f32 %v948_v1, %v3820_v24  ;;  %v1037_v3 = vpop.f32.mrf.mxu3  ;;  %v773_v5 = vadd.f32 %v772_v4, %v3815_v15  ;;  %v861_v6 = vpop.f32.mrf.mxu1  ;;  %v2717_v1 = vor.u32 %v3164_v47, %v2714_v48 }
  0xf6   : > { %v1038_v7 = vadd.f32 %v1037_v3, %v949_v2  ;;  %v862_v8 = vadd.f32 %v861_v6, %v773_v5 }
  0xf8   : > { %v1118_v12 = vmax.f32 %v862_v8, 0.0  ;;  %v1117_v28 = vmax.f32 %v1038_v7, 0.0 }
  0xfa   : > { %v3840_v18 = vpack.c.bf16 %v1118_v12, %v1116_v11 }
  0xfb   : > { %v950_v16 = vpop.f32.mrf.mxu2  ;;  %v775_v21 = vpop.f32.mrf.mxu0 }
  0xfc   : > { %v951_v19 = vadd.f32 %v950_v16, %v3820_v24  ;;  %v1039_v20 = vpop.f32.mrf.mxu3  ;;  %v776_v23 = vadd.f32 %v775_v21, %v3815_v15  ;;  %v864_v25 = vpop.f32.mrf.mxu1 }
  0xfe   : > { %v1040_v26 = vadd.f32 %v1039_v20, %v951_v19  ;;  %v865_v27 = vadd.f32 %v864_v25, %v776_v23  ;;  %814 = vmatmul.bf16.gmra.mxu0 %v2705_v17  ;;  %v2720_v19 = vld [vmem:[%s3767_s10 + $0xc0] sm:$0xf]  ;;  %v3167_v20 = vld [vmem:[%s3767_s10 + $0xc4] sm:$0xf0]  ;;  %v3166_v23 = vld [vmem:[%s3767_s10 + $0xc4] sm:$0xf] }
  0xff   : > { %903 = vmatmul.bf16.gmra.mxu1 %v2709_v22  ;;  %v2722_v25 = vld [vmem:[%s3767_s10 + $0xc8] sm:$0xf0] }
 0x100   : > { %v1119_v29 = vmax.f32 %v1040_v26, 0.0  ;;  %992 = vmatmul.bf16.gmra.mxu2 %v2705_v17  ;;  %v1120_v49 = vmax.f32 %v865_v27, 0.0  ;;  %v2721_v27 = vor.u32 %v3167_v20, %v2720_v19  ;;  %v2725_v32 = vor.u32 %v3166_v23, %v2722_v25 }
 0x101   : > { %1081 = vmatmul.bf16.gmra.mxu3 %v2709_v22 }
 0x102   : > { %v3844_v35 = vpack.c.bf16 %v1119_v29, %v1117_v28 }
 0x103   : > { %v953_v36 = vpop.f32.mrf.mxu2  ;;  %v777_v40 = vpop.f32.mrf.mxu0 }
 0x104   : > { %v954_v38 = vadd.f32 %v953_v36, %v3820_v24  ;;  %v1042_v39 = vpop.f32.mrf.mxu3  ;;  %v778_v41 = vadd.f32 %v777_v40, %v3815_v15  ;;  %v866_v42 = vpop.f32.mrf.mxu1  ;;  %v3206_v40 = vld [vmem:[#allocation8 + $0x4] sm:$0xf] }
 0x106   : > { %v1043_v43 = vadd.f32 %v1042_v39, %v954_v38  ;;  %v867_v44 = vadd.f32 %v866_v42, %v778_v41  ;;  %v2882_v41 = vld [vmem:[#allocation8 + $0x8] sm:$0xf0] }
 0x107   : > { %v2885_v42 = vor.u32 %v3206_v40, %v2882_v41 }
 0x108   : > { %v1122_v51 = vmax.f32 %v867_v44, 0.0  ;;  %v1121_v6 = vmax.f32 %v1043_v43, 0.0  ;;  %v3222_v43 = vld [vmem:[#allocation8 + $0x84] sm:$0xf]  ;;  %v2946_v44 = vld [vmem:[#allocation8 + $0x88] sm:$0xf0] }
 0x109   : > { %v2949_v47 = vor.u32 %v3222_v43, %v2946_v44  ;;  %1591 = vmatpush.bf16.msrb.mxu2 %v2885_v42 }
 0x10a   : > { %v3852_v60 = vpack.c.bf16 %v1122_v51, %v1120_v49 }
 0x10b   : > { %v955_v57 = vpop.f32.mrf.mxu2  ;;  %v780_v63 = vpop.f32.mrf.mxu0  ;;  %1680 = vmatpush.bf16.msrb.mxu3 %v2949_v47 }
 0x10c   : > { %v956_v61 = vadd.f32 %v955_v57, %v3820_v24  ;;  %v1044_v62 = vpop.f32.mrf.mxu3  ;;  %v781_v2 = vadd.f32 %v780_v63, %v3815_v15  ;;  %v869_v3 = vpop.f32.mrf.mxu1  ;;  %v3169_v57 = vld [vmem:[%s3767_s10 + $0xd4] sm:$0xf0]  ;;  %v2880_v63 = vld [vmem:[#allocation8] sm:$0xf] }
 0x10e   : > { %v1045_v4 = vadd.f32 %v1044_v62, %v956_v61  ;;  %v870_v5 = vadd.f32 %v869_v3, %v781_v2  ;;  %819 = vmatmul.bf16.gmra.mxu0 %v2713_v58  ;;  %v2944_v3 = vld [vmem:[#allocation8 + $0x80] sm:$0xf] }
 0x10f   : > { %908 = vmatmul.bf16.gmra.mxu1 %v2717_v1 }
 0x110   : > { %v1123_v7 = vmax.f32 %v1045_v4, 0.0  ;;  %997 = vmatmul.bf16.gmra.mxu2 %v2713_v58  ;;  %v1124_v21 = vmax.f32 %v870_v5, 0.0  ;;  %v3168_v58 = vld [vmem:[%s3767_s10 + $0xd4] sm:$0xf]  ;;  %v3223_v4 = vld [vmem:[#allocation8 + $0x84] sm:$0xf0] }
 0x111   : > { %1086 = vmatmul.bf16.gmra.mxu3 %v2717_v1  ;;  %v3207_v1 = vld [vmem:[#allocation8 + $0x4] sm:$0xf0] }
 0x112   : > { %v3856_v8 = vpack.c.bf16 %v1123_v7, %v1121_v6  ;;  %v2881_v2 = vor.u32 %v3207_v1, %v2880_v63  ;;  %v2729_v6 = vor.u32 %v3169_v57, %v2728_v56  ;;  %v2945_v7 = vor.u32 %v3223_v4, %v2944_v3  ;;  %v3066_v56 = vld [vmem:[#allocation10 + $0x78] sm:$0xf0] }
 0x113   : > { %v958_v9 = vpop.f32.mrf.mxu2  ;;  %v782_v12 = vpop.f32.mrf.mxu0 }
 0x114   : > { %v959_v10 = vadd.f32 %v958_v9, %v3820_v24  ;;  %v1047_v11 = vpop.f32.mrf.mxu3  ;;  %v783_v13 = vadd.f32 %v782_v12, %v3815_v15  ;;  %v871_v14 = vpop.f32.mrf.mxu1  ;;  %1413 = vmatpush.bf16.msrb.mxu0 %v2881_v2  ;;  %1502 = vmatpush.bf16.msrb.mxu1 %v2945_v7 }
 0x116   : > { %v1048_v16 = vadd.f32 %v1047_v11, %v959_v10  ;;  %v872_v17 = vadd.f32 %v871_v14, %v783_v13  ;;  %v2733_v13 = vor.u32 %v3168_v58, %v2730_v59  ;;  %v3268_v58 = vld [vmem:[#allocation10 + $0xf4] sm:$0xf]  ;;  %v3130_v59 = vld [vmem:[#allocation10 + $0xf8] sm:$0xf0] }
 0x117   : > { %v3133_v63 = vor.u32 %v3268_v58, %v3130_v59 }
 0x118   : > { %v1126_v22 = vmax.f32 %v872_v17, 0.0  ;;  %v1125_v38 = vmax.f32 %v1048_v16, 0.0 }
 0x119   : > { %2323 = vmatpush.bf16.msra.mxu3 %v3133_v63 }
 0x11a   : > { %v3864_v28 = vpack.c.bf16 %v1126_v22, %v1124_v21 }
 0x11b   : > { %v960_v26 = vpop.f32.mrf.mxu2  ;;  %v785_v31 = vpop.f32.mrf.mxu0 }
 0x11c   : > { %v961_v29 = vadd.f32 %v960_v26, %v3820_v24  ;;  %v1049_v30 = vpop.f32.mrf.mxu3  ;;  %v786_v33 = vadd.f32 %v785_v31, %v3815_v15  ;;  %v874_v34 = vpop.f32.mrf.mxu1 }
 0x11e   : > { %v1050_v36 = vadd.f32 %v1049_v30, %v961_v29  ;;  %v875_v37 = vadd.f32 %v874_v34, %v786_v33  ;;  %824 = vmatmul.bf16.gmra.mxu0 %v2721_v27  ;;  %v2736_v33 = vld [vmem:[%s3767_s10 + $0xe0] sm:$0xf]  ;;  %v3171_v34 = vld [vmem:[%s3767_s10 + $0xe4] sm:$0xf0] }
 0x11f   : > { %913 = vmatmul.bf16.gmra.mxu1 %v2725_v32  ;;  %v2737_v41 = vor.u32 %v3171_v34, %v2736_v33 }
 0x120   : > { %v1127_v39 = vmax.f32 %v1050_v36, 0.0  ;;  %1002 = vmatmul.bf16.gmra.mxu2 %v2721_v27  ;;  %v1128_v61 = vmax.f32 %v875_v37, 0.0 }
 0x121   : > { %1091 = vmatmul.bf16.gmra.mxu3 %v2725_v32 }
 0x122   : > { %v3868_v45 = vpack.c.bf16 %v1127_v39, %v1125_v38  ;;  %v3170_v38 = vld [vmem:[%s3767_s10 + $0xe4] sm:$0xf]  ;;  %v2738_v39 = vld [vmem:[%s3767_s10 + $0xe8] sm:$0xf0] }
 0x123   : > { %v963_v46 = vpop.f32.mrf.mxu2  ;;  %v787_v51 = vpop.f32.mrf.mxu0  ;;  %v2741_v47 = vor.u32 %v3170_v38, %v2738_v39 }
 0x124   : > { %v964_v48 = vadd.f32 %v963_v46, %v3820_v24  ;;  %v1052_v49 = vpop.f32.mrf.mxu3  ;;  %v788_v52 = vadd.f32 %v787_v51, %v3815_v15  ;;  %v876_v53 = vpop.f32.mrf.mxu1 }
 0x126   : > { %v1053_v54 = vadd.f32 %v1052_v49, %v964_v48  ;;  %v877_v55 = vadd.f32 %v876_v53, %v788_v52 }
 0x128   : > { %v1130_v62 = vmax.f32 %v877_v55, 0.0  ;;  %v1129_v20 = vmax.f32 %v1053_v54, 0.0  ;;  %v3252_v55 = vld [vmem:[#allocation10 + $0x74] sm:$0xf] }
 0x129   : > { %v3069_v57 = vor.u32 %v3252_v55, %v3066_v56 }
 0x12a   : > { %v3876_v9 = vpack.c.bf16 %v1130_v62, %v1128_v61 }
 0x12b   : > { %v965_v5 = vpop.f32.mrf.mxu2  ;;  %v790_v12 = vpop.f32.mrf.mxu0  ;;  %2234 = vmatpush.bf16.msra.mxu2 %v3069_v57 }
 0x12c   : > { %v966_v10 = vadd.f32 %v965_v5, %v3820_v24  ;;  %v1054_v11 = vpop.f32.mrf.mxu3  ;;  %v791_v14 = vadd.f32 %v790_v12, %v3815_v15  ;;  %v879_v16 = vpop.f32.mrf.mxu1  ;;  %v3172_v12 = vld [vmem:[%s3767_s10 + $0xf4] sm:$0xf] }
 0x12e   : > { %v1055_v17 = vadd.f32 %v1054_v11, %v966_v10  ;;  %v880_v19 = vadd.f32 %v879_v16, %v791_v14  ;;  %829 = vmatmul.bf16.gmra.mxu0 %v2729_v6  ;;  %v2744_v10 = vld [vmem:[%s3767_s10 + $0xf0] sm:$0xf]  ;;  %v3173_v11 = vld [vmem:[%s3767_s10 + $0xf4] sm:$0xf0] }
 0x12f   : > { %918 = vmatmul.bf16.gmra.mxu1 %v2733_v13 }
 0x130   : > { %v1131_v21 = vmax.f32 %v1055_v17, 0.0  ;;  %1007 = vmatmul.bf16.gmra.mxu2 %v2729_v6  ;;  %v1132_v36 = vmax.f32 %v880_v19, 0.0  ;;  %v3064_v17 = vld [vmem:[#allocation10 + $0x70] sm:$0xf]  ;;  %v3253_v19 = vld [vmem:[#allocation10 + $0x74] sm:$0xf0] }
 0x131   : > { %1096 = vmatmul.bf16.gmra.mxu3 %v2733_v13  ;;  %v2746_v13 = vld [vmem:[%s3767_s10 + $0xf8] sm:$0xf0]  ;;  %s3529_s10 = scalar_lea.hbm %s3528_s1, 512 }
 0x132   : > { %v3880_v22 = vpack.c.bf16 %v1131_v21, %v1129_v20  ;;  %v3065_v20 = vor.u32 %v3253_v19, %v3064_v17  ;;  %v3128_v21 = vld [vmem:[#allocation10 + $0xf0] sm:$0xf]  ;;  %v2749_v33 = vor.u32 %v3172_v12, %v2746_v13  ;;  %p3530_p1 = scmp.ne.s32.totalorder %s3528_s1, %s3529_s10  ;;  %p3535_p2 = scmp.lt.s32.totalorder %s3533_s19, %s3529_s10 }
 0x133   : > { %v968_v23 = vpop.f32.mrf.mxu2  ;;  %v792_v27 = vpop.f32.mrf.mxu0 }
 0x134   : > { %v969_v25 = vadd.f32 %v968_v23, %v3820_v24  ;;  %v1057_v26 = vpop.f32.mrf.mxu3  ;;  %v793_v29 = vadd.f32 %v792_v27, %v3815_v15  ;;  %v881_v30 = vpop.f32.mrf.mxu1  ;;  %v3269_v23 = vld [vmem:[#allocation10 + $0xf4] sm:$0xf0]  ;;  %2056 = vmatpush.bf16.msra.mxu0 %v3065_v20  ;;  %p3531_p4 = pnand %p3530_p1, %p3730_p3  ;;  %p3536_p9 = por %p3535_p2, %p3534_p11 }
 0x135   : > { %v3129_v27 = vor.u32 %v3269_v23, %v3128_v21 }
 0x136   : > { %v1058_v31 = vadd.f32 %v1057_v26, %v969_v25  ;;  %v882_v32 = vadd.f32 %v881_v30, %v793_v29  ;;  %v2745_v26 = vor.u32 %v3173_v11, %v2744_v10  ;;  %v3266_v10 = vld [vmem:[#allocation10 + $0xe4] sm:$0xf]  ;;  %v3122_v11 = vld [vmem:[#allocation10 + $0xe8] sm:$0xf0]  ;;  %p3532_p8 = pneg %p3531_p4 }
 0x137   : > { %2145 = vmatpush.bf16.msra.mxu1 %v3129_v27  ;;  %v3251_v27 = vld [vmem:[#allocation10 + $0x64] sm:$0xf0] }
 0x138   : > { %v1134_v37 = vmax.f32 %v882_v32, 0.0  ;;  %v1133_v53 = vmax.f32 %v1058_v31, 0.0  ;;  %p3537_p10 = pnand %p3536_p9, %p3532_p8 }
 0x13a   : > { %v3888_v42 = vpack.c.bf16 %v1134_v37, %v1132_v36 }
 0x13b   : > { %v970_v40 = vpop.f32.mrf.mxu2  ;;  %v795_v46 = vpop.f32.mrf.mxu0 }
 0x13c   : > { %v971_v43 = vadd.f32 %v970_v40, %v3820_v24  ;;  %v1059_v44 = vpop.f32.mrf.mxu3  ;;  %v796_v48 = vadd.f32 %v795_v46, %v3815_v15  ;;  %v884_v49 = vpop.f32.mrf.mxu1 }
 0x13e   : > { %v1060_v51 = vadd.f32 %v1059_v44, %v971_v43  ;;  %v885_v52 = vadd.f32 %v884_v49, %v796_v48  ;;  %834 = vmatmul.bf16.gmra.mxu0 %v2737_v41 }
 0x13f   : > { %923 = vmatmul.bf16.gmra.mxu1 %v2741_v47 }
 0x140   : > { %v1135_v54 = vmax.f32 %v1060_v51, 0.0  ;;  %1012 = vmatmul.bf16.gmra.mxu2 %v2737_v41  ;;  %v1136_v14 = vmax.f32 %v885_v52, 0.0 }
 0x141   : > { %1101 = vmatmul.bf16.gmra.mxu3 %v2741_v47 }
 0x142   : > { %v3892_v61 = vpack.c.bf16 %v1135_v54, %v1133_v53 }
 0x143   : > { %v973_v62 = vpop.f32.mrf.mxu2  ;;  %v797_v3 = vpop.f32.mrf.mxu0 }
 0x144   : > { %v974_v1 = vadd.f32 %v973_v62, %v3820_v24  ;;  %v1062_v2 = vpop.f32.mrf.mxu3  ;;  %v798_v4 = vadd.f32 %v797_v3, %v3815_v15  ;;  %v886_v5 = vpop.f32.mrf.mxu1 }
 0x146   : > { %v1063_v6 = vadd.f32 %v1062_v2, %v974_v1  ;;  %v887_v7 = vadd.f32 %v886_v5, %v798_v4  ;;  %v3250_v5 = vld [vmem:[#allocation10 + $0x64] sm:$0xf] }
 0x148   : > { %v1138_v16 = vmax.f32 %v887_v7, 0.0  ;;  %v1137_v39 = vmax.f32 %v1063_v6, 0.0  ;;  %v3058_v6 = vld [vmem:[#allocation10 + $0x68] sm:$0xf0] }
 0x149   : > { %v3061_v7 = vor.u32 %v3250_v5, %v3058_v6 }
 0x14a   : > { %v3900_v29 = vpack.c.bf16 %v1138_v16, %v1136_v14  ;;  %v3125_v14 = vor.u32 %v3266_v10, %v3122_v11 }
 0x14b   : > { %v975_v25 = vpop.f32.mrf.mxu2  ;;  %v800_v32 = vpop.f32.mrf.mxu0  ;;  %2235 = vmatpush.bf16.msra.mxu2 %v3061_v7 }
 0x14c   : > { %v976_v30 = vadd.f32 %v975_v25, %v3820_v24  ;;  %v1064_v31 = vpop.f32.mrf.mxu3  ;;  %v801_v34 = vadd.f32 %v800_v32, %v3815_v15  ;;  %v889_v36 = vpop.f32.mrf.mxu1  ;;  %2324 = vmatpush.bf16.msra.mxu3 %v3125_v14  ;;  %v3267_v32 = vld [vmem:[#allocation10 + $0xe4] sm:$0xf0]  ;;  %v3050_v14 = vld [vmem:[#allocation10 + $0x58] sm:$0xf0] }
 0x14e   : > { %v1065_v37 = vadd.f32 %v1064_v31, %v976_v30  ;;  %v890_v38 = vadd.f32 %v889_v36, %v801_v34  ;;  %839 = vmatmul.bf16.gmra.mxu0 %v2745_v26  ;;  %v3120_v31 = vld [vmem:[#allocation10 + $0xe0] sm:$0xf] }
 0x14f   : > { %928 = vmatmul.bf16.gmra.mxu1 %v2749_v33  ;;  %v3121_v34 = vor.u32 %v3267_v32, %v3120_v31  ;;  %v3048_v32 = vld [vmem:[#allocation10 + $0x50] sm:$0xf] }
 0x150   : > { %v1139_v40 = vmax.f32 %v1065_v37, 0.0  ;;  %1017 = vmatmul.bf16.gmra.mxu2 %v2745_v26  ;;  %v1140_v53 = vmax.f32 %v890_v38, 0.0  ;;  %v3056_v26 = vld [vmem:[#allocation10 + $0x60] sm:$0xf] }
 0x151   : > { %1106 = vmatmul.bf16.gmra.mxu3 %v2749_v33  ;;  %v3057_v30 = vor.u32 %v3251_v27, %v3056_v26  ;;  %2146 = vmatpush.bf16.msra.mxu1 %v3121_v34 }
 0x152   : > { %v3904_v41 = vpack.c.bf16 %v1139_v40, %v1137_v39 }
 0x153   : > { %v978_v43 = vpop.f32.mrf.mxu2  ;;  %v802_v47 = vpop.f32.mrf.mxu0  ;;  %2057 = vmatpush.bf16.msra.mxu0 %v3057_v30 }
 0x154   : > { %v979_v44 = vadd.f32 %v978_v43, %v3820_v24  ;;  %v1067_v46 = vpop.f32.mrf.mxu3  ;;  %v803_v48 = vadd.f32 %v802_v47, %v3815_v15  ;;  %v891_v49 = vpop.f32.mrf.mxu1 }
 0x156   : > { %v1068_v51 = vadd.f32 %v1067_v46, %v979_v44  ;;  %v892_v52 = vadd.f32 %v891_v49, %v803_v48 }
 0x158   : > { %v1142_v54 = vmax.f32 %v892_v52, 0.0  ;;  %v1141_v3 = vmax.f32 %v1068_v51, 0.0 }
 0x15a   : > { %v3908_v56 = vpack.c.bf16 %v1142_v54, %v1140_v53 }
 0x15b   : > { %v980_v55 = vpop.f32.mrf.mxu2  ;;  %v805_v59 = vpop.f32.mrf.mxu0 }
 0x15c   : > { %v981_v57 = vadd.f32 %v980_v55, %v3820_v24  ;;  %v1069_v58 = vpop.f32.mrf.mxu3  ;;  %v806_v62 = vadd.f32 %v805_v59, %v3815_v15  ;;  %v894_v63 = vpop.f32.mrf.mxu1 }
 0x15e   : > { %v1070_v1 = vadd.f32 %v1069_v58, %v981_v57  ;;  %v895_v2 = vadd.f32 %v894_v63, %v806_v62  ;;  %1414 = vmatmul.bf16.vlgmr.msrb.gmra.mxu0 %v3828_v50 }
 0x15f   : > { %1503 = vmatmul.bf16.vlgmr.msrb.gmra.mxu1 %v3832_v0 }
 0x160   : > { %v1143_v4 = vmax.f32 %v1070_v1, 0.0  ;;  %1592 = vmatmul.bf16.vlgmr.msrb.gmra.mxu2 %v3828_v50  ;;  %v1144_v23 = vmax.f32 %v895_v2, 0.0 }
 0x161   : > { %1681 = vmatmul.bf16.vlgmr.msrb.gmra.mxu3 %v3832_v0 }
 0x162   : > { %v3916_v12 = vpack.c.bf16 %v1143_v4, %v1141_v3 }
 0x163   : > { %v983_v13 = vpop.f32.mrf.mxu2  ;;  %v807_v19 = vpop.f32.mrf.mxu0 }
 0x164   : > { %v984_v16 = vadd.f32 %v983_v13, %v3820_v24  ;;  %v1072_v17 = vpop.f32.mrf.mxu3  ;;  %v808_v20 = vadd.f32 %v807_v19, %v3815_v15  ;;  %v896_v21 = vpop.f32.mrf.mxu1  ;;  %v3248_v13 = vld [vmem:[#allocation10 + $0x54] sm:$0xf]  ;;  %v3114_v19 = vld [vmem:[#allocation10 + $0xd8] sm:$0xf0] }
 0x166   : > { %v1073_v50 = vadd.f32 %v1072_v17, %v984_v16  ;;  %v897_v0 = vadd.f32 %v896_v21, %v808_v20  ;;  %v3053_v16 = vor.u32 %v3248_v13, %v3050_v14  ;;  %v3264_v17 = vld [vmem:[#allocation10 + $0xd4] sm:$0xf] }
 0x168   : > { %v1146_v25 = vmax.f32 %v897_v0, 0.0  ;;  %v1145_v47 = vmax.f32 %v1073_v50, 0.0  ;;  %v3117_v50 = vor.u32 %v3264_v17, %v3114_v19  ;;  %2236 = vmatpush.bf16.msra.mxu2 %v3053_v16 }
 0x16a   : > { %v3920_v36 = vpack.c.bf16 %v1146_v25, %v1144_v23  ;;  %2325 = vmatpush.bf16.msra.mxu3 %v3117_v50  ;;  %v3042_v50 = vld [vmem:[#allocation10 + $0x48] sm:$0xf0] }
 0x16b   : > { %v985_v33 = vpop.f32.mrf.mxu2  ;;  %v810_v39 = vpop.f32.mrf.mxu0 }
 0x16c   : > { %v986_v37 = vadd.f32 %v985_v33, %v3820_v24  ;;  %v1074_v38 = vpop.f32.mrf.mxu3  ;;  %v811_v40 = vadd.f32 %v810_v39, %v3815_v15  ;;  %v899_v43 = vpop.f32.mrf.mxu1  ;;  %v3249_v33 = vld [vmem:[#allocation10 + $0x54] sm:$0xf0] }
 0x16d   : > { %v3049_v34 = vor.u32 %v3249_v33, %v3048_v32 }
 0x16e   : > { %v1075_v44 = vadd.f32 %v1074_v38, %v986_v37  ;;  %v900_v46 = vadd.f32 %v899_v43, %v811_v40  ;;  %1419 = vmatmul.bf16.gmra.mxu0 %v3840_v18  ;;  %v3112_v37 = vld [vmem:[#allocation10 + $0xd0] sm:$0xf]  ;;  %v3265_v38 = vld [vmem:[#allocation10 + $0xd4] sm:$0xf0] }
 0x16f   : > { %1508 = vmatmul.bf16.gmra.mxu1 %v3844_v35  ;;  %v3113_v40 = vor.u32 %v3265_v38, %v3112_v37  ;;  %2058 = vmatpush.bf16.msra.mxu0 %v3049_v34  ;;  %v3040_v38 = vld [vmem:[#allocation10 + $0x40] sm:$0xf] }
 0x170   : > { %v1147_v48 = vmax.f32 %v1075_v44, 0.0  ;;  %1597 = vmatmul.bf16.gmra.mxu2 %v3840_v18  ;;  %v1148_v62 = vmax.f32 %v900_v46, 0.0 }
 0x171   : > { %1686 = vmatmul.bf16.gmra.mxu3 %v3844_v35  ;;  %2147 = vmatpush.bf16.msra.mxu1 %v3113_v40 }
 0x172   : > { %v3928_v49 = vpack.c.bf16 %v1147_v48, %v1145_v47 }
 0x173   : > { %v988_v51 = vpop.f32.mrf.mxu2  ;;  %v812_v54 = vpop.f32.mrf.mxu0 }
 0x174   : > { %v989_v52 = vadd.f32 %v988_v51, %v3820_v24  ;;  %v1077_v53 = vpop.f32.mrf.mxu3  ;;  %v813_v55 = vadd.f32 %v812_v54, %v3815_v15  ;;  %v901_v57 = vpop.f32.mrf.mxu1 }
 0x176   : > { %v1078_v58 = vadd.f32 %v1077_v53, %v989_v52  ;;  %v902_v59 = vadd.f32 %v901_v57, %v813_v55 }
 0x178   : > { %v1150_v63 = vmax.f32 %v902_v59, 0.0  ;;  %v1149_v10 = vmax.f32 %v1078_v58, 0.0 }
 0x17a   : > { %v3932_v2 = vpack.c.bf16 %v1150_v63, %v1148_v62 }
 0x17b   : > { %v990_v1 = vpop.f32.mrf.mxu2  ;;  %v815_v3 = vpop.f32.mrf.mxu0 }
 0x17c   : > { %v991_v18 = vadd.f32 %v990_v1, %v3820_v24  ;;  %v1079_v35 = vpop.f32.mrf.mxu3  ;;  %v816_v4 = vadd.f32 %v815_v3, %v3815_v15  ;;  %v904_v5 = vpop.f32.mrf.mxu1 }
 0x17e   : > { %v1080_v6 = vadd.f32 %v1079_v35, %v991_v18  ;;  %v905_v7 = vadd.f32 %v904_v5, %v816_v4  ;;  %1424 = vmatmul.bf16.gmra.mxu0 %v3852_v60 }
 0x17f   : > { %1513 = vmatmul.bf16.gmra.mxu1 %v3856_v8 }
 0x180   : > { %v1151_v11 = vmax.f32 %v1080_v6, 0.0  ;;  %1602 = vmatmul.bf16.gmra.mxu2 %v3852_v60  ;;  %v1152_v30 = vmax.f32 %v905_v7, 0.0 }
 0x181   : > { %1691 = vmatmul.bf16.gmra.mxu3 %v3856_v8 }
 0x182   : > { %v3940_v20 = vpack.c.bf16 %v1151_v11, %v1149_v10 }
 0x183   : > { %v993_v21 = vpop.f32.mrf.mxu2  ;;  %v817_v25 = vpop.f32.mrf.mxu0 }
 0x184   : > { %v994_v0 = vadd.f32 %v993_v21, %v3820_v24  ;;  %v1082_v23 = vpop.f32.mrf.mxu3  ;;  %v818_v26 = vadd.f32 %v817_v25, %v3815_v15  ;;  %v906_v27 = vpop.f32.mrf.mxu1  ;;  %v3246_v21 = vld [vmem:[#allocation10 + $0x44] sm:$0xf]  ;;  %v3106_v25 = vld [vmem:[#allocation10 + $0xc8] sm:$0xf0] }
 0x186   : > { %v1083_v60 = vadd.f32 %v1082_v23, %v994_v0  ;;  %v907_v8 = vadd.f32 %v906_v27, %v818_v26  ;;  %v3045_v0 = vor.u32 %v3246_v21, %v3042_v50  ;;  %v3262_v23 = vld [vmem:[#allocation10 + $0xc4] sm:$0xf] }
 0x188   : > { %v1154_v31 = vmax.f32 %v907_v8, 0.0  ;;  %v1153_v54 = vmax.f32 %v1083_v60, 0.0  ;;  %v3109_v60 = vor.u32 %v3262_v23, %v3106_v25  ;;  %2237 = vmatpush.bf16.msra.mxu2 %v3045_v0 }
 0x18a   : > { %v3944_v43 = vpack.c.bf16 %v1154_v31, %v1152_v30  ;;  %2326 = vmatpush.bf16.msra.mxu3 %v3109_v60  ;;  %v3034_v60 = vld [vmem:[#allocation10 + $0x38] sm:$0xf0] }
 0x18b   : > { %v995_v39 = vpop.f32.mrf.mxu2  ;;  %v820_v47 = vpop.f32.mrf.mxu0 }
 0x18c   : > { %v996_v44 = vadd.f32 %v995_v39, %v3820_v24  ;;  %v1084_v46 = vpop.f32.mrf.mxu3  ;;  %v821_v48 = vadd.f32 %v820_v47, %v3815_v15  ;;  %v909_v51 = vpop.f32.mrf.mxu1  ;;  %v3247_v39 = vld [vmem:[#allocation10 + $0x44] sm:$0xf0] }
 0x18d   : > { %v3041_v40 = vor.u32 %v3247_v39, %v3040_v38 }
 0x18e   : > { %v1085_v52 = vadd.f32 %v1084_v46, %v996_v44  ;;  %v910_v53 = vadd.f32 %v909_v51, %v821_v48  ;;  %1429 = vmatmul.bf16.gmra.mxu0 %v3864_v28  ;;  %v3104_v44 = vld [vmem:[#allocation10 + $0xc0] sm:$0xf]  ;;  %v3263_v46 = vld [vmem:[#allocation10 + $0xc4] sm:$0xf0] }
 0x18f   : > { %1518 = vmatmul.bf16.gmra.mxu1 %v3868_v45  ;;  %v3105_v48 = vor.u32 %v3263_v46, %v3104_v44  ;;  %2059 = vmatpush.bf16.msra.mxu0 %v3041_v40 }
 0x190   : > { %v1155_v55 = vmax.f32 %v1085_v52, 0.0  ;;  %1607 = vmatmul.bf16.gmra.mxu2 %v3864_v28  ;;  %v1156_v4 = vmax.f32 %v910_v53, 0.0 }
 0x191   : > { %1696 = vmatmul.bf16.gmra.mxu3 %v3868_v45  ;;  %2148 = vmatpush.bf16.msra.mxu1 %v3105_v48  ;;  %v3245_v48 = vld [vmem:[#allocation10 + $0x34] sm:$0xf0] }
 0x192   : > { %v3952_v57 = vpack.c.bf16 %v1155_v55, %v1153_v54 }
 0x193   : > { %v998_v58 = vpop.f32.mrf.mxu2  ;;  %v822_v63 = vpop.f32.mrf.mxu0 }
 0x194   : > { %v999_v59 = vadd.f32 %v998_v58, %v3820_v24  ;;  %v1087_v62 = vpop.f32.mrf.mxu3  ;;  %v823_v1 = vadd.f32 %v822_v63, %v3815_v15  ;;  %v911_v18 = vpop.f32.mrf.mxu1 }
 0x196   : > { %v1088_v35 = vadd.f32 %v1087_v62, %v999_v59  ;;  %v912_v3 = vadd.f32 %v911_v18, %v823_v1 }
 0x198   : > { %v1158_v5 = vmax.f32 %v912_v3, 0.0  ;;  %v1157_v17 = vmax.f32 %v1088_v35, 0.0 }
 0x19a   : > { %v3956_v7 = vpack.c.bf16 %v1158_v5, %v1156_v4 }
 0x19b   : > { %v1000_v6 = vpop.f32.mrf.mxu2  ;;  %v825_v10 = vpop.f32.mrf.mxu0 }
 0x19c   : > { %v1001_v28 = vadd.f32 %v1000_v6, %v3820_v24  ;;  %v1089_v45 = vpop.f32.mrf.mxu3  ;;  %v826_v11 = vadd.f32 %v825_v10, %v3815_v15  ;;  %v914_v13 = vpop.f32.mrf.mxu1 }
 0x19e   : > { %v1090_v14 = vadd.f32 %v1089_v45, %v1001_v28  ;;  %v915_v16 = vadd.f32 %v914_v13, %v826_v11  ;;  %1434 = vmatmul.bf16.gmra.mxu0 %v3876_v9 }
 0x19f   : > { %1523 = vmatmul.bf16.gmra.mxu1 %v3880_v22 }
 0x1a0   : > { %v1159_v19 = vmax.f32 %v1090_v14, 0.0  ;;  %1612 = vmatmul.bf16.gmra.mxu2 %v3876_v9  ;;  %v1160_v34 = vmax.f32 %v915_v16, 0.0 }
 0x1a1   : > { %1701 = vmatmul.bf16.gmra.mxu3 %v3880_v22 }
 0x1a2   : > { %v3964_v26 = vpack.c.bf16 %v1159_v19, %v1157_v17 }
 0x1a3   : > { %v1003_v27 = vpop.f32.mrf.mxu2  ;;  %v827_v31 = vpop.f32.mrf.mxu0 }
 0x1a4   : > { %v1004_v8 = vadd.f32 %v1003_v27, %v3820_v24  ;;  %v1092_v30 = vpop.f32.mrf.mxu3  ;;  %v828_v32 = vadd.f32 %v827_v31, %v3815_v15  ;;  %v916_v33 = vpop.f32.mrf.mxu1  ;;  %v3244_v27 = vld [vmem:[#allocation10 + $0x34] sm:$0xf]  ;;  %v3098_v31 = vld [vmem:[#allocation10 + $0xb8] sm:$0xf0] }
 0x1a6   : > { %v1093_v9 = vadd.f32 %v1092_v30, %v1004_v8  ;;  %v917_v22 = vadd.f32 %v916_v33, %v828_v32  ;;  %v3037_v8 = vor.u32 %v3244_v27, %v3034_v60  ;;  %v3260_v30 = vld [vmem:[#allocation10 + $0xb4] sm:$0xf] }
 0x1a8   : > { %v1162_v37 = vmax.f32 %v917_v22, 0.0  ;;  %v1161_v63 = vmax.f32 %v1093_v9, 0.0  ;;  %v3101_v9 = vor.u32 %v3260_v30, %v3098_v31  ;;  %2238 = vmatpush.bf16.msra.mxu2 %v3037_v8 }
 0x1aa   : > { %v3968_v51 = vpack.c.bf16 %v1162_v37, %v1160_v34  ;;  %2327 = vmatpush.bf16.msra.mxu3 %v3101_v9 }
 0x1ab   : > { %v1005_v47 = vpop.f32.mrf.mxu2  ;;  %v830_v54 = vpop.f32.mrf.mxu0 }
 0x1ac   : > { %v1006_v52 = vadd.f32 %v1005_v47, %v3820_v24  ;;  %v1094_v53 = vpop.f32.mrf.mxu3  ;;  %v831_v55 = vadd.f32 %v830_v54, %v3815_v15  ;;  %v919_v58 = vpop.f32.mrf.mxu1  ;;  %v3032_v47 = vld [vmem:[#allocation10 + $0x30] sm:$0xf] }
 0x1ae   : > { %v1095_v59 = vadd.f32 %v1094_v53, %v1006_v52  ;;  %v920_v62 = vadd.f32 %v919_v58, %v831_v55  ;;  %1439 = vmatmul.bf16.gmra.mxu0 %v3888_v42  ;;  %v3096_v52 = vld [vmem:[#allocation10 + $0xb0] sm:$0xf] }
 0x1af   : > { %1528 = vmatmul.bf16.gmra.mxu1 %v3892_v61 }
 0x1b0   : > { %v1163_v1 = vmax.f32 %v1095_v59, 0.0  ;;  %1617 = vmatmul.bf16.gmra.mxu2 %v3888_v42  ;;  %v1164_v11 = vmax.f32 %v920_v62, 0.0  ;;  %v3033_v59 = vor.u32 %v3245_v48, %v3032_v47  ;;  %v3261_v62 = vld [vmem:[#allocation10 + $0xb4] sm:$0xf0] }
 0x1b1   : > { %1706 = vmatmul.bf16.gmra.mxu3 %v3892_v61 }
 0x1b2   : > { %v3976_v18 = vpack.c.bf16 %v1163_v1, %v1161_v63  ;;  %2060 = vmatpush.bf16.msra.mxu0 %v3033_v59 }
 0x1b3   : > { %v1008_v35 = vpop.f32.mrf.mxu2  ;;  %v832_v5 = vpop.f32.mrf.mxu0 }
 0x1b4   : > { %v1009_v3 = vadd.f32 %v1008_v35, %v3820_v24  ;;  %v1097_v4 = vpop.f32.mrf.mxu3  ;;  %v833_v6 = vadd.f32 %v832_v5, %v3815_v15  ;;  %v921_v28 = vpop.f32.mrf.mxu1  ;;  %v3097_v35 = vor.u32 %v3261_v62, %v3096_v52  ;;  %v3088_v62 = vld [vmem:[#allocation10 + $0xa0] sm:$0xf] }
 0x1b6   : > { %v1098_v45 = vadd.f32 %v1097_v4, %v1009_v3  ;;  %v922_v10 = vadd.f32 %v921_v28, %v833_v6  ;;  %2149 = vmatpush.bf16.msra.mxu1 %v3097_v35 }
 0x1b8   : > { %v1166_v13 = vmax.f32 %v922_v10, 0.0  ;;  %v1165_v23 = vmax.f32 %v1098_v45, 0.0 }
 0x1ba   : > { %v3980_v16 = vpack.c.bf16 %v1166_v13, %v1164_v11 }
 0x1bb   : > { %v1010_v14 = vpop.f32.mrf.mxu2  ;;  %v835_v17 = vpop.f32.mrf.mxu0 }
 0x1bc   : > { %v1011_v42 = vadd.f32 %v1010_v14, %v3820_v24  ;;  %v1099_v61 = vpop.f32.mrf.mxu3  ;;  %v836_v19 = vadd.f32 %v835_v17, %v3815_v15  ;;  %v924_v21 = vpop.f32.mrf.mxu1  ;;  %v1240_v17 = vld [vmem:[%s4416_s4] sm:$0x3] }
 0x1bd   : > { %v4016_v9 = vperm.slane %v1240_v17, 1 }
 0x1be   : > { %v1100_v50 = vadd.f32 %v1099_v61, %v1011_v42  ;;  %v925_v0 = vadd.f32 %v924_v21, %v836_v19  ;;  %1444 = vmatmul.bf16.gmra.mxu0 %v3900_v29 }
 0x1bf   : > { %1533 = vmatmul.bf16.gmra.mxu1 %v3904_v41 }
 0x1c0   : > { %v1167_v25 = vmax.f32 %v1100_v50, 0.0  ;;  %1622 = vmatmul.bf16.gmra.mxu2 %v3900_v29  ;;  %v1168_v40 = vmax.f32 %v925_v0, 0.0  ;;  %v4007_v50 = vperm.slane %v1240_v17, 0 }
 0x1c1   : > { %1711 = vmatmul.bf16.gmra.mxu3 %v3904_v41 }
 0x1c2   : > { %v3988_v32 = vpack.c.bf16 %v1167_v25, %v1165_v23 }
 0x1c3   : > { %v1013_v33 = vpop.f32.mrf.mxu2  ;;  %v837_v37 = vpop.f32.mrf.mxu0 }
 0x1c4   : > { %v1014_v22 = vadd.f32 %v1013_v33, %v3820_v24  ;;  %v1102_v34 = vpop.f32.mrf.mxu3  ;;  %v838_v38 = vadd.f32 %v837_v37, %v3815_v15  ;;  %v926_v39 = vpop.f32.mrf.mxu1  ;;  %v3258_v37 = vld [vmem:[#allocation10 + $0xa4] sm:$0xf] }
 0x1c6   : > { %v1103_v29 = vadd.f32 %v1102_v34, %v1014_v22  ;;  %v927_v41 = vadd.f32 %v926_v39, %v838_v38  ;;  %v3026_v22 = vld [vmem:[#allocation10 + $0x28] sm:$0xf0] }
 0x1c7   : > { %v3090_v38 = vld [vmem:[#allocation10 + $0xa8] sm:$0xf0] }
 0x1c8   : > { %v1170_v44 = vmax.f32 %v927_v41, 0.0  ;;  %v1169_v5 = vmax.f32 %v1103_v29, 0.0  ;;  %v3093_v41 = vor.u32 %v3258_v37, %v3090_v38 }
 0x1ca   : > { %v3992_v53 = vpack.c.bf16 %v1170_v44, %v1168_v40  ;;  %2328 = vmatpush.bf16.msra.mxu3 %v3093_v41  ;;  %v3018_v41 = vld [vmem:[#allocation10 + $0x18] sm:$0xf0] }
 0x1cb   : > { %v1015_v46 = vpop.f32.mrf.mxu2  ;;  %v840_v58 = vpop.f32.mrf.mxu0 }
 0x1cc   : > { %v1016_v54 = vadd.f32 %v1015_v46, %v3820_v24  ;;  %v1104_v55 = vpop.f32.mrf.mxu3  ;;  %v841_v63 = vadd.f32 %v840_v58, %v3815_v15  ;;  %v929_v1 = vpop.f32.mrf.mxu1  ;;  %v3243_v58 = vld [vmem:[#allocation10 + $0x24] sm:$0xf0] }
 0x1ce   : > { %v1105_v3 = vadd.f32 %v1104_v55, %v1016_v54  ;;  %v930_v4 = vadd.f32 %v929_v1, %v841_v63  ;;  %1449 = vmatmul.bf16.gmra.mxu0 %v3908_v56  ;;  %v3024_v55 = vld [vmem:[#allocation10 + $0x20] sm:$0xf]  ;;  %v3259_v63 = vld [vmem:[#allocation10 + $0xa4] sm:$0xf0] }
 0x1cf   : > { %1538 = vmatmul.bf16.gmra.mxu1 %v3916_v12  ;;  %v3025_v59 = vor.u32 %v3243_v58, %v3024_v55 }
 0x1d0   : > { %v1171_v6 = vmax.f32 %v1105_v3, 0.0  ;;  %1627 = vmatmul.bf16.gmra.mxu2 %v3908_v56  ;;  %v1172_v21 = vmax.f32 %v930_v4, 0.0  ;;  %v3089_v3 = vor.u32 %v3259_v63, %v3088_v62  ;;  %v3016_v63 = vld [vmem:[#allocation10 + $0x10] sm:$0xf] }
 0x1d1   : > { %1716 = vmatmul.bf16.gmra.mxu3 %v3916_v12  ;;  %2061 = vmatpush.bf16.msra.mxu0 %v3025_v59 }
 0x1d2   : > { %v4000_v28 = vpack.c.bf16 %v1171_v6, %v1169_v5  ;;  %2150 = vmatpush.bf16.msra.mxu1 %v3089_v3 }
 0x1d3   : > { %v1018_v45 = vpop.f32.mrf.mxu2  ;;  %v842_v13 = vpop.f32.mrf.mxu0 }
 0x1d4   : > { %v1019_v10 = vadd.f32 %v1018_v45, %v3820_v24  ;;  %v1107_v11 = vpop.f32.mrf.mxu3  ;;  %v843_v14 = vadd.f32 %v842_v13, %v3815_v15  ;;  %v931_v42 = vpop.f32.mrf.mxu1 }
 0x1d6   : > { %v1108_v61 = vadd.f32 %v1107_v11, %v1019_v10  ;;  %v932_v19 = vadd.f32 %v931_v42, %v843_v14 }
 0x1d8   : > { %v1174_v56 = vmax.f32 %v932_v19, 0.0  ;;  %v1173_v31 = vmax.f32 %v1108_v61, 0.0 }
 0x1da   : > { %v4009_v0 = vpack.c.bf16 %v1174_v56, %v1172_v21 }
 0x1db   : > { %v1020_v12 = vpop.f32.mrf.mxu2  ;;  %v1415_v27 = vpop.f32.mrf.mxu0 }
 0x1dc   : > { %v1021_v23 = vadd.f32 %v1020_v12, %v3820_v24  ;;  %v1109_v25 = vpop.f32.mrf.mxu3  ;;  %v1416_v15 = vadd.f32 %v1415_v27, %v4007_v50  ;;  %v1504_v60 = vpop.f32.mrf.mxu1  ;;  %v3242_v24 = vld [vmem:[#allocation10 + $0x24] sm:$0xf] }
 0x1dd   : > { %v3029_v34 = vor.u32 %v3242_v24, %v3026_v22 }
 0x1de   : > { %v1110_v8 = vadd.f32 %v1109_v25, %v1021_v23  ;;  %v1505_v30 = vadd.f32 %v1504_v60, %v1416_v15  ;;  %1454 = vmatmul.bf16.gmra.mxu0 %v3920_v36 }
 0x1df   : > { %1543 = vmatmul.bf16.gmra.mxu1 %v3928_v49  ;;  %2239 = vmatpush.bf16.msra.mxu2 %v3029_v34 }
 0x1e0   : > { %v1175_v33 = vmax.f32 %v1110_v8, 0.0  ;;  %1632 = vmatmul.bf16.gmra.mxu2 %v3920_v36  ;;  %v1762_v52 = vmax.f32 %v1505_v30, 0.0 }
 0x1e1   : > { %1721 = vmatmul.bf16.gmra.mxu3 %v3928_v49 }
 0x1e2   : > { %v4019_v39 = vpack.c.bf16 %v1175_v33, %v1173_v31 }
 0x1e3   : > { %v1593_v29 = vpop.f32.mrf.mxu2  ;;  %v1417_v46 = vpop.f32.mrf.mxu0 }
 0x1e4   : > { %v1594_v40 = vadd.f32 %v1593_v29, %v4016_v9  ;;  %v1682_v44 = vpop.f32.mrf.mxu3  ;;  %v1418_v36 = vadd.f32 %v1417_v46, %v4007_v50  ;;  %v1506_v47 = vpop.f32.mrf.mxu1  ;;  %v3240_v29 = vld [vmem:[#allocation10 + $0x14] sm:$0xf]  ;;  %v3082_v46 = vld [vmem:[#allocation10 + $0x98] sm:$0xf0] }
 0x1e6   : > { %v1683_v48 = vadd.f32 %v1682_v44, %v1594_v40  ;;  %v1507_v49 = vadd.f32 %v1506_v47, %v1418_v36  ;;  %v3021_v40 = vor.u32 %v3240_v29, %v3018_v41  ;;  %v3256_v44 = vld [vmem:[#allocation10 + $0x94] sm:$0xf] }
 0x1e8   : > { %v1764_v54 = vmax.f32 %v1507_v49, 0.0  ;;  %v1763_v14 = vmax.f32 %v1683_v48, 0.0  ;;  %v3085_v48 = vor.u32 %v3256_v44, %v3082_v46  ;;  %2240 = vmatpush.bf16.msra.mxu2 %v3021_v40 }
 0x1ea   : > { %v4023_v1 = vpack.c.bf16 %v1764_v54, %v1762_v52  ;;  %2329 = vmatpush.bf16.msra.mxu3 %v3085_v48  ;;  %v3010_v48 = vld [vmem:[#allocation10 + $0x8] sm:$0xf0] }
 0x1eb   : > { %v1595_v35 = vpop.f32.mrf.mxu2  ;;  %v1420_v6 = vpop.f32.mrf.mxu0 }
 0x1ec   : > { %v1596_v4 = vadd.f32 %v1595_v35, %v4016_v9  ;;  %v1684_v5 = vpop.f32.mrf.mxu3  ;;  %v1421_v45 = vadd.f32 %v1420_v6, %v4007_v50  ;;  %v1509_v10 = vpop.f32.mrf.mxu1  ;;  %v3241_v35 = vld [vmem:[#allocation10 + $0x14] sm:$0xf0] }
 0x1ed   : > { %v3017_v3 = vor.u32 %v3241_v35, %v3016_v63 }
 0x1ee   : > { %v1685_v11 = vadd.f32 %v1684_v5, %v1596_v4  ;;  %v1510_v13 = vadd.f32 %v1509_v10, %v1421_v45  ;;  %1459 = vmatmul.bf16.gmra.mxu0 %v3932_v2  ;;  %v3080_v4 = vld [vmem:[#allocation10 + $0x90] sm:$0xf]  ;;  %v3257_v5 = vld [vmem:[#allocation10 + $0x94] sm:$0xf0] }
 0x1ef   : > { %1548 = vmatmul.bf16.gmra.mxu1 %v3940_v20  ;;  %v3081_v45 = vor.u32 %v3257_v5, %v3080_v4  ;;  %2062 = vmatpush.bf16.msra.mxu0 %v3017_v3  ;;  %v3008_v5 = vld [vmem:[#allocation10] sm:$0xf] }
 0x1f0   : > { %v1765_v42 = vmax.f32 %v1685_v11, 0.0  ;;  %1637 = vmatmul.bf16.gmra.mxu2 %v3932_v2  ;;  %v1766_v15 = vmax.f32 %v1510_v13, 0.0 }
 0x1f1   : > { %1726 = vmatmul.bf16.gmra.mxu3 %v3940_v20  ;;  %2151 = vmatpush.bf16.msra.mxu1 %v3081_v45 }
 0x1f2   : > { %v4031_v61 = vpack.c.bf16 %v1765_v42, %v1763_v14 }
 0x1f3   : > { %v1598_v17 = vpop.f32.mrf.mxu2  ;;  %v1422_v56 = vpop.f32.mrf.mxu0 }
 0x1f4   : > { %v1599_v19 = vadd.f32 %v1598_v17, %v4016_v9  ;;  %v1687_v21 = vpop.f32.mrf.mxu3  ;;  %v1423_v12 = vadd.f32 %v1422_v56, %v4007_v50  ;;  %v1511_v23 = vpop.f32.mrf.mxu1 }
 0x1f6   : > { %v1688_v25 = vadd.f32 %v1687_v21, %v1599_v19  ;;  %v1512_v27 = vadd.f32 %v1511_v23, %v1423_v12 }
 0x1f8   : > { %v1768_v60 = vmax.f32 %v1512_v27, 0.0  ;;  %v1767_v37 = vmax.f32 %v1688_v25, 0.0 }
 0x1fa   : > { %v4035_v30 = vpack.c.bf16 %v1768_v60, %v1766_v15 }
 0x1fb   : > { %v1600_v8 = vpop.f32.mrf.mxu2  ;;  %v1425_v31 = vpop.f32.mrf.mxu0 }
 0x1fc   : > { %v1601_v2 = vadd.f32 %v1600_v8, %v4016_v9  ;;  %v1689_v20 = vpop.f32.mrf.mxu3  ;;  %v1426_v33 = vadd.f32 %v1425_v31, %v4007_v50  ;;  %v1514_v24 = vpop.f32.mrf.mxu1 }
 0x1fe   : > { %v1690_v22 = vadd.f32 %v1689_v20, %v1601_v2  ;;  %v1515_v34 = vadd.f32 %v1514_v24, %v1426_v33  ;;  %1464 = vmatmul.bf16.gmra.mxu0 %v3944_v43 }
 0x1ff   : > { %1553 = vmatmul.bf16.gmra.mxu1 %v3952_v57 }
 0x200   : > { %v1769_v38 = vmax.f32 %v1690_v22, 0.0  ;;  %1642 = vmatmul.bf16.gmra.mxu2 %v3944_v43  ;;  %v1770_v59 = vmax.f32 %v1515_v34, 0.0 }
 0x201   : > { %1731 = vmatmul.bf16.gmra.mxu3 %v3952_v57 }
 0x202   : > { %v4043_v36 = vpack.c.bf16 %v1769_v38, %v1767_v37 }
 0x203   : > { %v1603_v47 = vpop.f32.mrf.mxu2  ;;  %v1427_v54 = vpop.f32.mrf.mxu0 }
 0x204   : > { %v1604_v49 = vadd.f32 %v1603_v47, %v4016_v9  ;;  %v1692_v52 = vpop.f32.mrf.mxu3  ;;  %v1428_v55 = vadd.f32 %v1427_v54, %v4007_v50  ;;  %v1516_v58 = vpop.f32.mrf.mxu1  ;;  %v3238_v47 = vld [vmem:[#allocation10 + $0x4] sm:$0xf]  ;;  %v3074_v54 = vld [vmem:[#allocation10 + $0x88] sm:$0xf0] }
 0x206   : > { %v1693_v43 = vadd.f32 %v1692_v52, %v1604_v49  ;;  %v1517_v57 = vadd.f32 %v1516_v58, %v1428_v55  ;;  %v3013_v49 = vor.u32 %v3238_v47, %v3010_v48  ;;  %v3254_v52 = vld [vmem:[#allocation10 + $0x84] sm:$0xf] }
 0x208   : > { %v1772_v62 = vmax.f32 %v1517_v57, 0.0  ;;  %v1771_v56 = vmax.f32 %v1693_v43, 0.0  ;;  %v3077_v43 = vor.u32 %v3254_v52, %v3074_v54  ;;  %2241 = vmatpush.bf16.msra.mxu2 %v3013_v49 }
 0x20a   : > { %v4047_v10 = vpack.c.bf16 %v1772_v62, %v1770_v59  ;;  %2330 = vmatpush.bf16.msra.mxu3 %v3077_v43 }
 0x20b   : > { %v1605_v6 = vpop.f32.mrf.mxu2  ;;  %v1430_v14 = vpop.f32.mrf.mxu0 }
 0x20c   : > { %v1606_v11 = vadd.f32 %v1605_v6, %v4016_v9  ;;  %v1694_v13 = vpop.f32.mrf.mxu3  ;;  %v1431_v42 = vadd.f32 %v1430_v14, %v4007_v50  ;;  %v1519_v17 = vpop.f32.mrf.mxu1  ;;  %v3239_v6 = vld [vmem:[#allocation10 + $0x4] sm:$0xf0] }
 0x20d   : > { %v3009_v45 = vor.u32 %v3239_v6, %v3008_v5 }
 0x20e   : > { %v1695_v19 = vadd.f32 %v1694_v13, %v1606_v11  ;;  %v1520_v21 = vadd.f32 %v1519_v17, %v1431_v42  ;;  %1469 = vmatmul.bf16.gmra.mxu0 %v3956_v7  ;;  %v3072_v11 = vld [vmem:[#allocation10 + $0x80] sm:$0xf]  ;;  %v3255_v13 = vld [vmem:[#allocation10 + $0x84] sm:$0xf0] }
 0x20f   : > { %1558 = vmatmul.bf16.gmra.mxu1 %v3964_v26  ;;  %v3073_v42 = vor.u32 %v3255_v13, %v3072_v11  ;;  %2063 = vmatpush.bf16.msra.mxu0 %v3009_v45 }
 0x210   : > { %v1773_v12 = vmax.f32 %v1695_v19, 0.0  ;;  %1647 = vmatmul.bf16.gmra.mxu2 %v3956_v7  ;;  %v1774_v33 = vmax.f32 %v1520_v21, 0.0 }
 0x211   : > { %1736 = vmatmul.bf16.gmra.mxu3 %v3964_v26  ;;  %2152 = vmatpush.bf16.msra.mxu1 %v3073_v42 }
 0x212   : > { %v4055_v23 = vpack.c.bf16 %v1773_v12, %v1771_v56 }
 0x213   : > { %v1608_v25 = vpop.f32.mrf.mxu2  ;;  %v1432_v60 = vpop.f32.mrf.mxu0 }
 0x214   : > { %v1609_v27 = vadd.f32 %v1608_v25, %v4016_v9  ;;  %v1697_v15 = vpop.f32.mrf.mxu3  ;;  %v1433_v8 = vadd.f32 %v1432_v60, %v4007_v50  ;;  %v1521_v2 = vpop.f32.mrf.mxu1 }
 0x216   : > { %v1698_v20 = vadd.f32 %v1697_v15, %v1609_v27  ;;  %v1522_v31 = vadd.f32 %v1521_v2, %v1433_v8 }
 0x218   : > { %v1776_v24 = vmax.f32 %v1522_v31, 0.0  ;;  %v1775_v44 = vmax.f32 %v1698_v20, 0.0 }
 0x21a   : > { %v4059_v34 = vpack.c.bf16 %v1776_v24, %v1774_v33 }
 0x21b   : > { %v1610_v22 = vpop.f32.mrf.mxu2  ;;  %v1435_v37 = vpop.f32.mrf.mxu0 }
 0x21c   : > { %v1611_v7 = vadd.f32 %v1610_v22, %v4016_v9  ;;  %v1699_v26 = vpop.f32.mrf.mxu3  ;;  %v1436_v38 = vadd.f32 %v1435_v37, %v4007_v50  ;;  %v1524_v29 = vpop.f32.mrf.mxu1 }
 0x21e   : > { %v1700_v41 = vadd.f32 %v1699_v26, %v1611_v7  ;;  %v1525_v40 = vadd.f32 %v1524_v29, %v1436_v38  ;;  %1474 = vmatmul.bf16.gmra.mxu0 %v3968_v51 }
 0x21f   : > { %1563 = vmatmul.bf16.gmra.mxu1 %v3976_v18 }
 0x220   : > { %v1777_v46 = vmax.f32 %v1700_v41, 0.0  ;;  %1652 = vmatmul.bf16.gmra.mxu2 %v3968_v51  ;;  %v1778_v3 = vmax.f32 %v1525_v40, 0.0 }
 0x221   : > { %1741 = vmatmul.bf16.gmra.mxu3 %v3976_v18 }
 0x222   : > { %v4067_v55 = vpack.c.bf16 %v1777_v46, %v1775_v44 }
 0x223   : > { %v1613_v58 = vpop.f32.mrf.mxu2  ;;  %v1437_v62 = vpop.f32.mrf.mxu0 }
 0x224   : > { %v1614_v57 = vadd.f32 %v1613_v58, %v4016_v9  ;;  %v1702_v59 = vpop.f32.mrf.mxu3  ;;  %v1438_v63 = vadd.f32 %v1437_v62, %v4007_v50  ;;  %v1526_v35 = vpop.f32.mrf.mxu1 }
 0x226   : > { %v1703_v51 = vadd.f32 %v1702_v59, %v1614_v57  ;;  %v1527_v18 = vadd.f32 %v1526_v35, %v1438_v63 }
 0x228   : > { %v1780_v4 = vmax.f32 %v1527_v18, 0.0  ;;  %v1779_v60 = vmax.f32 %v1703_v51, 0.0 }
 0x22a   : > { %v4071_v17 = vpack.c.bf16 %v1780_v4, %v1778_v3 }
 0x22b   : > { %v1615_v14 = vpop.f32.mrf.mxu2  ;;  %v1440_v56 = vpop.f32.mrf.mxu0 }
 0x22c   : > { %v1616_v19 = vadd.f32 %v1615_v14, %v4016_v9  ;;  %v1704_v21 = vpop.f32.mrf.mxu3  ;;  %v1441_v12 = vadd.f32 %v1440_v56, %v4007_v50  ;;  %v1529_v25 = vpop.f32.mrf.mxu1 }
 0x22e   : > { %v1705_v27 = vadd.f32 %v1704_v21, %v1616_v19  ;;  %v1530_v15 = vadd.f32 %v1529_v25, %v1441_v12  ;;  %1479 = vmatmul.bf16.gmra.mxu0 %v3980_v16 }
 0x22f   : > { %1568 = vmatmul.bf16.gmra.mxu1 %v3988_v32 }
 0x230   : > { %v1781_v8 = vmax.f32 %v1705_v27, 0.0  ;;  %1657 = vmatmul.bf16.gmra.mxu2 %v3980_v16  ;;  %v1782_v38 = vmax.f32 %v1530_v15, 0.0 }
 0x231   : > { %1746 = vmatmul.bf16.gmra.mxu3 %v3988_v32 }
 0x232   : > { %v4079_v2 = vpack.c.bf16 %v1781_v8, %v1779_v60 }
 0x233   : > { %v1618_v20 = vpop.f32.mrf.mxu2  ;;  %v1442_v24 = vpop.f32.mrf.mxu0 }
 0x234   : > { %v1619_v31 = vadd.f32 %v1618_v20, %v4016_v9  ;;  %v1707_v33 = vpop.f32.mrf.mxu3  ;;  %v1443_v22 = vadd.f32 %v1442_v24, %v4007_v50  ;;  %v1531_v7 = vpop.f32.mrf.mxu1 }
 0x236   : > { %v1708_v26 = vadd.f32 %v1707_v33, %v1619_v31  ;;  %v1532_v37 = vadd.f32 %v1531_v7, %v1443_v22 }
 0x238   : > { %v1784_v29 = vmax.f32 %v1532_v37, 0.0  ;;  %v1783_v52 = vmax.f32 %v1708_v26, 0.0 }
 0x23a   : > { %v4083_v40 = vpack.c.bf16 %v1784_v29, %v1782_v38 }
 0x23b   : > { %v1620_v41 = vpop.f32.mrf.mxu2  ;;  %v1445_v44 = vpop.f32.mrf.mxu0 }
 0x23c   : > { %v1621_v16 = vadd.f32 %v1620_v41, %v4016_v9  ;;  %v1709_v32 = vpop.f32.mrf.mxu3  ;;  %v1446_v46 = vadd.f32 %v1445_v44, %v4007_v50  ;;  %v1534_v47 = vpop.f32.mrf.mxu1 }
 0x23e   : > { %v1710_v48 = vadd.f32 %v1709_v32, %v1621_v16  ;;  %v1535_v49 = vadd.f32 %v1534_v47, %v1446_v46  ;;  %1484 = vmatmul.bf16.gmra.mxu0 %v3992_v53 }
 0x23f   : > { %1573 = vmatmul.bf16.gmra.mxu1 %v4000_v28 }
 0x240   : > { %v1785_v54 = vmax.f32 %v1710_v48, 0.0  ;;  %1662 = vmatmul.bf16.gmra.mxu2 %v3992_v53  ;;  %v1786_v3 = vmax.f32 %v1535_v49, 0.0 }
 0x241   : > { %1751 = vmatmul.bf16.gmra.mxu3 %v4000_v28 }
 0x242   : > { %v4091_v58 = vpack.c.bf16 %v1785_v54, %v1783_v52 }
 0x243   : > { %v1623_v43 = vpop.f32.mrf.mxu2  ;;  %v1447_v62 = vpop.f32.mrf.mxu0 }
 0x244   : > { %v1624_v57 = vadd.f32 %v1623_v43, %v4016_v9  ;;  %v1712_v59 = vpop.f32.mrf.mxu3  ;;  %v1448_v63 = vadd.f32 %v1447_v62, %v4007_v50  ;;  %v1536_v35 = vpop.f32.mrf.mxu1 }
 0x246   : > { %v1713_v51 = vadd.f32 %v1712_v59, %v1624_v57  ;;  %v1537_v18 = vadd.f32 %v1536_v35, %v1448_v63 }
 0x248   : > { %v1788_v4 = vmax.f32 %v1537_v18, 0.0  ;;  %v1787_v19 = vmax.f32 %v1713_v51, 0.0 }
 0x24a   : > { %v4095_v6 = vpack.c.bf16 %v1788_v4, %v1786_v3 }
 0x24b   : > { %v1625_v5 = vpop.f32.mrf.mxu2  ;;  %v1450_v45 = vpop.f32.mrf.mxu0 }
 0x24c   : > { %v1626_v53 = vadd.f32 %v1625_v5, %v4016_v9  ;;  %v1714_v28 = vpop.f32.mrf.mxu3  ;;  %v1451_v11 = vadd.f32 %v1450_v45, %v4007_v50  ;;  %v1539_v13 = vpop.f32.mrf.mxu1 }
 0x24e   : > { %v1715_v14 = vadd.f32 %v1714_v28, %v1626_v53  ;;  %v1540_v42 = vadd.f32 %v1539_v13, %v1451_v11  ;;  %1489 = vmatmul.bf16.gmra.mxu0 %v4009_v0 }
 0x24f   : > { %1578 = vmatmul.bf16.gmra.mxu1 %v4019_v39 }
 0x250   : > { %v1789_v21 = vmax.f32 %v1715_v14, 0.0  ;;  %1667 = vmatmul.bf16.gmra.mxu2 %v4009_v0  ;;  %v1790_v33 = vmax.f32 %v1540_v42, 0.0 }
 0x251   : > { %1756 = vmatmul.bf16.gmra.mxu3 %v4019_v39 }
 0x252   : > { %v4103_v56 = vpack.c.bf16 %v1789_v21, %v1787_v19 }
 0x253   : > { %v1628_v12 = vpop.f32.mrf.mxu2  ;;  %v1452_v15 = vpop.f32.mrf.mxu0 }
 0x254   : > { %v1629_v25 = vadd.f32 %v1628_v12, %v4016_v9  ;;  %v1717_v27 = vpop.f32.mrf.mxu3  ;;  %v1453_v60 = vadd.f32 %v1452_v15, %v4007_v50  ;;  %v1541_v8 = vpop.f32.mrf.mxu1 }
 0x256   : > { %v1718_v20 = vadd.f32 %v1717_v27, %v1629_v25  ;;  %v1542_v31 = vadd.f32 %v1541_v8, %v1453_v60 }
 0x258   : > { %v1792_v24 = vmax.f32 %v1542_v31, 0.0  ;;  %v1791_v16 = vmax.f32 %v1718_v20, 0.0 }
 0x25a   : > { %v4107_v7 = vpack.c.bf16 %v1792_v24, %v1790_v33 }
 0x25b   : > { %v1630_v22 = vpop.f32.mrf.mxu2  ;;  %v1455_v26 = vpop.f32.mrf.mxu0 }
 0x25c   : > { %v1631_v0 = vadd.f32 %v1630_v22, %v4016_v9  ;;  %v1719_v39 = vpop.f32.mrf.mxu3  ;;  %v1456_v37 = vadd.f32 %v1455_v26, %v4007_v50  ;;  %v1544_v38 = vpop.f32.mrf.mxu1 }
 0x25e   : > { %v1720_v29 = vadd.f32 %v1719_v39, %v1631_v0  ;;  %v1545_v41 = vadd.f32 %v1544_v38, %v1456_v37  ;;  %2064 = vmatmul.bf16.vlgmr.msra.gmra.mxu0 %v4023_v1 }
 0x25f   : > { %2153 = vmatmul.bf16.vlgmr.msra.gmra.mxu1 %v4031_v61 }
 0x260   : > { %v1793_v32 = vmax.f32 %v1720_v29, 0.0  ;;  %2242 = vmatmul.bf16.vlgmr.msra.gmra.mxu2 %v4023_v1  ;;  %v1794_v59 = vmax.f32 %v1545_v41, 0.0 }
 0x261   : > { %2331 = vmatmul.bf16.vlgmr.msra.gmra.mxu3 %v4031_v61 }
 0x262   : > { %v4115_v44 = vpack.c.bf16 %v1793_v32, %v1791_v16 }
 0x263   : > { %v1633_v46 = vpop.f32.mrf.mxu2  ;;  %v1457_v49 = vpop.f32.mrf.mxu0 }
 0x264   : > { %v1634_v47 = vadd.f32 %v1633_v46, %v4016_v9  ;;  %v1722_v48 = vpop.f32.mrf.mxu3  ;;  %v1458_v52 = vadd.f32 %v1457_v49, %v4007_v50  ;;  %v1546_v54 = vpop.f32.mrf.mxu1 }
 0x266   : > { %v1723_v43 = vadd.f32 %v1722_v48, %v1634_v47  ;;  %v1547_v57 = vadd.f32 %v1546_v54, %v1458_v52 }
 0x268   : > { %v1796_v62 = vmax.f32 %v1547_v57, 0.0  ;;  %v1795_v53 = vmax.f32 %v1723_v43, 0.0 }
 0x26a   : > { %v4119_v35 = vpack.c.bf16 %v1796_v62, %v1794_v59 }
 0x26b   : > { %v1635_v63 = vpop.f32.mrf.mxu2  ;;  %v1460_v51 = vpop.f32.mrf.mxu0 }
 0x26c   : > { %v1636_v1 = vadd.f32 %v1635_v63, %v4016_v9  ;;  %v1724_v61 = vpop.f32.mrf.mxu3  ;;  %v1461_v18 = vadd.f32 %v1460_v51, %v4007_v50  ;;  %v1549_v3 = vpop.f32.mrf.mxu1 }
 0x26e   : > { %v1725_v4 = vadd.f32 %v1724_v61, %v1636_v1  ;;  %v1550_v5 = vadd.f32 %v1549_v3, %v1461_v18  ;;  %2069 = vmatmul.bf16.gmra.mxu0 %v4035_v30 }
 0x26f   : > { %2158 = vmatmul.bf16.gmra.mxu1 %v4043_v36 }
 0x270   : > { %v1797_v28 = vmax.f32 %v1725_v4, 0.0  ;;  %2247 = vmatmul.bf16.gmra.mxu2 %v4035_v30  ;;  %v1798_v27 = vmax.f32 %v1550_v5, 0.0 }
 0x271   : > { %2336 = vmatmul.bf16.gmra.mxu3 %v4043_v36 }
 0x272   : > { %v4127_v45 = vpack.c.bf16 %v1797_v28, %v1795_v53 }
 0x273   : > { %v1638_v11 = vpop.f32.mrf.mxu2  ;;  %v1462_v42 = vpop.f32.mrf.mxu0 }
 0x274   : > { %v1639_v13 = vadd.f32 %v1638_v11, %v4016_v9  ;;  %v1727_v14 = vpop.f32.mrf.mxu3  ;;  %v1463_v19 = vadd.f32 %v1462_v42, %v4007_v50  ;;  %v1551_v21 = vpop.f32.mrf.mxu1 }
 0x276   : > { %v1728_v12 = vadd.f32 %v1727_v14, %v1639_v13  ;;  %v1552_v25 = vadd.f32 %v1551_v21, %v1463_v19 }
 0x278   : > { %v1800_v15 = vmax.f32 %v1552_v25, 0.0  ;;  %v1799_v0 = vmax.f32 %v1728_v12, 0.0 }
 0x27a   : > { %v4131_v8 = vpack.c.bf16 %v1800_v15, %v1798_v27 }
 0x27b   : > { %v1640_v60 = vpop.f32.mrf.mxu2  ;;  %v1465_v20 = vpop.f32.mrf.mxu0 }
 0x27c   : > { %v1641_v30 = vadd.f32 %v1640_v60, %v4016_v9  ;;  %v1729_v36 = vpop.f32.mrf.mxu3  ;;  %v1466_v31 = vadd.f32 %v1465_v20, %v4007_v50  ;;  %v1554_v33 = vpop.f32.mrf.mxu1 }
 0x27e   : > { %v1730_v24 = vadd.f32 %v1729_v36, %v1641_v30  ;;  %v1555_v22 = vadd.f32 %v1554_v33, %v1466_v31  ;;  %2074 = vmatmul.bf16.gmra.mxu0 %v4047_v10 }
 0x27f   : > { %2163 = vmatmul.bf16.gmra.mxu1 %v4055_v23 }
 0x280   : > { %v1801_v39 = vmax.f32 %v1730_v24, 0.0  ;;  %2252 = vmatmul.bf16.gmra.mxu2 %v4047_v10  ;;  %v1802_v48 = vmax.f32 %v1555_v22, 0.0 }
 0x281   : > { %2341 = vmatmul.bf16.gmra.mxu3 %v4055_v23 }
 0x282   : > { %v4139_v26 = vpack.c.bf16 %v1801_v39, %v1799_v0 }
 0x283   : > { %v1643_v37 = vpop.f32.mrf.mxu2  ;;  %v1467_v41 = vpop.f32.mrf.mxu0 }
 0x284   : > { %v1644_v38 = vadd.f32 %v1643_v37, %v4016_v9  ;;  %v1732_v29 = vpop.f32.mrf.mxu3  ;;  %v1468_v16 = vadd.f32 %v1467_v41, %v4007_v50  ;;  %v1556_v32 = vpop.f32.mrf.mxu1 }
 0x286   : > { %v1733_v46 = vadd.f32 %v1732_v29, %v1644_v38  ;;  %v1557_v47 = vadd.f32 %v1556_v32, %v1468_v16 }
 0x288   : > { %v1804_v49 = vmax.f32 %v1557_v47, 0.0  ;;  %v1803_v1 = vmax.f32 %v1733_v46, 0.0 }
 0x28a   : > { %v4143_v54 = vpack.c.bf16 %v1804_v49, %v1802_v48 }
 0x28b   : > { %v1645_v52 = vpop.f32.mrf.mxu2  ;;  %v1470_v43 = vpop.f32.mrf.mxu0 }
 0x28c   : > { %v1646_v10 = vadd.f32 %v1645_v52, %v4016_v9  ;;  %v1734_v23 = vpop.f32.mrf.mxu3  ;;  %v1471_v57 = vadd.f32 %v1470_v43, %v4007_v50  ;;  %v1559_v59 = vpop.f32.mrf.mxu1 }
 0x28e   : > { %v1735_v62 = vadd.f32 %v1734_v23, %v1646_v10  ;;  %v1560_v63 = vadd.f32 %v1559_v59, %v1471_v57  ;;  %2079 = vmatmul.bf16.gmra.mxu0 %v4059_v34 }
 0x28f   : > { %2168 = vmatmul.bf16.gmra.mxu1 %v4067_v55 }
 0x290   : > { %v1805_v61 = vmax.f32 %v1735_v62, 0.0  ;;  %2257 = vmatmul.bf16.gmra.mxu2 %v4059_v34  ;;  %v1806_v14 = vmax.f32 %v1560_v63, 0.0 }
 0x291   : > { %2346 = vmatmul.bf16.gmra.mxu3 %v4067_v55 }
 0x292   : > { %v4151_v51 = vpack.c.bf16 %v1805_v61, %v1803_v1 }
 0x293   : > { %v1648_v18 = vpop.f32.mrf.mxu2  ;;  %v1472_v5 = vpop.f32.mrf.mxu0 }
 0x294   : > { %v1649_v3 = vadd.f32 %v1648_v18, %v4016_v9  ;;  %v1737_v4 = vpop.f32.mrf.mxu3  ;;  %v1473_v53 = vadd.f32 %v1472_v5, %v4007_v50  ;;  %v1561_v28 = vpop.f32.mrf.mxu1 }
 0x296   : > { %v1738_v11 = vadd.f32 %v1737_v4, %v1649_v3  ;;  %v1562_v13 = vadd.f32 %v1561_v28, %v1473_v53 }
 0x298   : > { %v1808_v42 = vmax.f32 %v1562_v13, 0.0  ;;  %v1807_v30 = vmax.f32 %v1738_v11, 0.0 }
 0x29a   : > { %v4155_v21 = vpack.c.bf16 %v1808_v42, %v1806_v14 }
 0x29b   : > { %v1650_v19 = vpop.f32.mrf.mxu2  ;;  %v1475_v12 = vpop.f32.mrf.mxu0 }
 0x29c   : > { %v1651_v34 = vadd.f32 %v1650_v19, %v4016_v9  ;;  %v1739_v55 = vpop.f32.mrf.mxu3  ;;  %v1476_v25 = vadd.f32 %v1475_v12, %v4007_v50  ;;  %v1564_v27 = vpop.f32.mrf.mxu1 }
 0x29e   : > { %v1740_v15 = vadd.f32 %v1739_v55, %v1651_v34  ;;  %v1565_v60 = vadd.f32 %v1564_v27, %v1476_v25  ;;  %2084 = vmatmul.bf16.gmra.mxu0 %v4071_v17 }
 0x29f   : > { %2173 = vmatmul.bf16.gmra.mxu1 %v4079_v2 }
 0x2a0   : > { %v1809_v36 = vmax.f32 %v1740_v15, 0.0  ;;  %2262 = vmatmul.bf16.gmra.mxu2 %v4071_v17  ;;  %v1810_v29 = vmax.f32 %v1565_v60, 0.0 }
 0x2a1   : > { %2351 = vmatmul.bf16.gmra.mxu3 %v4079_v2 }
 0x2a2   : > { %v4163_v20 = vpack.c.bf16 %v1809_v36, %v1807_v30 }
 0x2a3   : > { %v1653_v31 = vpop.f32.mrf.mxu2  ;;  %v1477_v22 = vpop.f32.mrf.mxu0 }
 0x2a4   : > { %v1654_v33 = vadd.f32 %v1653_v31, %v4016_v9  ;;  %v1742_v24 = vpop.f32.mrf.mxu3  ;;  %v1478_v0 = vadd.f32 %v1477_v22, %v4007_v50  ;;  %v1566_v39 = vpop.f32.mrf.mxu1 }
 0x2a6   : > { %v1743_v37 = vadd.f32 %v1742_v24, %v1654_v33  ;;  %v1567_v38 = vadd.f32 %v1566_v39, %v1478_v0 }
 0x2a8   : > { %v1812_v41 = vmax.f32 %v1567_v38, 0.0  ;;  %v1811_v10 = vmax.f32 %v1743_v37, 0.0 }
 0x2aa   : > { %v4167_v32 = vpack.c.bf16 %v1812_v41, %v1810_v29 }
 0x2ab   : > { %v1655_v16 = vpop.f32.mrf.mxu2  ;;  %v1480_v46 = vpop.f32.mrf.mxu0 }
 0x2ac   : > { %v1656_v17 = vadd.f32 %v1655_v16, %v4016_v9  ;;  %v1744_v2 = vpop.f32.mrf.mxu3  ;;  %v1481_v47 = vadd.f32 %v1480_v46, %v4007_v50  ;;  %v1569_v48 = vpop.f32.mrf.mxu1 }
 0x2ae   : > { %v1745_v49 = vadd.f32 %v1744_v2, %v1656_v17  ;;  %v1570_v52 = vadd.f32 %v1569_v48, %v1481_v47  ;;  %2089 = vmatmul.bf16.gmra.mxu0 %v4083_v40 }
 0x2af   : > { %2178 = vmatmul.bf16.gmra.mxu1 %v4091_v58 }
 0x2b0   : > { %v1813_v23 = vmax.f32 %v1745_v49, 0.0  ;;  %2267 = vmatmul.bf16.gmra.mxu2 %v4083_v40  ;;  %v1814_v4 = vmax.f32 %v1570_v52, 0.0 }
 0x2b1   : > { %2356 = vmatmul.bf16.gmra.mxu3 %v4091_v58 }
 0x2b2   : > { %v4175_v43 = vpack.c.bf16 %v1813_v23, %v1811_v10 }
 0x2b3   : > { %v1658_v57 = vpop.f32.mrf.mxu2  ;;  %v1482_v63 = vpop.f32.mrf.mxu0 }
 0x2b4   : > { %v1659_v59 = vadd.f32 %v1658_v57, %v4016_v9  ;;  %v1747_v62 = vpop.f32.mrf.mxu3  ;;  %v1483_v1 = vadd.f32 %v1482_v63, %v4007_v50  ;;  %v1571_v61 = vpop.f32.mrf.mxu1 }
 0x2b6   : > { %v1748_v18 = vadd.f32 %v1747_v62, %v1659_v59  ;;  %v1572_v3 = vadd.f32 %v1571_v61, %v1483_v1  ;;  %v1890_v59 = vld [vmem:[%s4418_s6] sm:$0x3] }
 0x2b7   : > { %v4206_v1 = vperm.slane %v1890_v59, 0 }
 0x2b8   : > { %v1816_v5 = vmax.f32 %v1572_v3, 0.0  ;;  %v1815_v34 = vmax.f32 %v1748_v18, 0.0 }
 0x2ba   : > { %v4179_v28 = vpack.c.bf16 %v1816_v5, %v1814_v4 }
 0x2bb   : > { %v1660_v53 = vpop.f32.mrf.mxu2  ;;  %v1485_v11 = vpop.f32.mrf.mxu0 }
 0x2bc   : > { %v1661_v40 = vadd.f32 %v1660_v53, %v4016_v9  ;;  %v1749_v58 = vpop.f32.mrf.mxu3  ;;  %v1486_v13 = vadd.f32 %v1485_v11, %v4007_v50  ;;  %v1574_v14 = vpop.f32.mrf.mxu1 }
 0x2be   : > { %v1750_v42 = vadd.f32 %v1749_v58, %v1661_v40  ;;  %v1575_v19 = vadd.f32 %v1574_v14, %v1486_v13  ;;  %2094 = vmatmul.bf16.gmra.mxu0 %v4095_v6  ;;  %v4216_v13 = vperm.slane %v1890_v59, 1 }
 0x2bf   : > { %2183 = vmatmul.bf16.gmra.mxu1 %v4103_v56 }
 0x2c0   : > { %v1817_v55 = vmax.f32 %v1750_v42, 0.0  ;;  %2272 = vmatmul.bf16.gmra.mxu2 %v4095_v6  ;;  %v1818_v24 = vmax.f32 %v1575_v19, 0.0 }
 0x2c1   : > { %2361 = vmatmul.bf16.gmra.mxu3 %v4103_v56 }
 0x2c2   : > { %v4187_v12 = vpack.c.bf16 %v1817_v55, %v1815_v34 }
 0x2c3   : > { %v1663_v25 = vpop.f32.mrf.mxu2  ;;  %v1487_v60 = vpop.f32.mrf.mxu0 }
 0x2c4   : > { %v1664_v27 = vadd.f32 %v1663_v25, %v4016_v9  ;;  %v1752_v15 = vpop.f32.mrf.mxu3  ;;  %v1488_v30 = vadd.f32 %v1487_v60, %v4007_v50  ;;  %v1576_v36 = vpop.f32.mrf.mxu1 }
 0x2c6   : > { %v1753_v31 = vadd.f32 %v1752_v15, %v1664_v27  ;;  %v1577_v33 = vadd.f32 %v1576_v36, %v1488_v30 }
 0x2c8   : > { %v1820_v22 = vmax.f32 %v1577_v33, 0.0  ;;  %v1819_v17 = vmax.f32 %v1753_v31, 0.0 }
 0x2ca   : > { %v4191_v39 = vpack.c.bf16 %v1820_v22, %v1818_v24 }
 0x2cb   : > { %v1665_v0 = vpop.f32.mrf.mxu2  ;;  %v1490_v37 = vpop.f32.mrf.mxu0 }
 0x2cc   : > { %v1666_v6 = vadd.f32 %v1665_v0, %v4016_v9  ;;  %v1754_v56 = vpop.f32.mrf.mxu3  ;;  %v1491_v38 = vadd.f32 %v1490_v37, %v4007_v50  ;;  %v1579_v29 = vpop.f32.mrf.mxu1 }
 0x2ce   : > { %v1755_v41 = vadd.f32 %v1754_v56, %v1666_v6  ;;  %v1580_v16 = vadd.f32 %v1579_v29, %v1491_v38  ;;  %2099 = vmatmul.bf16.gmra.mxu0 %v4107_v7 }
 0x2cf   : > { %2188 = vmatmul.bf16.gmra.mxu1 %v4115_v44 }
 0x2d0   : > { %v1821_v2 = vmax.f32 %v1755_v41, 0.0  ;;  %2277 = vmatmul.bf16.gmra.mxu2 %v4107_v7  ;;  %v1822_v7 = vmax.f32 %v1580_v16, 0.0 }
 0x2d1   : > { %2366 = vmatmul.bf16.gmra.mxu3 %v4115_v44 }
 0x2d2   : > { %v4199_v46 = vpack.c.bf16 %v1821_v2, %v1819_v17 }
 0x2d3   : > { %v1668_v47 = vpop.f32.mrf.mxu2  ;;  %v1492_v52 = vpop.f32.mrf.mxu0 }
 0x2d4   : > { %v1669_v48 = vadd.f32 %v1668_v47, %v4016_v9  ;;  %v1757_v49 = vpop.f32.mrf.mxu3  ;;  %v1493_v10 = vadd.f32 %v1492_v52, %v4007_v50  ;;  %v1581_v23 = vpop.f32.mrf.mxu1 }
 0x2d6   : > { %v1758_v57 = vadd.f32 %v1757_v49, %v1669_v48  ;;  %v1582_v62 = vadd.f32 %v1581_v23, %v1493_v10 }
 0x2d8   : > { %v1824_v63 = vmax.f32 %v1582_v62, 0.0  ;;  %v1823_v58 = vmax.f32 %v1758_v57, 0.0 }
 0x2da   : > { %v4209_v61 = vpack.c.bf16 %v1824_v63, %v1822_v7 }
 0x2db   : > { %v1670_v44 = vpop.f32.mrf.mxu2  ;;  %v2065_v4 = vpop.f32.mrf.mxu0 }
 0x2dc   : > { %v1671_v18 = vadd.f32 %v1670_v44, %v4016_v9  ;;  %v1759_v3 = vpop.f32.mrf.mxu3  ;;  %v2066_v50 = vadd.f32 %v2065_v4, %v4206_v1  ;;  %v2154_v5 = vpop.f32.mrf.mxu1 }
 0x2de   : > { %v1760_v53 = vadd.f32 %v1759_v3, %v1671_v18  ;;  %v2155_v40 = vadd.f32 %v2154_v5, %v2066_v50  ;;  %2104 = vmatmul.bf16.gmra.mxu0 %v4119_v35 }
 0x2df   : > { %2193 = vmatmul.bf16.gmra.mxu1 %v4127_v45 }
 0x2e0   : > { %v1825_v11 = vmax.f32 %v1760_v53, 0.0  ;;  %2282 = vmatmul.bf16.gmra.mxu2 %v4119_v35  ;;  %2412 = vst [vmem:[%s4218_s22] sm:$0xff] %v2155_v40 }
 0x2e1   : > { %2371 = vmatmul.bf16.gmra.mxu3 %v4127_v45 }
 0x2e2   : > { %v4222_v9 = vpack.c.bf16 %v1825_v11, %v1823_v58 }
 0x2e3   : > { %v2243_v14 = vpop.f32.mrf.mxu2  ;;  %v2067_v34 = vpop.f32.mrf.mxu0 }
 0x2e4   : > { %v2244_v42 = vadd.f32 %v2243_v14, %v4216_v13  ;;  %v2332_v19 = vpop.f32.mrf.mxu3  ;;  %v2068_v35 = vadd.f32 %v2067_v34, %v4206_v1  ;;  %v2156_v55 = vpop.f32.mrf.mxu1 }
 0x2e6   : > { %v2333_v25 = vadd.f32 %v2332_v19, %v2244_v42  ;;  %v2157_v27 = vadd.f32 %v2156_v55, %v2068_v35 }
 0x2e8   : > { %2413 = vst [vmem:[%s4218_s22 + $0x8] sm:$0xff] %v2333_v25 }
 0x2e9   : > { %2414 = vst [vmem:[%s4218_s22 + $0x10] sm:$0xff] %v2157_v27 }
 0x2eb   : > { %v2245_v15 = vpop.f32.mrf.mxu2  ;;  %v2070_v30 = vpop.f32.mrf.mxu0 }
 0x2ec   : > { %v2246_v60 = vadd.f32 %v2245_v15, %v4216_v13  ;;  %v2334_v45 = vpop.f32.mrf.mxu3  ;;  %v2071_v36 = vadd.f32 %v2070_v30, %v4206_v1  ;;  %v2159_v31 = vpop.f32.mrf.mxu1 }
 0x2ee   : > { %v2335_v33 = vadd.f32 %v2334_v45, %v2246_v60  ;;  %v2160_v24 = vadd.f32 %v2159_v31, %v2071_v36  ;;  %2109 = vmatmul.bf16.gmra.mxu0 %v4131_v8 }
 0x2ef   : > { %2198 = vmatmul.bf16.gmra.mxu1 %v4139_v26 }
 0x2f0   : > { %2415 = vst [vmem:[%s4218_s22 + $0x18] sm:$0xff] %v2335_v33  ;;  %2287 = vmatmul.bf16.gmra.mxu2 %v4131_v8 }
 0x2f1   : > { %2416 = vst [vmem:[%s4218_s22 + $0x20] sm:$0xff] %v2160_v24  ;;  %2376 = vmatmul.bf16.gmra.mxu3 %v4139_v26 }
 0x2f3   : > { %v2248_v22 = vpop.f32.mrf.mxu2  ;;  %v2072_v56 = vpop.f32.mrf.mxu0 }
 0x2f4   : > { %v2249_v0 = vadd.f32 %v2248_v22, %v4216_v13  ;;  %v2337_v6 = vpop.f32.mrf.mxu3  ;;  %v2073_v37 = vadd.f32 %v2072_v56, %v4206_v1  ;;  %v2161_v38 = vpop.f32.mrf.mxu1 }
 0x2f6   : > { %v2338_v29 = vadd.f32 %v2337_v6, %v2249_v0  ;;  %v2162_v41 = vadd.f32 %v2161_v38, %v2073_v37 }
 0x2f8   : > { %2417 = vst [vmem:[%s4218_s22 + $0x28] sm:$0xff] %v2338_v29 }
 0x2f9   : > { %2418 = vst [vmem:[%s4218_s22 + $0x30] sm:$0xff] %v2162_v41 }
 0x2fb   : > { %v2250_v16 = vpop.f32.mrf.mxu2  ;;  %v2075_v2 = vpop.f32.mrf.mxu0 }
 0x2fc   : > { %v2251_v8 = vadd.f32 %v2250_v16, %v4216_v13  ;;  %v2339_v17 = vpop.f32.mrf.mxu3  ;;  %v2076_v26 = vadd.f32 %v2075_v2, %v4206_v1  ;;  %v2164_v47 = vpop.f32.mrf.mxu1 }
 0x2fe   : > { %v2340_v48 = vadd.f32 %v2339_v17, %v2251_v8  ;;  %v2165_v49 = vadd.f32 %v2164_v47, %v2076_v26  ;;  %2114 = vmatmul.bf16.gmra.mxu0 %v4143_v54 }
 0x2ff   : > { %2203 = vmatmul.bf16.gmra.mxu1 %v4151_v51 }
 0x300   : > { %2419 = vst [vmem:[%s4218_s22 + $0x38] sm:$0xff] %v2340_v48  ;;  %2292 = vmatmul.bf16.gmra.mxu2 %v4143_v54 }
 0x301   : > { %2420 = vst [vmem:[%s4218_s22 + $0x40] sm:$0xff] %v2165_v49  ;;  %2381 = vmatmul.bf16.gmra.mxu3 %v4151_v51 }
 0x303   : > { %v2253_v52 = vpop.f32.mrf.mxu2  ;;  %v2077_v57 = vpop.f32.mrf.mxu0 }
 0x304   : > { %v2254_v10 = vadd.f32 %v2253_v52, %v4216_v13  ;;  %v2342_v23 = vpop.f32.mrf.mxu3  ;;  %v2078_v59 = vadd.f32 %v2077_v57, %v4206_v1  ;;  %v2166_v62 = vpop.f32.mrf.mxu1 }
 0x306   : > { %v2343_v7 = vadd.f32 %v2342_v23, %v2254_v10  ;;  %v2167_v63 = vadd.f32 %v2166_v62, %v2078_v59 }
 0x308   : > { %2421 = vst [vmem:[%s4218_s22 + $0x48] sm:$0xff] %v2343_v7 }
 0x309   : > { %2422 = vst [vmem:[%s4218_s22 + $0x50] sm:$0xff] %v2167_v63 }
 0x30b   : > { %v2255_v44 = vpop.f32.mrf.mxu2  ;;  %v2080_v3 = vpop.f32.mrf.mxu0 }
 0x30c   : > { %v2256_v54 = vadd.f32 %v2255_v44, %v4216_v13  ;;  %v2344_v18 = vpop.f32.mrf.mxu3  ;;  %v2081_v51 = vadd.f32 %v2080_v3, %v4206_v1  ;;  %v2169_v4 = vpop.f32.mrf.mxu1 }
 0x30e   : > { %v2345_v50 = vadd.f32 %v2344_v18, %v2256_v54  ;;  %v2170_v5 = vadd.f32 %v2169_v4, %v2081_v51  ;;  %2119 = vmatmul.bf16.gmra.mxu0 %v4155_v21 }
 0x30f   : > { %2208 = vmatmul.bf16.gmra.mxu1 %v4163_v20 }
 0x310   : > { %2423 = vst [vmem:[%s4218_s22 + $0x58] sm:$0xff] %v2345_v50  ;;  %2297 = vmatmul.bf16.gmra.mxu2 %v4155_v21 }
 0x311   : > { %2424 = vst [vmem:[%s4218_s22 + $0x60] sm:$0xff] %v2170_v5  ;;  %2386 = vmatmul.bf16.gmra.mxu3 %v4163_v20 }
 0x313   : > { %v2258_v53 = vpop.f32.mrf.mxu2  ;;  %v2082_v11 = vpop.f32.mrf.mxu0 }
 0x314   : > { %v2259_v40 = vadd.f32 %v2258_v53, %v4216_v13  ;;  %v2347_v58 = vpop.f32.mrf.mxu3  ;;  %v2083_v14 = vadd.f32 %v2082_v11, %v4206_v1  ;;  %v2171_v42 = vpop.f32.mrf.mxu1 }
 0x316   : > { %v2348_v19 = vadd.f32 %v2347_v58, %v2259_v40  ;;  %v2172_v34 = vadd.f32 %v2171_v42, %v2083_v14 }
 0x318   : > { %2425 = vst [vmem:[%s4218_s22 + $0x68] sm:$0xff] %v2348_v19 }
 0x319   : > { %2426 = vst [vmem:[%s4218_s22 + $0x70] sm:$0xff] %v2172_v34 }
 0x31b   : > { %v2260_v35 = vpop.f32.mrf.mxu2  ;;  %v2085_v25 = vpop.f32.mrf.mxu0 }
 0x31c   : > { %v2261_v21 = vadd.f32 %v2260_v35, %v4216_v13  ;;  %v2349_v55 = vpop.f32.mrf.mxu3  ;;  %v2086_v20 = vadd.f32 %v2085_v25, %v4206_v1  ;;  %v2174_v27 = vpop.f32.mrf.mxu1 }
 0x31e   : > { %v2350_v15 = vadd.f32 %v2349_v55, %v2261_v21  ;;  %v2175_v60 = vadd.f32 %v2174_v27, %v2086_v20  ;;  %2124 = vmatmul.bf16.gmra.mxu0 %v4167_v32 }
 0x31f   : > { %2213 = vmatmul.bf16.gmra.mxu1 %v4175_v43 }
 0x320   : > { %2427 = vst [vmem:[%s4218_s22 + $0x78] sm:$0xff] %v2350_v15  ;;  %2302 = vmatmul.bf16.gmra.mxu2 %v4167_v32 }
 0x321   : > { %2428 = vst [vmem:[%s4218_s22 + $0x80] sm:$0xff] %v2175_v60  ;;  %2391 = vmatmul.bf16.gmra.mxu3 %v4175_v43 }
 0x323   : > { %v2263_v45 = vpop.f32.mrf.mxu2  ;;  %v2087_v31 = vpop.f32.mrf.mxu0 }
 0x324   : > { %v2264_v30 = vadd.f32 %v2263_v45, %v4216_v13  ;;  %v2352_v36 = vpop.f32.mrf.mxu3  ;;  %v2088_v33 = vadd.f32 %v2087_v31, %v4206_v1  ;;  %v2176_v24 = vpop.f32.mrf.mxu1 }
 0x326   : > { %v2353_v22 = vadd.f32 %v2352_v36, %v2264_v30  ;;  %v2177_v0 = vadd.f32 %v2176_v24, %v2088_v33 }
 0x328   : > { %2429 = vst [vmem:[%s4218_s22 + $0x88] sm:$0xff] %v2353_v22 }
 0x329   : > { %2430 = vst [vmem:[%s4218_s22 + $0x90] sm:$0xff] %v2177_v0 }
 0x32b   : > { %v2265_v6 = vpop.f32.mrf.mxu2  ;;  %v2090_v37 = vpop.f32.mrf.mxu0 }
 0x32c   : > { %v2266_v32 = vadd.f32 %v2265_v6, %v4216_v13  ;;  %v2354_v56 = vpop.f32.mrf.mxu3  ;;  %v2091_v43 = vadd.f32 %v2090_v37, %v4206_v1  ;;  %v2179_v38 = vpop.f32.mrf.mxu1 }
 0x32e   : > { %v2355_v29 = vadd.f32 %v2354_v56, %v2266_v32  ;;  %v2180_v41 = vadd.f32 %v2179_v38, %v2091_v43  ;;  %2129 = vmatmul.bf16.gmra.mxu0 %v4179_v28 }
 0x32f   : > { %2218 = vmatmul.bf16.gmra.mxu1 %v4187_v12 }
 0x330   : > { %2431 = vst [vmem:[%s4218_s22 + $0x98] sm:$0xff] %v2355_v29  ;;  %2307 = vmatmul.bf16.gmra.mxu2 %v4179_v28 }
 0x331   : > { %2432 = vst [vmem:[%s4218_s22 + $0xa0] sm:$0xff] %v2180_v41  ;;  %2396 = vmatmul.bf16.gmra.mxu3 %v4187_v12 }
 0x333   : > { %v2268_v16 = vpop.f32.mrf.mxu2  ;;  %v2092_v2 = vpop.f32.mrf.mxu0 }
 0x334   : > { %v2269_v8 = vadd.f32 %v2268_v16, %v4216_v13  ;;  %v2357_v17 = vpop.f32.mrf.mxu3  ;;  %v2093_v26 = vadd.f32 %v2092_v2, %v4206_v1  ;;  %v2181_v47 = vpop.f32.mrf.mxu1 }
 0x336   : > { %v2358_v48 = vadd.f32 %v2357_v17, %v2269_v8  ;;  %v2182_v49 = vadd.f32 %v2181_v47, %v2093_v26 }
 0x338   : > { %2433 = vst [vmem:[%s4218_s22 + $0xa8] sm:$0xff] %v2358_v48 }
 0x339   : > { %2434 = vst [vmem:[%s4218_s22 + $0xb0] sm:$0xff] %v2182_v49 }
 0x33b   : > { %v2270_v52 = vpop.f32.mrf.mxu2  ;;  %v2095_v23 = vpop.f32.mrf.mxu0 }
 0x33c   : > { %v2271_v28 = vadd.f32 %v2270_v52, %v4216_v13  ;;  %v2359_v10 = vpop.f32.mrf.mxu3  ;;  %v2096_v12 = vadd.f32 %v2095_v23, %v4206_v1  ;;  %v2184_v57 = vpop.f32.mrf.mxu1 }
 0x33e   : > { %v2360_v59 = vadd.f32 %v2359_v10, %v2271_v28  ;;  %v2185_v62 = vadd.f32 %v2184_v57, %v2096_v12  ;;  %2134 = vmatmul.bf16.gmra.mxu0 %v4191_v39 }
 0x33f   : > { %2223 = vmatmul.bf16.gmra.mxu1 %v4199_v46 }
 0x340   : > { %2435 = vst [vmem:[%s4218_s22 + $0xb8] sm:$0xff] %v2360_v59  ;;  %2312 = vmatmul.bf16.gmra.mxu2 %v4191_v39 }
 0x341   : > { %2436 = vst [vmem:[%s4218_s22 + $0xc0] sm:$0xff] %v2185_v62  ;;  %2401 = vmatmul.bf16.gmra.mxu3 %v4199_v46 }
 0x343   : > { %v2273_v7 = vpop.f32.mrf.mxu2  ;;  %v2097_v54 = vpop.f32.mrf.mxu0 }
 0x344   : > { %v2274_v63 = vadd.f32 %v2273_v7, %v4216_v13  ;;  %v2362_v44 = vpop.f32.mrf.mxu3  ;;  %v2098_v18 = vadd.f32 %v2097_v54, %v4206_v1  ;;  %v2186_v3 = vpop.f32.mrf.mxu1 }
 0x346   : > { %v2363_v51 = vadd.f32 %v2362_v44, %v2274_v63  ;;  %v2187_v4 = vadd.f32 %v2186_v3, %v2098_v18 }
 0x348   : > { %2437 = vst [vmem:[%s4218_s22 + $0xc8] sm:$0xff] %v2363_v51 }
 0x349   : > { %2438 = vst [vmem:[%s4218_s22 + $0xd0] sm:$0xff] %v2187_v4 }
 0x34b   : > { %v2275_v50 = vpop.f32.mrf.mxu2  ;;  %v2100_v53 = vpop.f32.mrf.mxu0 }
 0x34c   : > { %v2276_v39 = vadd.f32 %v2275_v50, %v4216_v13  ;;  %v2364_v5 = vpop.f32.mrf.mxu3  ;;  %v2101_v46 = vadd.f32 %v2100_v53, %v4206_v1  ;;  %v2189_v40 = vpop.f32.mrf.mxu1 }
 0x34e   : > { %v2365_v58 = vadd.f32 %v2364_v5, %v2276_v39  ;;  %v2190_v11 = vadd.f32 %v2189_v40, %v2101_v46  ;;  %2139 = vmatmul.bf16.gmra.mxu0 %v4209_v61 }
 0x34f   : > { %2228 = vmatmul.bf16.gmra.mxu1 %v4222_v9 }
 0x350   : > { %2439 = vst [vmem:[%s4218_s22 + $0xd8] sm:$0xff] %v2365_v58  ;;  %2317 = vmatmul.bf16.gmra.mxu2 %v4209_v61 }
 0x351   : > { %2440 = vst [vmem:[%s4218_s22 + $0xe0] sm:$0xff] %v2190_v11  ;;  %2406 = vmatmul.bf16.gmra.mxu3 %v4222_v9 }
 0x353   : > { %v2278_v14 = vpop.f32.mrf.mxu2  ;;  %v2102_v34 = vpop.f32.mrf.mxu0 }
 0x354   : > { %v2279_v42 = vadd.f32 %v2278_v14, %v4216_v13  ;;  %v2367_v19 = vpop.f32.mrf.mxu3  ;;  %v2103_v35 = vadd.f32 %v2102_v34, %v4206_v1  ;;  %v2191_v21 = vpop.f32.mrf.mxu1 }
 0x356   : > { %v2368_v55 = vadd.f32 %v2367_v19, %v2279_v42  ;;  %v2192_v25 = vadd.f32 %v2191_v21, %v2103_v35 }
 0x358   : > { %2441 = vst [vmem:[%s4218_s22 + $0xe8] sm:$0xff] %v2368_v55 }
 0x359   : > { %2442 = vst [vmem:[%s4218_s22 + $0xf0] sm:$0xff] %v2192_v25 }
 0x35b   : > { %v2280_v20 = vpop.f32.mrf.mxu2  ;;  %v2105_v9 = vpop.f32.mrf.mxu0 }
 0x35c   : > { %v2281_v61 = vadd.f32 %v2280_v20, %v4216_v13  ;;  %v2369_v27 = vpop.f32.mrf.mxu3  ;;  %v2106_v15 = vadd.f32 %v2105_v9, %v4206_v1  ;;  %v2194_v60 = vpop.f32.mrf.mxu1 }
 0x35e   : > { %v2370_v45 = vadd.f32 %v2369_v27, %v2281_v61  ;;  %v2195_v30 = vadd.f32 %v2194_v60, %v2106_v15 }
 0x360   : > { %2443 = vst [vmem:[%s4218_s22 + $0xf8] sm:$0xff] %v2370_v45 }
 0x361   : > { %2444 = vst [vmem:[%s4218_s22 + $0x100] sm:$0xff] %v2195_v30 }
 0x363   : > { %v2283_v36 = vpop.f32.mrf.mxu2  ;;  %v2107_v24 = vpop.f32.mrf.mxu0 }
 0x364   : > { %v2284_v31 = vadd.f32 %v2283_v36, %v4216_v13  ;;  %v2372_v33 = vpop.f32.mrf.mxu3  ;;  %v2108_v22 = vadd.f32 %v2107_v24, %v4206_v1  ;;  %v2196_v0 = vpop.f32.mrf.mxu1 }
 0x366   : > { %v2373_v6 = vadd.f32 %v2372_v33, %v2284_v31  ;;  %v2197_v32 = vadd.f32 %v2196_v0, %v2108_v22 }
 0x368   : > { %2445 = vst [vmem:[%s4218_s22 + $0x108] sm:$0xff] %v2373_v6 }
 0x369   : > { %2446 = vst [vmem:[%s4218_s22 + $0x110] sm:$0xff] %v2197_v32 }
 0x36b   : > { %v2285_v56 = vpop.f32.mrf.mxu2  ;;  %v2110_v38 = vpop.f32.mrf.mxu0 }
 0x36c   : > { %v2286_v37 = vadd.f32 %v2285_v56, %v4216_v13  ;;  %v2374_v43 = vpop.f32.mrf.mxu3  ;;  %v2111_v29 = vadd.f32 %v2110_v38, %v4206_v1  ;;  %v2199_v41 = vpop.f32.mrf.mxu1 }
 0x36e   : > { %v2375_v16 = vadd.f32 %v2374_v43, %v2286_v37  ;;  %v2200_v8 = vadd.f32 %v2199_v41, %v2111_v29 }
 0x370   : > { %2447 = vst [vmem:[%s4218_s22 + $0x118] sm:$0xff] %v2375_v16 }
 0x371   : > { %2448 = vst [vmem:[%s4218_s22 + $0x120] sm:$0xff] %v2200_v8 }
 0x373   : > { %v2288_v17 = vpop.f32.mrf.mxu2  ;;  %v2112_v47 = vpop.f32.mrf.mxu0 }
 0x374   : > { %v2289_v2 = vadd.f32 %v2288_v17, %v4216_v13  ;;  %v2377_v26 = vpop.f32.mrf.mxu3  ;;  %v2113_v48 = vadd.f32 %v2112_v47, %v4206_v1  ;;  %v2201_v49 = vpop.f32.mrf.mxu1 }
 0x376   : > { %v2378_v52 = vadd.f32 %v2377_v26, %v2289_v2  ;;  %v2202_v28 = vadd.f32 %v2201_v49, %v2113_v48 }
 0x378   : > { %2449 = vst [vmem:[%s4218_s22 + $0x128] sm:$0xff] %v2378_v52 }
 0x379   : > { %2450 = vst [vmem:[%s4218_s22 + $0x130] sm:$0xff] %v2202_v28 }
 0x37b   : > { %v2290_v10 = vpop.f32.mrf.mxu2  ;;  %v2115_v57 = vpop.f32.mrf.mxu0 }
 0x37c   : > { %v2291_v23 = vadd.f32 %v2290_v10, %v4216_v13  ;;  %v2379_v12 = vpop.f32.mrf.mxu3  ;;  %v2116_v59 = vadd.f32 %v2115_v57, %v4206_v1  ;;  %v2204_v62 = vpop.f32.mrf.mxu1 }
 0x37e   : > { %v2380_v7 = vadd.f32 %v2379_v12, %v2291_v23  ;;  %v2205_v63 = vadd.f32 %v2204_v62, %v2116_v59 }
 0x380   : > { %2451 = vst [vmem:[%s4218_s22 + $0x138] sm:$0xff] %v2380_v7 }
 0x381   : > { %2452 = vst [vmem:[%s4218_s22 + $0x140] sm:$0xff] %v2205_v63 }
 0x383   : > { %v2293_v44 = vpop.f32.mrf.mxu2  ;;  %v2117_v3 = vpop.f32.mrf.mxu0 }
 0x384   : > { %v2294_v54 = vadd.f32 %v2293_v44, %v4216_v13  ;;  %v2382_v18 = vpop.f32.mrf.mxu3  ;;  %v2118_v51 = vadd.f32 %v2117_v3, %v4206_v1  ;;  %v2206_v4 = vpop.f32.mrf.mxu1 }
 0x386   : > { %v2383_v50 = vadd.f32 %v2382_v18, %v2294_v54  ;;  %v2207_v39 = vadd.f32 %v2206_v4, %v2118_v51 }
 0x388   : > { %2453 = vst [vmem:[%s4218_s22 + $0x148] sm:$0xff] %v2383_v50 }
 0x389   : > { %2454 = vst [vmem:[%s4218_s22 + $0x150] sm:$0xff] %v2207_v39 }
 0x38b   : > { %v2295_v5 = vpop.f32.mrf.mxu2  ;;  %v2120_v40 = vpop.f32.mrf.mxu0 }
 0x38c   : > { %v2296_v53 = vadd.f32 %v2295_v5, %v4216_v13  ;;  %v2384_v46 = vpop.f32.mrf.mxu3  ;;  %v2121_v58 = vadd.f32 %v2120_v40, %v4206_v1  ;;  %v2209_v11 = vpop.f32.mrf.mxu1 }
 0x38e   : > { %v2385_v14 = vadd.f32 %v2384_v46, %v2296_v53  ;;  %v2210_v42 = vadd.f32 %v2209_v11, %v2121_v58 }
 0x390   : > { %2455 = vst [vmem:[%s4218_s22 + $0x158] sm:$0xff] %v2385_v14 }
 0x391   : > { %2456 = vst [vmem:[%s4218_s22 + $0x160] sm:$0xff] %v2210_v42 }
 0x393   : > { %v2298_v19 = vpop.f32.mrf.mxu2  ;;  %v2122_v21 = vpop.f32.mrf.mxu0 }
 0x394   : > { %v2299_v34 = vadd.f32 %v2298_v19, %v4216_v13  ;;  %v2387_v35 = vpop.f32.mrf.mxu3  ;;  %v2123_v55 = vadd.f32 %v2122_v21, %v4206_v1  ;;  %v2211_v25 = vpop.f32.mrf.mxu1 }
 0x396   : > { %v2388_v20 = vadd.f32 %v2387_v35, %v2299_v34  ;;  %v2212_v61 = vadd.f32 %v2211_v25, %v2123_v55 }
 0x398   : > { %2457 = vst [vmem:[%s4218_s22 + $0x168] sm:$0xff] %v2388_v20 }
 0x399   : > { %2458 = vst [vmem:[%s4218_s22 + $0x170] sm:$0xff] %v2212_v61 }
 0x39b   : > { %v2300_v27 = vpop.f32.mrf.mxu2  ;;  %v2125_v60 = vpop.f32.mrf.mxu0 }
 0x39c   : > { %v2301_v9 = vadd.f32 %v2300_v27, %v4216_v13  ;;  %v2389_v15 = vpop.f32.mrf.mxu3  ;;  %v2126_v45 = vadd.f32 %v2125_v60, %v4206_v1  ;;  %v2214_v30 = vpop.f32.mrf.mxu1 }
 0x39e   : > { %v2390_v36 = vadd.f32 %v2389_v15, %v2301_v9  ;;  %v2215_v31 = vadd.f32 %v2214_v30, %v2126_v45 }
 0x3a0   : > { %2459 = vst [vmem:[%s4218_s22 + $0x178] sm:$0xff] %v2390_v36 }
 0x3a1   : > { %2460 = vst [vmem:[%s4218_s22 + $0x180] sm:$0xff] %v2215_v31 }
 0x3a3   : > { %v2303_v33 = vpop.f32.mrf.mxu2  ;;  %v2127_v0 = vpop.f32.mrf.mxu0 }
 0x3a4   : > { %v2304_v24 = vadd.f32 %v2303_v33, %v4216_v13  ;;  %v2392_v22 = vpop.f32.mrf.mxu3  ;;  %v2128_v6 = vadd.f32 %v2127_v0, %v4206_v1  ;;  %v2216_v32 = vpop.f32.mrf.mxu1 }
 0x3a6   : > { %v2393_v56 = vadd.f32 %v2392_v22, %v2304_v24  ;;  %v2217_v37 = vadd.f32 %v2216_v32, %v2128_v6 }
 0x3a8   : > { %2461 = vst [vmem:[%s4218_s22 + $0x188] sm:$0xff] %v2393_v56 }
 0x3a9   : > { %2462 = vst [vmem:[%s4218_s22 + $0x190] sm:$0xff] %v2217_v37 }
 0x3ab   : > { %v2305_v43 = vpop.f32.mrf.mxu2  ;;  %v2130_v41 = vpop.f32.mrf.mxu0 }
 0x3ac   : > { %v2306_v38 = vadd.f32 %v2305_v43, %v4216_v13  ;;  %v2394_v29 = vpop.f32.mrf.mxu3  ;;  %v2131_v16 = vadd.f32 %v2130_v41, %v4206_v1  ;;  %v2219_v8 = vpop.f32.mrf.mxu1 }
 0x3ae   : > { %v2395_v17 = vadd.f32 %v2394_v29, %v2306_v38  ;;  %v2220_v2 = vadd.f32 %v2219_v8, %v2131_v16 }
 0x3b0   : > { %2463 = vst [vmem:[%s4218_s22 + $0x198] sm:$0xff] %v2395_v17 }
 0x3b1   : > { %2464 = vst [vmem:[%s4218_s22 + $0x1a0] sm:$0xff] %v2220_v2 }
 0x3b3   : > { %v2308_v26 = vpop.f32.mrf.mxu2  ;;  %v2132_v49 = vpop.f32.mrf.mxu0 }
 0x3b4   : > { %v2309_v47 = vadd.f32 %v2308_v26, %v4216_v13  ;;  %v2397_v48 = vpop.f32.mrf.mxu3  ;;  %v2133_v52 = vadd.f32 %v2132_v49, %v4206_v1  ;;  %v2221_v28 = vpop.f32.mrf.mxu1 }
 0x3b6   : > { %v2398_v10 = vadd.f32 %v2397_v48, %v2309_v47  ;;  %v2222_v23 = vadd.f32 %v2221_v28, %v2133_v52 }
 0x3b8   : > { %2465 = vst [vmem:[%s4218_s22 + $0x1a8] sm:$0xff] %v2398_v10 }
 0x3b9   : > { %2466 = vst [vmem:[%s4218_s22 + $0x1b0] sm:$0xff] %v2222_v23 }
 0x3bb   : > { %v2310_v12 = vpop.f32.mrf.mxu2  ;;  %v2135_v62 = vpop.f32.mrf.mxu0 }
 0x3bc   : > { %v2311_v57 = vadd.f32 %v2310_v12, %v4216_v13  ;;  %v2399_v59 = vpop.f32.mrf.mxu3  ;;  %v2136_v7 = vadd.f32 %v2135_v62, %v4206_v1  ;;  %v2224_v63 = vpop.f32.mrf.mxu1 }
 0x3be   : > { %v2400_v44 = vadd.f32 %v2399_v59, %v2311_v57  ;;  %v2225_v54 = vadd.f32 %v2224_v63, %v2136_v7 }
 0x3c0   : > { %2467 = vst [vmem:[%s4218_s22 + $0x1b8] sm:$0xff] %v2400_v44 }
 0x3c1   : > { %2468 = vst [vmem:[%s4218_s22 + $0x1c0] sm:$0xff] %v2225_v54 }
 0x3c3   : > { %v2313_v18 = vpop.f32.mrf.mxu2  ;;  %v2137_v4 = vpop.f32.mrf.mxu0 }
 0x3c4   : > { %v2314_v3 = vadd.f32 %v2313_v18, %v4216_v13  ;;  %v2402_v51 = vpop.f32.mrf.mxu3  ;;  %v2138_v50 = vadd.f32 %v2137_v4, %v4206_v1  ;;  %v2226_v39 = vpop.f32.mrf.mxu1 }
 0x3c6   : > { %v2403_v5 = vadd.f32 %v2402_v51, %v2314_v3  ;;  %v2227_v53 = vadd.f32 %v2226_v39, %v2138_v50 }
 0x3c8   : > { %2469 = vst [vmem:[%s4218_s22 + $0x1c8] sm:$0xff] %v2403_v5 }
 0x3c9   : > { %2470 = vst [vmem:[%s4218_s22 + $0x1d0] sm:$0xff] %v2227_v53 }
 0x3cb   : > { %v2315_v46 = vpop.f32.mrf.mxu2  ;;  %v2140_v11 = vpop.f32.mrf.mxu0 }
 0x3cc   : > { %v2316_v40 = vadd.f32 %v2315_v46, %v4216_v13  ;;  %v2404_v58 = vpop.f32.mrf.mxu3  ;;  %v2141_v14 = vadd.f32 %v2140_v11, %v4206_v1  ;;  %v2229_v42 = vpop.f32.mrf.mxu1 }
 0x3ce   : > { %v2405_v19 = vadd.f32 %v2404_v58, %v2316_v40  ;;  %v2230_v34 = vadd.f32 %v2229_v42, %v2141_v14 }
 0x3d0   : > { %2471 = vst [vmem:[%s4218_s22 + $0x1d8] sm:$0xff] %v2405_v19 }
 0x3d1   : > { %2472 = vst [vmem:[%s4218_s22 + $0x1e0] sm:$0xff] %v2230_v34 }
 0x3d3   : > { %v2318_v35 = vpop.f32.mrf.mxu2  ;;  %v2142_v25 = vpop.f32.mrf.mxu0 }
 0x3d4   : > { %v2319_v21 = vadd.f32 %v2318_v35, %v4216_v13  ;;  %v2407_v55 = vpop.f32.mrf.mxu3  ;;  %v2143_v20 = vadd.f32 %v2142_v25, %v4206_v1  ;;  %v2231_v27 = vpop.f32.mrf.mxu1 }
 0x3d6   : > { %v2408_v61 = vadd.f32 %v2407_v55, %v2319_v21  ;;  %v2232_v9 = vadd.f32 %v2231_v27, %v2143_v20 }
 0x3d8   : > { %2473 = vst [vmem:[%s4218_s22 + $0x1e8] sm:$0xff] %v2408_v61 }
 0x3d9   : > { %2474 = vst [vmem:[%s4218_s22 + $0x1f0] sm:$0xff] %v2232_v9 }
 0x3db   : > { %v2320_v15 = vpop.f32.mrf.mxu2 }
 0x3dc   : > { %v2321_v60 = vadd.f32 %v2320_v15, %v4216_v13  ;;  %v2409_v45 = vpop.f32.mrf.mxu3 }
 0x3de   : > { %v2410_v1 = vadd.f32 %v2409_v45, %v2321_v60 }
 0x3e0   : > { %2475 = vst [vmem:[%s4218_s22 + $0x1f8] sm:$0xff] %v2410_v1 }
 0x3e1   : > { %3540 = shalt.err (!%p3537_p10)
}
 0x3e2   : > { %s3595_s11 = smov 256   ;;  %s3596_s22 = smov 16  }
 0x3e3   : > { %3290 = dma.vmem_to_hbm [thread:$0]  (%p3730_p3), %s2491_s17, 8192, %s2493_s20, %s2477_s28, %s3595_s11, %s3595_s11, %s3596_s22  }
 0x3e4 PF: > { %s2507_s13 = sand.u32 1, %s3575_s24   ;;  %p4432_p12 = scmp.ge.s32.totalorder %s3587_s27, 2 }
 0x3e5   : > { %s2508_s14 = scalar_lea.sflag [#allocation4], %s2507_s13 }
 0x3e6   : > { %p3310_p13 = pnand %p4432_p12, %p3672_p6 }
 0x3e8   : > { %p3311_p0 = pneg %p3310_p13 }
 0x3ea   : > { %3570 = dma.done.wait (%p3311_p0), %s2508_s14, 8192  }
 0x3eb   : > { %3572 = vsyncadd (%p3311_p0), %s2508_s14, 4294959104  ;;  %p22_p5 = scmp.ge.s32.totalorder %s3720_s18, 4   ;;  %s4433_s24 = smov %s3579_s25 }
 0x3ec   : > { %s4434_s25 = smov %s3583_s26  ;;  %s4435_s26 = smov %s3736_s9 }
 0x3ed   : > { %s4436_s27 = smov %s3720_s18  ;;  %24 = sbr.rel (!%p22_p5) target bundleno = 9 (0x9), region = 109 }
 0x3f2   :  { %2514 = vsyncpa [#allocation3], 1 }
 0x3f3   :  { %2516 = vsyncpa [#allocation3 + $0x1], 1 }
 0x3f4   :  { %2517 = vsyncpa [#allocation6], 1 }
 0x3f5   :  { %2518 = vsyncpa [#allocation9], 1 }
 0x3f6   :  { %2519 = vsyncpa [#allocation4], 1 }
 0x3f7   :  { %2521 = vsyncpa [#allocation4 + $0x1], 1 }

// kernel: tpu_custom_call.1
= control target key start
LH: loop header
LB: loop body
LE: loop exit
PB: predicated region body
PF: predicated region fallthrough
CT: control target
= control target key end

     0   :  { %s4412_s0 = inlined_call_operand.hbm [shape: bf16[512,256], index: 0, kind: input, shape index: {}]   ;;  %s4413_s1 = inlined_call_operand.hbm [shape: bf16[256,256], index: 1, kind: input, shape index: {}]   ;;  %s4414_s2 = inlined_call_operand.hbm [shape: f32[1,256], index: 2, kind: input, shape index: {}]   ;;  %s4415_s3 = inlined_call_operand.hbm [shape: bf16[256,256], index: 3, kind: input, shape index: {}]   ;;  %s4416_s4 = inlined_call_operand.vmem [shape: f32[1,256], index: 4, kind: input, shape index: {}]   ;;  %s4417_s5 = inlined_call_operand.hbm [shape: bf16[256,256], index: 5, kind: input, shape index: {}]   ;;  %s4418_s6 = inlined_call_operand.vmem [shape: f32[1,256], index: 6, kind: input, shape index: {}]   ;;  %s4419_s7 = inlined_call_operand.hbm [shape: f32[512,256], index: 7, kind: output, shape index: {}]  }
   0x1   :  { %4422 = sst [smem:[#allocation16_spill]] %s4413_s1 }
   0x2   :  { %12 = vsyncpa [#allocation3], 0 }
   0x3   :  { %14 = vsyncpa [#allocation3 + $0x1], 0 }
   0x4   :  { %15 = vsyncpa [#allocation6], 0 }
   0x5   :  { %16 = vsyncpa [#allocation9], 0 }
   0x6   :  { %17 = vsyncpa [#allocation4], 0 }
   0x7   :  { %19 = vsyncpa [#allocation4 + $0x1], 0  ;;  %s3637_s24 = smov 0   ;;  %s3639_s25 = smov 0  }
   0x8   :  { %s3641_s26 = smov 0   ;;  %s3643_s27 = smov 0  }
   0x9 LB: > { %s3658_s28 = sadd.s32 4294967295, %s3587_s27   ;;  %s2604_s29 = sadd.s32 4294967294, %s3587_s27   ;;  %s3587_s27 = sphi %s3643_s27, %s4436_s27   ;;  %s3583_s26 = sphi %s3641_s26, %s4435_s26   ;;  %s3579_s25 = sphi %s3639_s25, %s4434_s25   ;;  %s3575_s24 = sphi %s3637_s24, %s4433_s24  }
   0xa   : > { %p45_p0 = scmp.ne.s32.totalorder %s3579_s25, %s3575_s24  ;;  %p46_p1 = scmp.eq.s32.totalorder %s3658_s28, 0 }
   0xb   : > { %p195_p2 = scmp.eq.s32.totalorder %s3658_s28, 1  ;;  %p201_p3 = scmp.eq.s32.totalorder %s2604_s29, 1 }
   0xc   : > { %p3667_p4 = por %p46_p1, %p45_p0  ;;  %p2605_p5 = scmp.ge.s32.totalorder %s3587_s27, 1 }
   0xd   : > { %p3672_p6 = por %p201_p3, %p45_p0  ;;  %p208_p7 = scmp.lt.s32.totalorder %s3587_s27, 3 }
   0xe   : > { %s4425_s1 = sld [smem:[#allocation16_spill]]  ;;  %s3589_s13 = smov [#allocation5]  }
   0xf   : > { %p3680_p8 = pnand %p2605_p5, %p208_p7  ;;  %s221_s14 = sshll.u32 %s3589_s13, 4  ;;  %s222_s14 = int_to_ptr.vmem [resolvable:$true] %s221_s14 }
  0x10   : > { %s245_s18 = sshll.u32 %s4415_s3, 4  ;;  %s4420_s19 = smov 128   ;;  %s246_s18 = int_to_ptr.hbm [resolvable:$true] %s245_s18 }
  0x11   : > { %p3292_p9 = pneg %p3680_p8  ;;  %s4421_s20 = smov 8  }
  0x12   : > { %s3592_s21 = smov [#allocation8]   ;;  %s234_s9 = sshll.u32 %s4414_s2, 4  ;;  %s235_s9 = int_to_ptr.hbm [resolvable:$true] %s234_s9 }
  0x13   : > { %p3688_p10 = pnand %p3292_p9, %p46_p1  ;;  %s247_s22 = sshll.u32 %s3592_s21, 4  ;;  %s248_s22 = int_to_ptr.vmem [resolvable:$true] %s247_s22 }
  0x14   : > { %s219_s11 = sshll.u32 %s4425_s1, 4  ;;  %s262_s13 = sshll.u32 %s4417_s5, 4  ;;  %s220_s11 = int_to_ptr.hbm [resolvable:$true] %s219_s11  ;;  %s263_s13 = int_to_ptr.hbm [resolvable:$true] %s262_s13 }
  0x15   : > { %3295 = dma.hbm_to_vmem [thread:$0]  (!%p3688_p10), %s220_s11, 4096, %s222_s14, [#allocation6], %s4420_s19, %s4420_s19, %s4421_s20  }
  0x16   : > { %3301 = dma.hbm_to_vmem [thread:$0]  (!%p3688_p10), %s246_s18, 4096, %s248_s22, [#allocation9], %s4420_s19, %s4420_s19, %s4421_s20  }
  0x17   : > { %s3593_s14 = smov [#allocation7]   ;;  %s3594_s17 = smov [#allocation10]  }
  0x18   : > { %s236_s16 = sshll.u32 %s3593_s14, 4  ;;  %s264_s21 = sshll.u32 %s3594_s17, 4  ;;  %s237_s16 = int_to_ptr.vmem [resolvable:$true] %s236_s16  ;;  %s265_s21 = int_to_ptr.vmem [resolvable:$true] %s264_s21 }
  0x19   : > { %3298 = dma.hbm_to_vmem [thread:$0]  (!%p3688_p10), %s235_s9, 32, %s237_s16, [#allocation6]  }
  0x1a   : > { %3304 = dma.hbm_to_vmem [thread:$0]  (!%p3688_p10), %s263_s13, 4096, %s265_s21, [#allocation9], %s4420_s19, %s4420_s19, %s4421_s20  }
  0x1b   : > { %s3720_s18 = sadd.s32 1, %s3587_s27   ;;  %s32_s22 = sadd.s32 1, %s3583_s26 }
  0x1c   : > { %s29_s23 = ssub.s32 %s3587_s27, %s3720_s18  ;;  %p39_p12 = scmp.ne.s32.totalorder %s3583_s26, %s3579_s25 }
  0x1d   : > { %p30_p13 = scmp.eq.s32.totalorder %s29_s23, 0  ;;  %p40_p0 = scmp.eq.s32.totalorder %s3587_s27, 0 }
  0x1e   : > { %p3730_p3 = por %p195_p2, %p39_p12  ;;  %p3317_p5 = scmp.lt.s32.totalorder %s3587_s27, 2 }
  0x1f   : > { %s3736_s9 = scalar_select %p30_p13, %s3583_s26, %s32_s22  }
  0x20   : > { %p41_p7 = por %p40_p0, %p39_p12  ;;  %s281_s15 = sand.u32 1, %s3583_s26  }
  0x21   : > { %s2611_s10 = sshll.u32 %s281_s15, 8  ;;  %s3141_s11 = sshll.u32 %s3587_s27, 8 }
  0x22   : > { %s291_s16 = scalar_lea.hbm %s4412_s0, %s3141_s11  ;;  %s285_s17 = scalar_lea.vmem [#allocation2], %s2611_s10 }
  0x23   : > { %s294_s21 = sshll.u32 %s285_s17, 4  ;;  %s292_s23 = sshll.u32 %s291_s16, 4  ;;  %s295_s21 = int_to_ptr.vmem [resolvable:$true] %s294_s21  ;;  %s293_s23 = int_to_ptr.hbm [resolvable:$true] %s292_s23 }
  0x24   : > { %p3743_p2 = pnand %p3317_p5, %p41_p7  ;;  %s282_s22 = scalar_lea.sflag [#allocation3], %s281_s15 }
  0x25   : > { %s3483_s20 = sshra.s32 %s293_s23, 4  ;;  %s3490_s13 = scalar_lea.hbm %s4412_s0, 512  ;;  %s3484_s20 = int_to_ptr.hbm [resolvable:$true] %s3483_s20 }
  0x26   : > { %s3485_s1 = scalar_lea.hbm %s3484_s20, 256  ;;  %p3487_p10 = pneg %p3743_p2 }
  0x27   : > { %p3486_p9 = scmp.ne.s32.totalorder %s3484_s20, %s3485_s1  ;;  %p3491_p0 = scmp.lt.s32.totalorder %s3484_s20, %s4412_s0 }
  0x28   : > { %p3492_p5 = scmp.lt.s32.totalorder %s3490_s13, %s3485_s1 }
  0x29   : > { %p3488_p12 = pnand %p3487_p10, %p3486_p9 }
  0x2a   : > { %p3493_p7 = por %p3492_p5, %p3491_p0 }
  0x2b   : > { %p3489_p13 = pneg %p3488_p12 }
  0x2d   : > { %p3494_p11 = pnand %p3493_p7, %p3489_p13 }
  0x2f   : > { %3497 = shalt.err (!%p3494_p11)
}
  0x30   : > { %s4430_s15 = smov 8   ;;  %s4431_s17 = smov 128  }
  0x31   : > { %3308 = dma.hbm_to_vmem [thread:$0]  (!%p3743_p2), %s293_s23, 4096, %s295_s21, %s282_s22, %s4431_s17, %s4431_s17, %s4430_s15  }
  0x32   : > { %306 = sbr.rel (%p3680_p8) target bundleno = 996 (0x3e4), region = 48  ;;  %s3763_s11 = sand.u32 (!%p3680_p8), 1, %s3579_s25  }
  0x33   : > { %s2616_s20 = sshll.u32 (!%p3680_p8), %s3763_s11, 8  ;;  %s309_s1 = scalar_lea.sflag (!%p3680_p8), [#allocation3], %s3763_s11 }
  0x34   : > { %s3767_s10 = scalar_lea.vmem (!%p3680_p8), [#allocation2], %s2616_s20 }
  0x37   : > { %3558 = dma.done.wait (%p3667_p4), %s309_s1, 4096  }
  0x38   : > { %3560 = vsyncadd (%p3667_p4), %s309_s1, 4294963200 }
  0x39   : > { %3562 = dma.done.wait (%p46_p1), [#allocation6], 4128  }
  0x3a   : > { %3564 = vsyncadd (%p46_p1), [#allocation6], 4294963168 }
  0x3b   : > { %3566 = dma.done.wait (%p46_p1), [#allocation9], 8192  }
  0x3c   : > { %3568 = vsyncadd (%p46_p1), [#allocation9], 4294959104  ;;  %v2808_v0 = vld [vmem:[#allocation5 + $0x70] sm:$0xf]  ;;  %v3189_v1 = vld [vmem:[#allocation5 + $0x74] sm:$0xf0] }
  0x3d   : > { %v2872_v2 = vld [vmem:[#allocation5 + $0xf0] sm:$0xf]  ;;  %v2809_v3 = vor.u32 %v3189_v1, %v2808_v0  ;;  %v3205_v4 = vld [vmem:[#allocation5 + $0xf4] sm:$0xf0]  ;;  %v3188_v5 = vld [vmem:[#allocation5 + $0x74] sm:$0xf] }
  0x3e   : > { %v2810_v6 = vld [vmem:[#allocation5 + $0x78] sm:$0xf0]  ;;  %v2873_v7 = vor.u32 %v3205_v4, %v2872_v2  ;;  %v3204_v9 = vld [vmem:[#allocation5 + $0xf4] sm:$0xf]  ;;  %v2800_v11 = vld [vmem:[#allocation5 + $0x60] sm:$0xf] }
  0x3f   : > { %v2813_v8 = vor.u32 %v3188_v5, %v2810_v6  ;;  %v2874_v10 = vld [vmem:[#allocation5 + $0xf8] sm:$0xf0]  ;;  %756 = vmatpush.bf16.msra.mxu0 %v2809_v3  ;;  %v3187_v13 = vld [vmem:[#allocation5 + $0x64] sm:$0xf0]  ;;  %v2864_v14 = vld [vmem:[#allocation5 + $0xe0] sm:$0xf] }
  0x40   : > { %v2877_v12 = vor.u32 %v3204_v9, %v2874_v10  ;;  %v3203_v15 = vld [vmem:[#allocation5 + $0xe4] sm:$0xf0]  ;;  %845 = vmatpush.bf16.msra.mxu1 %v2873_v7  ;;  %v2801_v16 = vor.u32 %v3187_v13, %v2800_v11  ;;  %v3186_v18 = vld [vmem:[#allocation5 + $0x64] sm:$0xf]  ;;  %v2802_v19 = vld [vmem:[#allocation5 + $0x68] sm:$0xf0] }
  0x41   : > { %934 = vmatpush.bf16.msra.mxu2 %v2813_v8  ;;  %v2865_v17 = vor.u32 %v3203_v15, %v2864_v14  ;;  %v3202_v20 = vld [vmem:[#allocation5 + $0xe4] sm:$0xf]  ;;  %v2805_v21 = vor.u32 %v3186_v18, %v2802_v19  ;;  %v2866_v22 = vld [vmem:[#allocation5 + $0xe8] sm:$0xf0]  ;;  %v2792_v23 = vld [vmem:[#allocation5 + $0x50] sm:$0xf] }
  0x42   : > { %1023 = vmatpush.bf16.msra.mxu3 %v2877_v12  ;;  %v3185_v24 = vld [vmem:[#allocation5 + $0x54] sm:$0xf0]  ;;  %v2869_v25 = vor.u32 %v3202_v20, %v2866_v22  ;;  %v2856_v26 = vld [vmem:[#allocation5 + $0xd0] sm:$0xf]  ;;  %v3184_v28 = vld [vmem:[#allocation5 + $0x54] sm:$0xf] }
  0x43   : > { %v3201_v27 = vld [vmem:[#allocation5 + $0xd4] sm:$0xf0]  ;;  %757 = vmatpush.bf16.msra.mxu0 %v2801_v16  ;;  %v2793_v29 = vor.u32 %v3185_v24, %v2792_v23  ;;  %v2794_v30 = vld [vmem:[#allocation5 + $0x58] sm:$0xf0]  ;;  %v3200_v31 = vld [vmem:[#allocation5 + $0xd4] sm:$0xf] }
  0x44   : > { %v2858_v32 = vld [vmem:[#allocation5 + $0xd8] sm:$0xf0]  ;;  %846 = vmatpush.bf16.msra.mxu1 %v2865_v17  ;;  %v2857_v33 = vor.u32 %v3201_v27, %v2856_v26  ;;  %v2797_v34 = vor.u32 %v3184_v28, %v2794_v30  ;;  %v2784_v35 = vld [vmem:[#allocation5 + $0x40] sm:$0xf]  ;;  %v3183_v36 = vld [vmem:[#allocation5 + $0x44] sm:$0xf0] }
  0x45   : > { %935 = vmatpush.bf16.msra.mxu2 %v2805_v21  ;;  %v2848_v37 = vld [vmem:[#allocation5 + $0xc0] sm:$0xf]  ;;  %v2861_v38 = vor.u32 %v3200_v31, %v2858_v32  ;;  %v3199_v39 = vld [vmem:[#allocation5 + $0xc4] sm:$0xf0]  ;;  %v3182_v40 = vld [vmem:[#allocation5 + $0x44] sm:$0xf]  ;;  %v2785_v44 = vor.u32 %v3183_v36, %v2784_v35 }
  0x46   : > { %1024 = vmatpush.bf16.msra.mxu3 %v2869_v25  ;;  %v2786_v41 = vld [vmem:[#allocation5 + $0x48] sm:$0xf0]  ;;  %v3198_v42 = vld [vmem:[#allocation5 + $0xc4] sm:$0xf]  ;;  %v2849_v45 = vor.u32 %v3199_v39, %v2848_v37  ;;  %v2776_v47 = vld [vmem:[#allocation5 + $0x30] sm:$0xf] }
  0x47   : > { %v2850_v43 = vld [vmem:[#allocation5 + $0xc8] sm:$0xf0]  ;;  %758 = vmatpush.bf16.msra.mxu0 %v2793_v29  ;;  %v2789_v46 = vor.u32 %v3182_v40, %v2786_v41  ;;  %v3181_v48 = vld [vmem:[#allocation5 + $0x34] sm:$0xf0]  ;;  %v2840_v49 = vld [vmem:[#allocation5 + $0xb0] sm:$0xf] }
  0x48   : > { %847 = vmatpush.bf16.msra.mxu1 %v2857_v33  ;;  %v2853_v50 = vor.u32 %v3198_v42, %v2850_v43  ;;  %v3197_v51 = vld [vmem:[#allocation5 + $0xb4] sm:$0xf0]  ;;  %v3180_v52 = vld [vmem:[#allocation5 + $0x34] sm:$0xf]  ;;  %v2778_v53 = vld [vmem:[#allocation5 + $0x38] sm:$0xf0]  ;;  %v2777_v56 = vor.u32 %v3181_v48, %v2776_v47 }
  0x49   : > { %936 = vmatpush.bf16.msra.mxu2 %v2797_v34  ;;  %v3196_v54 = vld [vmem:[#allocation5 + $0xb4] sm:$0xf]  ;;  %v2842_v55 = vld [vmem:[#allocation5 + $0xb8] sm:$0xf0]  ;;  %v2841_v57 = vor.u32 %v3197_v51, %v2840_v49  ;;  %v2781_v58 = vor.u32 %v3180_v52, %v2778_v53  ;;  %v2768_v59 = vld [vmem:[#allocation5 + $0x20] sm:$0xf] }
  0x4a   : > { %1025 = vmatpush.bf16.msra.mxu3 %v2861_v38  ;;  %v3179_v60 = vld [vmem:[#allocation5 + $0x24] sm:$0xf0]  ;;  %v2832_v61 = vld [vmem:[#allocation5 + $0xa0] sm:$0xf]  ;;  %v2845_v62 = vor.u32 %v3196_v54, %v2842_v55  ;;  %v3178_v0 = vld [vmem:[#allocation5 + $0x24] sm:$0xf] }
  0x4b   : > { %759 = vmatpush.bf16.msra.mxu0 %v2785_v44  ;;  %v3195_v63 = vld [vmem:[#allocation5 + $0xa4] sm:$0xf0]  ;;  %v2770_v1 = vld [vmem:[#allocation5 + $0x28] sm:$0xf0]  ;;  %v3194_v2 = vld [vmem:[#allocation5 + $0xa4] sm:$0xf]  ;;  %v2769_v4 = vor.u32 %v3179_v60, %v2768_v59 }
  0x4c   : > { %848 = vmatpush.bf16.msra.mxu1 %v2849_v45  ;;  %v2834_v3 = vld [vmem:[#allocation5 + $0xa8] sm:$0xf0]  ;;  %v2833_v5 = vor.u32 %v3195_v63, %v2832_v61  ;;  %v2773_v6 = vor.u32 %v3178_v0, %v2770_v1  ;;  %v2760_v7 = vld [vmem:[#allocation5 + $0x10] sm:$0xf]  ;;  %v3177_v8 = vld [vmem:[#allocation5 + $0x14] sm:$0xf0] }
  0x4d   : > { %937 = vmatpush.bf16.msra.mxu2 %v2789_v46  ;;  %v2824_v9 = vld [vmem:[#allocation5 + $0x90] sm:$0xf]  ;;  %v2837_v10 = vor.u32 %v3194_v2, %v2834_v3  ;;  %v3193_v11 = vld [vmem:[#allocation5 + $0x94] sm:$0xf0]  ;;  %v3176_v12 = vld [vmem:[#allocation5 + $0x14] sm:$0xf]  ;;  %v2761_v16 = vor.u32 %v3177_v8, %v2760_v7 }
  0x4e   : > { %1026 = vmatpush.bf16.msra.mxu3 %v2853_v50  ;;  %v2762_v13 = vld [vmem:[#allocation5 + $0x18] sm:$0xf0]  ;;  %v3192_v14 = vld [vmem:[#allocation5 + $0x94] sm:$0xf]  ;;  %v2752_v17 = vld [vmem:[#allocation5] sm:$0xf]  ;;  %v2825_v19 = vor.u32 %v3193_v11, %v2824_v9 }
  0x4f   : > { %760 = vmatpush.bf16.msra.mxu0 %v2777_v56  ;;  %v2826_v15 = vld [vmem:[#allocation5 + $0x98] sm:$0xf0]  ;;  %v3175_v18 = vld [vmem:[#allocation5 + $0x4] sm:$0xf0]  ;;  %v2765_v20 = vor.u32 %v3176_v12, %v2762_v13  ;;  %v2816_v21 = vld [vmem:[#allocation5 + $0x80] sm:$0xf] }
  0x50   : > { %849 = vmatpush.bf16.msra.mxu1 %v2841_v57  ;;  %v3191_v22 = vld [vmem:[#allocation5 + $0x84] sm:$0xf0]  ;;  %v3174_v23 = vld [vmem:[#allocation5 + $0x4] sm:$0xf]  ;;  %v2829_v24 = vor.u32 %v3192_v14, %v2826_v15  ;;  %v2754_v25 = vld [vmem:[#allocation5 + $0x8] sm:$0xf0]  ;;  %v2753_v31 = vor.u32 %v3175_v18, %v2752_v17 }
  0x51   : > { %938 = vmatpush.bf16.msra.mxu2 %v2781_v58  ;;  %v3190_v26 = vld [vmem:[#allocation5 + $0x84] sm:$0xf]  ;;  %v2818_v27 = vld [vmem:[#allocation5 + $0x88] sm:$0xf0]  ;;  %v2624_v28 = vld [vmem:[%s3767_s10] sm:$0xf]  ;;  %v2817_v35 = vor.u32 %v3191_v22, %v2816_v21  ;;  %v2757_v36 = vor.u32 %v3174_v23, %v2754_v25 }
  0x52   : > { %1027 = vmatpush.bf16.msra.mxu3 %v2845_v62  ;;  %v3220_v29 = vld [vmem:[#allocation8 + $0x74] sm:$0xf]  ;;  %v2938_v30 = vld [vmem:[#allocation8 + $0x78] sm:$0xf0]  ;;  %v3143_v32 = vld [vmem:[%s3767_s10 + $0x4] sm:$0xf0]  ;;  %v2821_v39 = vor.u32 %v3190_v26, %v2818_v27 }
  0x53   : > { %761 = vmatpush.bf16.msra.mxu0 %v2769_v4  ;;  %v3236_v33 = vld [vmem:[#allocation8 + $0xf4] sm:$0xf]  ;;  %v3002_v34 = vld [vmem:[#allocation8 + $0xf8] sm:$0xf0]  ;;  %v3142_v37 = vld [vmem:[%s3767_s10 + $0x4] sm:$0xf]  ;;  %v2941_v40 = vor.u32 %v3220_v29, %v2938_v30  ;;  %v2625_v43 = vor.u32 %v3143_v32, %v2624_v28 }
  0x54   : > { %850 = vmatpush.bf16.msra.mxu1 %v2833_v5  ;;  %v2626_v38 = vld [vmem:[%s3767_s10 + $0x8] sm:$0xf0]  ;;  %v2936_v41 = vld [vmem:[#allocation8 + $0x70] sm:$0xf]  ;;  %v3221_v42 = vld [vmem:[#allocation8 + $0x74] sm:$0xf0]  ;;  %v3005_v44 = vor.u32 %v3236_v33, %v3002_v34 }
  0x55   : > { %939 = vmatpush.bf16.msra.mxu2 %v2773_v6  ;;  %v3000_v45 = vld [vmem:[#allocation8 + $0xf0] sm:$0xf]  ;;  %v3237_v46 = vld [vmem:[#allocation8 + $0xf4] sm:$0xf0]  ;;  %v2629_v47 = vor.u32 %v3142_v37, %v2626_v38  ;;  %v2937_v48 = vor.u32 %v3221_v42, %v2936_v41  ;;  %v3218_v50 = vld [vmem:[#allocation8 + $0x64] sm:$0xf] }
  0x56   : > { %1028 = vmatpush.bf16.msra.mxu3 %v2837_v10  ;;  %v3001_v49 = vor.u32 %v3237_v46, %v3000_v45  ;;  %v2930_v51 = vld [vmem:[#allocation8 + $0x68] sm:$0xf0]  ;;  %v3234_v52 = vld [vmem:[#allocation8 + $0xe4] sm:$0xf]  ;;  %v2928_v55 = vld [vmem:[#allocation8 + $0x60] sm:$0xf] }
  0x57   : > { %762 = vmatpush.bf16.msra.mxu0 %v2761_v16  ;;  %v2933_v53 = vor.u32 %v3218_v50, %v2930_v51  ;;  %v2994_v54 = vld [vmem:[#allocation8 + $0xe8] sm:$0xf0]  ;;  %v3219_v56 = vld [vmem:[#allocation8 + $0x64] sm:$0xf0]  ;;  %v2992_v59 = vld [vmem:[#allocation8 + $0xe0] sm:$0xf] }
  0x58   : > { %851 = vmatpush.bf16.msra.mxu1 %v2825_v19  ;;  %v2997_v57 = vor.u32 %v3234_v52, %v2994_v54  ;;  %v2929_v58 = vor.u32 %v3219_v56, %v2928_v55  ;;  %v3235_v60 = vld [vmem:[#allocation8 + $0xe4] sm:$0xf0]  ;;  %v2632_v62 = vld [vmem:[%s3767_s10 + $0x10] sm:$0xf]  ;;  %v3145_v63 = vld [vmem:[%s3767_s10 + $0x14] sm:$0xf0] }
  0x59   : > { %940 = vmatpush.bf16.msra.mxu2 %v2765_v20  ;;  %v2993_v61 = vor.u32 %v3235_v60, %v2992_v59  ;;  %v3144_v0 = vld [vmem:[%s3767_s10 + $0x14] sm:$0xf]  ;;  %v2634_v1 = vld [vmem:[%s3767_s10 + $0x18] sm:$0xf0]  ;;  %v2633_v2 = vor.u32 %v3145_v63, %v2632_v62  ;;  %v2640_v4 = vld [vmem:[%s3767_s10 + $0x20] sm:$0xf] }
  0x5a   : > { %1029 = vmatpush.bf16.msra.mxu3 %v2829_v24  ;;  %v2637_v3 = vor.u32 %v3144_v0, %v2634_v1  ;;  %v3147_v5 = vld [vmem:[%s3767_s10 + $0x24] sm:$0xf0]  ;;  %v3146_v6 = vld [vmem:[%s3767_s10 + $0x24] sm:$0xf]  ;;  %v2642_v7 = vld [vmem:[%s3767_s10 + $0x28] sm:$0xf0] }
  0x5b   : > { %763 = vmatpush.bf16.msra.mxu0 %v2753_v31  ;;  %v2641_v8 = vor.u32 %v3147_v5, %v2640_v4  ;;  %v2645_v9 = vor.u32 %v3146_v6, %v2642_v7  ;;  %v3216_v10 = vld [vmem:[#allocation8 + $0x54] sm:$0xf]  ;;  %v2922_v11 = vld [vmem:[#allocation8 + $0x58] sm:$0xf0]  ;;  %v2920_v15 = vld [vmem:[#allocation8 + $0x50] sm:$0xf] }
  0x5c   : > { %852 = vmatpush.bf16.msra.mxu1 %v2817_v35  ;;  %v3232_v12 = vld [vmem:[#allocation8 + $0xd4] sm:$0xf]  ;;  %v2925_v13 = vor.u32 %v3216_v10, %v2922_v11  ;;  %v2986_v14 = vld [vmem:[#allocation8 + $0xd8] sm:$0xf0]  ;;  %v3217_v16 = vld [vmem:[#allocation8 + $0x54] sm:$0xf0] }
  0x5d   : > { %941 = vmatpush.bf16.msra.mxu2 %v2757_v36  ;;  %v2989_v17 = vor.u32 %v3232_v12, %v2986_v14  ;;  %v2921_v18 = vor.u32 %v3217_v16, %v2920_v15  ;;  %v2984_v19 = vld [vmem:[#allocation8 + $0xd0] sm:$0xf]  ;;  %v3233_v20 = vld [vmem:[#allocation8 + $0xd4] sm:$0xf0]  ;;  %v2656_v28 = vld [vmem:[%s3767_s10 + $0x40] sm:$0xf] }
  0x5e   : > { %1030 = vmatpush.bf16.msra.mxu3 %v2821_v39  ;;  %764 = vmatmul.bf16.vlgmr.msra.gmra.mxu0 %v2625_v43  ;;  %v2985_v21 = vor.u32 %v3233_v20, %v2984_v19  ;;  %v2648_v22 = vld [vmem:[%s3767_s10 + $0x30] sm:$0xf]  ;;  %v3149_v23 = vld [vmem:[%s3767_s10 + $0x34] sm:$0xf0]  ;;  %v3148_v24 = vld [vmem:[%s3767_s10 + $0x34] sm:$0xf] }
  0x5f   : > { %853 = vmatmul.bf16.vlgmr.msra.gmra.mxu1 %v2629_v47  ;;  %1406 = vmatpush.bf16.msrb.mxu0 %v2937_v48  ;;  %v2650_v25 = vld [vmem:[%s3767_s10 + $0x38] sm:$0xf0]  ;;  %v2649_v26 = vor.u32 %v3149_v23, %v2648_v22  ;;  %v3151_v29 = vld [vmem:[%s3767_s10 + $0x44] sm:$0xf0]  ;;  %v3150_v30 = vld [vmem:[%s3767_s10 + $0x44] sm:$0xf] }
  0x60   : > { %942 = vmatmul.bf16.vlgmr.msra.gmra.mxu2 %v2625_v43  ;;  %1495 = vmatpush.bf16.msrb.mxu1 %v3001_v49  ;;  %v2653_v27 = vor.u32 %v3148_v24, %v2650_v25  ;;  %v2658_v31 = vld [vmem:[%s3767_s10 + $0x48] sm:$0xf0]  ;;  %v2657_v32 = vor.u32 %v3151_v29, %v2656_v28  ;;  %v3214_v34 = vld [vmem:[#allocation8 + $0x44] sm:$0xf]  ;;  %v2912_v39 = vld [vmem:[#allocation8 + $0x40] sm:$0xf] }
  0x61   : > { %1584 = vmatpush.bf16.msrb.mxu2 %v2941_v40  ;;  %1031 = vmatmul.bf16.vlgmr.msra.gmra.mxu3 %v2629_v47  ;;  %v2661_v33 = vor.u32 %v3150_v30, %v2658_v31  ;;  %v2914_v35 = vld [vmem:[#allocation8 + $0x48] sm:$0xf0]  ;;  %v3230_v36 = vld [vmem:[#allocation8 + $0xc4] sm:$0xf]  ;;  %v3215_v40 = vld [vmem:[#allocation8 + $0x44] sm:$0xf0] }
  0x62   : > { %1673 = vmatpush.bf16.msrb.mxu3 %v3005_v44  ;;  %v2917_v37 = vor.u32 %v3214_v34, %v2914_v35  ;;  %v2978_v38 = vld [vmem:[#allocation8 + $0xc8] sm:$0xf0]  ;;  %v2913_v42 = vor.u32 %v3215_v40, %v2912_v39  ;;  %v2976_v43 = vld [vmem:[#allocation8 + $0xc0] sm:$0xf]  ;;  %v3231_v44 = vld [vmem:[#allocation8 + $0xc4] sm:$0xf0] }
  0x63   : > { %1407 = vmatpush.bf16.msrb.mxu0 %v2929_v58  ;;  %v2981_v41 = vor.u32 %v3230_v36, %v2978_v38  ;;  %v2977_v45 = vor.u32 %v3231_v44, %v2976_v43  ;;  %v2664_v46 = vld [vmem:[%s3767_s10 + $0x50] sm:$0xf]  ;;  %v3153_v47 = vld [vmem:[%s3767_s10 + $0x54] sm:$0xf0]  ;;  %v3152_v48 = vld [vmem:[%s3767_s10 + $0x54] sm:$0xf] }
  0x64   : > { %1496 = vmatpush.bf16.msrb.mxu1 %v2993_v61  ;;  %v2666_v49 = vld [vmem:[%s3767_s10 + $0x58] sm:$0xf0]  ;;  %v2665_v50 = vor.u32 %v3153_v47, %v2664_v46  ;;  %v2672_v52 = vld [vmem:[%s3767_s10 + $0x60] sm:$0xf]  ;;  %v3154_v54 = vld [vmem:[%s3767_s10 + $0x64] sm:$0xf] }
  0x65   : > { %1585 = vmatpush.bf16.msrb.mxu2 %v2933_v53  ;;  %v2669_v51 = vor.u32 %v3152_v48, %v2666_v49  ;;  %v3155_v53 = vld [vmem:[%s3767_s10 + $0x64] sm:$0xf0]  ;;  %v2674_v55 = vld [vmem:[%s3767_s10 + $0x68] sm:$0xf0]  ;;  %v3212_v58 = vld [vmem:[#allocation8 + $0x34] sm:$0xf] }
  0x66   : > { %1674 = vmatpush.bf16.msrb.mxu3 %v2997_v57  ;;  %v2673_v56 = vor.u32 %v3155_v53, %v2672_v52  ;;  %v2677_v57 = vor.u32 %v3154_v54, %v2674_v55  ;;  %v2906_v59 = vld [vmem:[#allocation8 + $0x38] sm:$0xf0]  ;;  %v3228_v60 = vld [vmem:[#allocation8 + $0xb4] sm:$0xf]  ;;  %v2680_v0 = vld [vmem:[%s3767_s10 + $0x70] sm:$0xf] }
  0x67   : > { %1408 = vmatpush.bf16.msrb.mxu0 %v2921_v18  ;;  %v2909_v61 = vor.u32 %v3212_v58, %v2906_v59  ;;  %v2970_v62 = vld [vmem:[#allocation8 + $0xb8] sm:$0xf0]  ;;  %v3157_v1 = vld [vmem:[%s3767_s10 + $0x74] sm:$0xf0]  ;;  %v2904_v5 = vld [vmem:[#allocation8 + $0x30] sm:$0xf] }
  0x68   : > { %1497 = vmatpush.bf16.msrb.mxu1 %v2985_v21  ;;  %v2973_v63 = vor.u32 %v3228_v60, %v2970_v62  ;;  %v2681_v4 = vor.u32 %v3157_v1, %v2680_v0  ;;  %v3213_v6 = vld [vmem:[#allocation8 + $0x34] sm:$0xf0]  ;;  %v2968_v7 = vld [vmem:[#allocation8 + $0xb0] sm:$0xf]  ;;  %v430_v12 = vld [vmem:[#allocation7] sm:$0x3] }
  0x69   : > { %1586 = vmatpush.bf16.msrb.mxu2 %v2925_v13  ;;  %v3229_v10 = vld [vmem:[#allocation8 + $0xb4] sm:$0xf0]  ;;  %v2688_v13 = vld [vmem:[%s3767_s10 + $0x80] sm:$0xf]  ;;  %v3159_v14 = vld [vmem:[%s3767_s10 + $0x84] sm:$0xf0] }
  0x6a   : > { %1675 = vmatpush.bf16.msrb.mxu3 %v2989_v17  ;;  %v2969_v11 = vor.u32 %v3229_v10, %v2968_v7  ;;  %v3815_v15 = vperm.slane %v430_v12, 0  ;;  %v3158_v16 = vld [vmem:[%s3767_s10 + $0x84] sm:$0xf]  ;;  %v2690_v17 = vld [vmem:[%s3767_s10 + $0x88] sm:$0xf0]  ;;  %v2689_v18 = vor.u32 %v3159_v14, %v2688_v13  ;;  %v3820_v24 = vperm.slane %v430_v12, 1 }
  0x6b   : > { %1409 = vmatpush.bf16.msrb.mxu0 %v2913_v42  ;;  %v2693_v20 = vor.u32 %v3158_v16, %v2690_v17  ;;  %v3210_v25 = vld [vmem:[#allocation8 + $0x24] sm:$0xf]  ;;  %v2962_v29 = vld [vmem:[#allocation8 + $0xa8] sm:$0xf0]  ;;  %v3161_v40 = vld [vmem:[%s3767_s10 + $0x94] sm:$0xf0] }
  0x6c   : > { %1498 = vmatpush.bf16.msrb.mxu1 %v2977_v45  ;;  %v3226_v28 = vld [vmem:[#allocation8 + $0xa4] sm:$0xf]  ;;  %v2696_v39 = vld [vmem:[%s3767_s10 + $0x90] sm:$0xf]  ;;  %v2698_v42 = vld [vmem:[%s3767_s10 + $0x98] sm:$0xf0] }
  0x6d   : > { %1587 = vmatpush.bf16.msrb.mxu2 %v2917_v37  ;;  %v2965_v31 = vor.u32 %v3226_v28, %v2962_v29  ;;  %v2896_v45 = vld [vmem:[#allocation8 + $0x20] sm:$0xf]  ;;  %v3211_v46 = vld [vmem:[#allocation8 + $0x24] sm:$0xf0]  ;;  %v2697_v52 = vor.u32 %v3161_v40, %v2696_v39  ;;  %s2621_s23 = sshll.u32 %s3763_s11, 9  ;;  %s3271_s13 = sshll.u32 %s3658_s28, 9 }
  0x6e   : > { %769 = vmatmul.bf16.gmra.mxu0 %v2633_v2  ;;  %1676 = vmatpush.bf16.msrb.mxu3 %v2981_v41  ;;  %v3160_v41 = vld [vmem:[%s3767_s10 + $0x94] sm:$0xf]  ;;  %v2897_v47 = vor.u32 %v3211_v46, %v2896_v45  ;;  %v2960_v48 = vld [vmem:[#allocation8 + $0xa0] sm:$0xf]  ;;  %v3227_v49 = vld [vmem:[#allocation8 + $0xa4] sm:$0xf0]  ;;  %s2489_s15 = scalar_lea.hbm %s4419_s7, %s3271_s13 }
  0x6f   : > { %858 = vmatmul.bf16.gmra.mxu1 %v2637_v3  ;;  %v2961_v53 = vor.u32 %v3227_v49, %v2960_v48  ;;  %v3163_v10 = vld [vmem:[%s3767_s10 + $0xa4] sm:$0xf0]  ;;  %v3162_v13 = vld [vmem:[%s3767_s10 + $0xa4] sm:$0xf]  ;;  %v2706_v14 = vld [vmem:[%s3767_s10 + $0xa8] sm:$0xf0] }
  0x70   : > { %947 = vmatmul.bf16.gmra.mxu2 %v2633_v2  ;;  %v3156_v2 = vld [vmem:[%s3767_s10 + $0x74] sm:$0xf]  ;;  %1499 = vmatpush.bf16.msrb.mxu1 %v2969_v11  ;;  %v2712_v45 = vld [vmem:[%s3767_s10 + $0xb0] sm:$0xf]  ;;  %v3165_v46 = vld [vmem:[%s3767_s10 + $0xb4] sm:$0xf0] }
  0x71   : > { %1036 = vmatmul.bf16.gmra.mxu3 %v2637_v3  ;;  %1588 = vmatpush.bf16.msrb.mxu2 %v2909_v61  ;;  %v2682_v3 = vld [vmem:[%s3767_s10 + $0x78] sm:$0xf0]  ;;  %s4218_s22 = scalar_lea.vmem [#allocation11], %s2621_s23  ;;  %s2492_s20 = sshll.u32 %s2489_s15, 4  ;;  %s2493_s20 = int_to_ptr.hbm [resolvable:$true] %s2492_s20 }
  0x72   : > { %1677 = vmatpush.bf16.msrb.mxu3 %v2973_v63  ;;  %v2714_v48 = vld [vmem:[%s3767_s10 + $0xb8] sm:$0xf0]  ;;  %s2490_s17 = sshll.u32 %s4218_s22, 4  ;;  %s2477_s28 = scalar_lea.sflag [#allocation4], %s3763_s11  ;;  %s2491_s17 = int_to_ptr.vmem [resolvable:$true] %s2490_s17 }
  0x73   : > { %s3527_s1 = sshra.s32 %s2493_s20, 4  ;;  %s3533_s19 = scalar_lea.hbm %s4419_s7, 1024  ;;  %s3528_s1 = int_to_ptr.hbm [resolvable:$true] %s3527_s1 }
  0x74   : > { %1500 = vmatpush.bf16.msrb.mxu1 %v2961_v53  ;;  %v3209_v53 = vld [vmem:[#allocation8 + $0x14] sm:$0xf0]  ;;  %p3534_p11 = scmp.lt.s32.totalorder %s3528_s1, %s4419_s7 }
  0x76   : > { %1678 = vmatpush.bf16.msrb.mxu3 %v2965_v31  ;;  %v2890_v31 = vld [vmem:[#allocation8 + $0x18] sm:$0xf0] }
  0x7e   : > { %774 = vmatmul.bf16.gmra.mxu0 %v2641_v8 }
  0x7f   : > { %863 = vmatmul.bf16.gmra.mxu1 %v2645_v9 }
  0x80   : > { %952 = vmatmul.bf16.gmra.mxu2 %v2641_v8  ;;  %v2685_v8 = vor.u32 %v3156_v2, %v2682_v3 }
  0x81   : > { %1041 = vmatmul.bf16.gmra.mxu3 %v2645_v9  ;;  %v2905_v9 = vor.u32 %v3213_v6, %v2904_v5 }
  0x83   : > { %1410 = vmatpush.bf16.msrb.mxu0 %v2905_v9  ;;  %v2704_v9 = vld [vmem:[%s3767_s10 + $0xa0] sm:$0xf] }
  0x84   : > { %v2705_v17 = vor.u32 %v3163_v10, %v2704_v9 }
  0x87   : > { %1411 = vmatpush.bf16.msrb.mxu0 %v2897_v47  ;;  %v3164_v47 = vld [vmem:[%s3767_s10 + $0xb4] sm:$0xf] }
  0x8e   : > { %779 = vmatmul.bf16.gmra.mxu0 %v2649_v26 }
  0x8f   : > { %868 = vmatmul.bf16.gmra.mxu1 %v2653_v27 }
  0x90   : > { %957 = vmatmul.bf16.gmra.mxu2 %v2649_v26  ;;  %v2898_v26 = vld [vmem:[#allocation8 + $0x28] sm:$0xf0] }
  0x91   : > { %1046 = vmatmul.bf16.gmra.mxu3 %v2653_v27  ;;  %v2901_v27 = vor.u32 %v3210_v25, %v2898_v26 }
  0x93   : > { %1589 = vmatpush.bf16.msrb.mxu2 %v2901_v27 }
  0x9e   : > { %784 = vmatmul.bf16.gmra.mxu0 %v2657_v32 }
  0x9f   : > { %873 = vmatmul.bf16.gmra.mxu1 %v2661_v33 }
  0xa0   : > { %962 = vmatmul.bf16.gmra.mxu2 %v2657_v32 }
  0xa1   : > { %1051 = vmatmul.bf16.gmra.mxu3 %v2661_v33 }
  0xae   : > { %789 = vmatmul.bf16.gmra.mxu0 %v2665_v50 }
  0xaf   : > { %878 = vmatmul.bf16.gmra.mxu1 %v2669_v51 }
  0xb0   : > { %967 = vmatmul.bf16.gmra.mxu2 %v2665_v50 }
  0xb1   : > { %1056 = vmatmul.bf16.gmra.mxu3 %v2669_v51 }
  0xbe   : > { %794 = vmatmul.bf16.gmra.mxu0 %v2673_v56 }
  0xbf   : > { %883 = vmatmul.bf16.gmra.mxu1 %v2677_v57 }
  0xc0   : > { %972 = vmatmul.bf16.gmra.mxu2 %v2673_v56 }
  0xc1   : > { %1061 = vmatmul.bf16.gmra.mxu3 %v2677_v57  ;;  %v2701_v57 = vor.u32 %v3160_v41, %v2698_v42 }
  0xce   : > { %799 = vmatmul.bf16.gmra.mxu0 %v2681_v4 }
  0xcf   : > { %888 = vmatmul.bf16.gmra.mxu1 %v2685_v8 }
  0xd0   : > { %977 = vmatmul.bf16.gmra.mxu2 %v2681_v4 }
  0xd1   : > { %1066 = vmatmul.bf16.gmra.mxu3 %v2685_v8 }
  0xdb   : > { %v765_v19 = vpop.f32.mrf.mxu0 }
  0xdc   : > { %v766_v21 = vadd.f32 %v765_v19, %v3815_v15  ;;  %v854_v22 = vpop.f32.mrf.mxu1 }
  0xde   : > { %v855_v23 = vadd.f32 %v854_v22, %v766_v21  ;;  %804 = vmatmul.bf16.gmra.mxu0 %v2689_v18  ;;  %v2709_v22 = vor.u32 %v3162_v13, %v2706_v14 }
  0xdf   : > { %893 = vmatmul.bf16.gmra.mxu1 %v2693_v20 }
  0xe0   : > { %982 = vmatmul.bf16.gmra.mxu2 %v2689_v18  ;;  %v1112_v43 = vmax.f32 %v855_v23, 0.0 }
  0xe1   : > { %1071 = vmatmul.bf16.gmra.mxu3 %v2693_v20 }
  0xe3   : > { %v943_v30 = vpop.f32.mrf.mxu2  ;;  %v767_v34 = vpop.f32.mrf.mxu0 }
  0xe4   : > { %v944_v32 = vadd.f32 %v943_v30, %v3820_v24  ;;  %v1032_v33 = vpop.f32.mrf.mxu3  ;;  %v768_v35 = vadd.f32 %v767_v34, %v3815_v15  ;;  %v856_v36 = vpop.f32.mrf.mxu1  ;;  %v3208_v30 = vld [vmem:[#allocation8 + $0x14] sm:$0xf]  ;;  %v2954_v34 = vld [vmem:[#allocation8 + $0x98] sm:$0xf0] }
  0xe6   : > { %v1033_v37 = vadd.f32 %v1032_v33, %v944_v32  ;;  %v857_v38 = vadd.f32 %v856_v36, %v768_v35  ;;  %v2893_v32 = vor.u32 %v3208_v30, %v2890_v31  ;;  %v3224_v33 = vld [vmem:[#allocation8 + $0x94] sm:$0xf] }
  0xe8   : > { %v1114_v44 = vmax.f32 %v857_v38, 0.0  ;;  %v1113_v62 = vmax.f32 %v1033_v37, 0.0  ;;  %v2957_v37 = vor.u32 %v3224_v33, %v2954_v34  ;;  %1590 = vmatpush.bf16.msrb.mxu2 %v2893_v32 }
  0xea   : > { %v3828_v50 = vpack.c.bf16 %v1114_v44, %v1112_v43  ;;  %1679 = vmatpush.bf16.msrb.mxu3 %v2957_v37 }
  0xeb   : > { %v945_v51 = vpop.f32.mrf.mxu2  ;;  %v770_v56 = vpop.f32.mrf.mxu0 }
  0xec   : > { %v946_v54 = vadd.f32 %v945_v51, %v3820_v24  ;;  %v1034_v55 = vpop.f32.mrf.mxu3  ;;  %v771_v58 = vadd.f32 %v770_v56, %v3815_v15  ;;  %v859_v59 = vpop.f32.mrf.mxu1  ;;  %v3225_v56 = vld [vmem:[#allocation8 + $0x94] sm:$0xf0] }
  0xee   : > { %v1035_v60 = vadd.f32 %v1034_v55, %v946_v54  ;;  %v860_v61 = vadd.f32 %v859_v59, %v771_v58  ;;  %809 = vmatmul.bf16.gmra.mxu0 %v2697_v52  ;;  %v2952_v55 = vld [vmem:[#allocation8 + $0x90] sm:$0xf]  ;;  %v2713_v58 = vor.u32 %v3165_v46, %v2712_v45 }
  0xef   : > { %898 = vmatmul.bf16.gmra.mxu1 %v2701_v57  ;;  %v2953_v59 = vor.u32 %v3225_v56, %v2952_v55  ;;  %v2728_v56 = vld [vmem:[%s3767_s10 + $0xd0] sm:$0xf] }
  0xf0   : > { %v1115_v63 = vmax.f32 %v1035_v60, 0.0  ;;  %987 = vmatmul.bf16.gmra.mxu2 %v2697_v52  ;;  %v1116_v11 = vmax.f32 %v860_v61, 0.0  ;;  %v2888_v52 = vld [vmem:[#allocation8 + $0x10] sm:$0xf] }
  0xf1   : > { %1076 = vmatmul.bf16.gmra.mxu3 %v2701_v57  ;;  %v2889_v54 = vor.u32 %v3209_v53, %v2888_v52  ;;  %1501 = vmatpush.bf16.msrb.mxu1 %v2953_v59  ;;  %v2730_v59 = vld [vmem:[%s3767_s10 + $0xd8] sm:$0xf0] }
  0xf2   : > { %v3832_v0 = vpack.c.bf16 %v1115_v63, %v1113_v62 }
  0xf3   : > { %v948_v1 = vpop.f32.mrf.mxu2  ;;  %v772_v4 = vpop.f32.mrf.mxu0  ;;  %1412 = vmatpush.bf16.msrb.mxu0 %v2889_v54 }
  0xf4   : > { %v949_v2 = vadd.f32 %v948_v1, %v3820_v24  ;;  %v1037_v3 = vpop.f32.mrf.mxu3  ;;  %v773_v5 = vadd.f32 %v772_v4, %v3815_v15  ;;  %v861_v6 = vpop.f32.mrf.mxu1  ;;  %v2717_v1 = vor.u32 %v3164_v47, %v2714_v48 }
  0xf6   : > { %v1038_v7 = vadd.f32 %v1037_v3, %v949_v2  ;;  %v862_v8 = vadd.f32 %v861_v6, %v773_v5 }
  0xf8   : > { %v1118_v12 = vmax.f32 %v862_v8, 0.0  ;;  %v1117_v28 = vmax.f32 %v1038_v7, 0.0 }
  0xfa   : > { %v3840_v18 = vpack.c.bf16 %v1118_v12, %v1116_v11 }
  0xfb   : > { %v950_v16 = vpop.f32.mrf.mxu2  ;;  %v775_v21 = vpop.f32.mrf.mxu0 }
  0xfc   : > { %v951_v19 = vadd.f32 %v950_v16, %v3820_v24  ;;  %v1039_v20 = vpop.f32.mrf.mxu3  ;;  %v776_v23 = vadd.f32 %v775_v21, %v3815_v15  ;;  %v864_v25 = vpop.f32.mrf.mxu1 }
  0xfe   : > { %v1040_v26 = vadd.f32 %v1039_v20, %v951_v19  ;;  %v865_v27 = vadd.f32 %v864_v25, %v776_v23  ;;  %814 = vmatmul.bf16.gmra.mxu0 %v2705_v17  ;;  %v2720_v19 = vld [vmem:[%s3767_s10 + $0xc0] sm:$0xf]  ;;  %v3167_v20 = vld [vmem:[%s3767_s10 + $0xc4] sm:$0xf0]  ;;  %v3166_v23 = vld [vmem:[%s3767_s10 + $0xc4] sm:$0xf] }
  0xff   : > { %903 = vmatmul.bf16.gmra.mxu1 %v2709_v22  ;;  %v2722_v25 = vld [vmem:[%s3767_s10 + $0xc8] sm:$0xf0] }
 0x100   : > { %v1119_v29 = vmax.f32 %v1040_v26, 0.0  ;;  %992 = vmatmul.bf16.gmra.mxu2 %v2705_v17  ;;  %v1120_v49 = vmax.f32 %v865_v27, 0.0  ;;  %v2721_v27 = vor.u32 %v3167_v20, %v2720_v19  ;;  %v2725_v32 = vor.u32 %v3166_v23, %v2722_v25 }
 0x101   : > { %1081 = vmatmul.bf16.gmra.mxu3 %v2709_v22 }
 0x102   : > { %v3844_v35 = vpack.c.bf16 %v1119_v29, %v1117_v28 }
 0x103   : > { %v953_v36 = vpop.f32.mrf.mxu2  ;;  %v777_v40 = vpop.f32.mrf.mxu0 }
 0x104   : > { %v954_v38 = vadd.f32 %v953_v36, %v3820_v24  ;;  %v1042_v39 = vpop.f32.mrf.mxu3  ;;  %v778_v41 = vadd.f32 %v777_v40, %v3815_v15  ;;  %v866_v42 = vpop.f32.mrf.mxu1  ;;  %v3206_v40 = vld [vmem:[#allocation8 + $0x4] sm:$0xf] }
 0x106   : > { %v1043_v43 = vadd.f32 %v1042_v39, %v954_v38  ;;  %v867_v44 = vadd.f32 %v866_v42, %v778_v41  ;;  %v2882_v41 = vld [vmem:[#allocation8 + $0x8] sm:$0xf0] }
 0x107   : > { %v2885_v42 = vor.u32 %v3206_v40, %v2882_v41 }
 0x108   : > { %v1122_v51 = vmax.f32 %v867_v44, 0.0  ;;  %v1121_v6 = vmax.f32 %v1043_v43, 0.0  ;;  %v3222_v43 = vld [vmem:[#allocation8 + $0x84] sm:$0xf]  ;;  %v2946_v44 = vld [vmem:[#allocation8 + $0x88] sm:$0xf0] }
 0x109   : > { %v2949_v47 = vor.u32 %v3222_v43, %v2946_v44  ;;  %1591 = vmatpush.bf16.msrb.mxu2 %v2885_v42 }
 0x10a   : > { %v3852_v60 = vpack.c.bf16 %v1122_v51, %v1120_v49 }
 0x10b   : > { %v955_v57 = vpop.f32.mrf.mxu2  ;;  %v780_v63 = vpop.f32.mrf.mxu0  ;;  %1680 = vmatpush.bf16.msrb.mxu3 %v2949_v47 }
 0x10c   : > { %v956_v61 = vadd.f32 %v955_v57, %v3820_v24  ;;  %v1044_v62 = vpop.f32.mrf.mxu3  ;;  %v781_v2 = vadd.f32 %v780_v63, %v3815_v15  ;;  %v869_v3 = vpop.f32.mrf.mxu1  ;;  %v3169_v57 = vld [vmem:[%s3767_s10 + $0xd4] sm:$0xf0]  ;;  %v2880_v63 = vld [vmem:[#allocation8] sm:$0xf] }
 0x10e   : > { %v1045_v4 = vadd.f32 %v1044_v62, %v956_v61  ;;  %v870_v5 = vadd.f32 %v869_v3, %v781_v2  ;;  %819 = vmatmul.bf16.gmra.mxu0 %v2713_v58  ;;  %v2944_v3 = vld [vmem:[#allocation8 + $0x80] sm:$0xf] }
 0x10f   : > { %908 = vmatmul.bf16.gmra.mxu1 %v2717_v1 }
 0x110   : > { %v1123_v7 = vmax.f32 %v1045_v4, 0.0  ;;  %997 = vmatmul.bf16.gmra.mxu2 %v2713_v58  ;;  %v1124_v21 = vmax.f32 %v870_v5, 0.0  ;;  %v3168_v58 = vld [vmem:[%s3767_s10 + $0xd4] sm:$0xf]  ;;  %v3223_v4 = vld [vmem:[#allocation8 + $0x84] sm:$0xf0] }
 0x111   : > { %1086 = vmatmul.bf16.gmra.mxu3 %v2717_v1  ;;  %v3207_v1 = vld [vmem:[#allocation8 + $0x4] sm:$0xf0] }
 0x112   : > { %v3856_v8 = vpack.c.bf16 %v1123_v7, %v1121_v6  ;;  %v2881_v2 = vor.u32 %v3207_v1, %v2880_v63  ;;  %v2729_v6 = vor.u32 %v3169_v57, %v2728_v56  ;;  %v2945_v7 = vor.u32 %v3223_v4, %v2944_v3  ;;  %v3066_v56 = vld [vmem:[#allocation10 + $0x78] sm:$0xf0] }
 0x113   : > { %v958_v9 = vpop.f32.mrf.mxu2  ;;  %v782_v12 = vpop.f32.mrf.mxu0 }
 0x114   : > { %v959_v10 = vadd.f32 %v958_v9, %v3820_v24  ;;  %v1047_v11 = vpop.f32.mrf.mxu3  ;;  %v783_v13 = vadd.f32 %v782_v12, %v3815_v15  ;;  %v871_v14 = vpop.f32.mrf.mxu1  ;;  %1413 = vmatpush.bf16.msrb.mxu0 %v2881_v2  ;;  %1502 = vmatpush.bf16.msrb.mxu1 %v2945_v7 }
 0x116   : > { %v1048_v16 = vadd.f32 %v1047_v11, %v959_v10  ;;  %v872_v17 = vadd.f32 %v871_v14, %v783_v13  ;;  %v2733_v13 = vor.u32 %v3168_v58, %v2730_v59  ;;  %v3268_v58 = vld [vmem:[#allocation10 + $0xf4] sm:$0xf]  ;;  %v3130_v59 = vld [vmem:[#allocation10 + $0xf8] sm:$0xf0] }
 0x117   : > { %v3133_v63 = vor.u32 %v3268_v58, %v3130_v59 }
 0x118   : > { %v1126_v22 = vmax.f32 %v872_v17, 0.0  ;;  %v1125_v38 = vmax.f32 %v1048_v16, 0.0 }
 0x119   : > { %2323 = vmatpush.bf16.msra.mxu3 %v3133_v63 }
 0x11a   : > { %v3864_v28 = vpack.c.bf16 %v1126_v22, %v1124_v21 }
 0x11b   : > { %v960_v26 = vpop.f32.mrf.mxu2  ;;  %v785_v31 = vpop.f32.mrf.mxu0 }
 0x11c   : > { %v961_v29 = vadd.f32 %v960_v26, %v3820_v24  ;;  %v1049_v30 = vpop.f32.mrf.mxu3  ;;  %v786_v33 = vadd.f32 %v785_v31, %v3815_v15  ;;  %v874_v34 = vpop.f32.mrf.mxu1 }
 0x11e   : > { %v1050_v36 = vadd.f32 %v1049_v30, %v961_v29  ;;  %v875_v37 = vadd.f32 %v874_v34, %v786_v33  ;;  %824 = vmatmul.bf16.gmra.mxu0 %v2721_v27  ;;  %v2736_v33 = vld [vmem:[%s3767_s10 + $0xe0] sm:$0xf]  ;;  %v3171_v34 = vld [vmem:[%s3767_s10 + $0xe4] sm:$0xf0] }
 0x11f   : > { %913 = vmatmul.bf16.gmra.mxu1 %v2725_v32  ;;  %v2737_v41 = vor.u32 %v3171_v34, %v2736_v33 }
 0x120   : > { %v1127_v39 = vmax.f32 %v1050_v36, 0.0  ;;  %1002 = vmatmul.bf16.gmra.mxu2 %v2721_v27  ;;  %v1128_v61 = vmax.f32 %v875_v37, 0.0 }
 0x121   : > { %1091 = vmatmul.bf16.gmra.mxu3 %v2725_v32 }
 0x122   : > { %v3868_v45 = vpack.c.bf16 %v1127_v39, %v1125_v38  ;;  %v3170_v38 = vld [vmem:[%s3767_s10 + $0xe4] sm:$0xf]  ;;  %v2738_v39 = vld [vmem:[%s3767_s10 + $0xe8] sm:$0xf0] }
 0x123   : > { %v963_v46 = vpop.f32.mrf.mxu2  ;;  %v787_v51 = vpop.f32.mrf.mxu0  ;;  %v2741_v47 = vor.u32 %v3170_v38, %v2738_v39 }
 0x124   : > { %v964_v48 = vadd.f32 %v963_v46, %v3820_v24  ;;  %v1052_v49 = vpop.f32.mrf.mxu3  ;;  %v788_v52 = vadd.f32 %v787_v51, %v3815_v15  ;;  %v876_v53 = vpop.f32.mrf.mxu1 }
 0x126   : > { %v1053_v54 = vadd.f32 %v1052_v49, %v964_v48  ;;  %v877_v55 = vadd.f32 %v876_v53, %v788_v52 }
 0x128   : > { %v1130_v62 = vmax.f32 %v877_v55, 0.0  ;;  %v1129_v20 = vmax.f32 %v1053_v54, 0.0  ;;  %v3252_v55 = vld [vmem:[#allocation10 + $0x74] sm:$0xf] }
 0x129   : > { %v3069_v57 = vor.u32 %v3252_v55, %v3066_v56 }
 0x12a   : > { %v3876_v9 = vpack.c.bf16 %v1130_v62, %v1128_v61 }
 0x12b   : > { %v965_v5 = vpop.f32.mrf.mxu2  ;;  %v790_v12 = vpop.f32.mrf.mxu0  ;;  %2234 = vmatpush.bf16.msra.mxu2 %v3069_v57 }
 0x12c   : > { %v966_v10 = vadd.f32 %v965_v5, %v3820_v24  ;;  %v1054_v11 = vpop.f32.mrf.mxu3  ;;  %v791_v14 = vadd.f32 %v790_v12, %v3815_v15  ;;  %v879_v16 = vpop.f32.mrf.mxu1  ;;  %v3172_v12 = vld [vmem:[%s3767_s10 + $0xf4] sm:$0xf] }
 0x12e   : > { %v1055_v17 = vadd.f32 %v1054_v11, %v966_v10  ;;  %v880_v19 = vadd.f32 %v879_v16, %v791_v14  ;;  %829 = vmatmul.bf16.gmra.mxu0 %v2729_v6  ;;  %v2744_v10 = vld [vmem:[%s3767_s10 + $0xf0] sm:$0xf]  ;;  %v3173_v11 = vld [vmem:[%s3767_s10 + $0xf4] sm:$0xf0] }
 0x12f   : > { %918 = vmatmul.bf16.gmra.mxu1 %v2733_v13 }
 0x130   : > { %v1131_v21 = vmax.f32 %v1055_v17, 0.0  ;;  %1007 = vmatmul.bf16.gmra.mxu2 %v2729_v6  ;;  %v1132_v36 = vmax.f32 %v880_v19, 0.0  ;;  %v3064_v17 = vld [vmem:[#allocation10 + $0x70] sm:$0xf]  ;;  %v3253_v19 = vld [vmem:[#allocation10 + $0x74] sm:$0xf0] }
 0x131   : > { %1096 = vmatmul.bf16.gmra.mxu3 %v2733_v13  ;;  %v2746_v13 = vld [vmem:[%s3767_s10 + $0xf8] sm:$0xf0]  ;;  %s3529_s10 = scalar_lea.hbm %s3528_s1, 512 }
 0x132   : > { %v3880_v22 = vpack.c.bf16 %v1131_v21, %v1129_v20  ;;  %v3065_v20 = vor.u32 %v3253_v19, %v3064_v17  ;;  %v3128_v21 = vld [vmem:[#allocation10 + $0xf0] sm:$0xf]  ;;  %v2749_v33 = vor.u32 %v3172_v12, %v2746_v13  ;;  %p3530_p1 = scmp.ne.s32.totalorder %s3528_s1, %s3529_s10  ;;  %p3535_p2 = scmp.lt.s32.totalorder %s3533_s19, %s3529_s10 }
 0x133   : > { %v968_v23 = vpop.f32.mrf.mxu2  ;;  %v792_v27 = vpop.f32.mrf.mxu0 }
 0x134   : > { %v969_v25 = vadd.f32 %v968_v23, %v3820_v24  ;;  %v1057_v26 = vpop.f32.mrf.mxu3  ;;  %v793_v29 = vadd.f32 %v792_v27, %v3815_v15  ;;  %v881_v30 = vpop.f32.mrf.mxu1  ;;  %v3269_v23 = vld [vmem:[#allocation10 + $0xf4] sm:$0xf0]  ;;  %2056 = vmatpush.bf16.msra.mxu0 %v3065_v20  ;;  %p3531_p4 = pnand %p3530_p1, %p3730_p3  ;;  %p3536_p9 = por %p3535_p2, %p3534_p11 }
 0x135   : > { %v3129_v27 = vor.u32 %v3269_v23, %v3128_v21 }
 0x136   : > { %v1058_v31 = vadd.f32 %v1057_v26, %v969_v25  ;;  %v882_v32 = vadd.f32 %v881_v30, %v793_v29  ;;  %v2745_v26 = vor.u32 %v3173_v11, %v2744_v10  ;;  %v3266_v10 = vld [vmem:[#allocation10 + $0xe4] sm:$0xf]  ;;  %v3122_v11 = vld [vmem:[#allocation10 + $0xe8] sm:$0xf0]  ;;  %p3532_p8 = pneg %p3531_p4 }
 0x137   : > { %2145 = vmatpush.bf16.msra.mxu1 %v3129_v27  ;;  %v3251_v27 = vld [vmem:[#allocation10 + $0x64] sm:$0xf0] }
 0x138   : > { %v1134_v37 = vmax.f32 %v882_v32, 0.0  ;;  %v1133_v53 = vmax.f32 %v1058_v31, 0.0  ;;  %p3537_p10 = pnand %p3536_p9, %p3532_p8 }
 0x13a   : > { %v3888_v42 = vpack.c.bf16 %v1134_v37, %v1132_v36 }
 0x13b   : > { %v970_v40 = vpop.f32.mrf.mxu2  ;;  %v795_v46 = vpop.f32.mrf.mxu0 }
 0x13c   : > { %v971_v43 = vadd.f32 %v970_v40, %v3820_v24  ;;  %v1059_v44 = vpop.f32.mrf.mxu3  ;;  %v796_v48 = vadd.f32 %v795_v46, %v3815_v15  ;;  %v884_v49 = vpop.f32.mrf.mxu1 }
 0x13e   : > { %v1060_v51 = vadd.f32 %v1059_v44, %v971_v43  ;;  %v885_v52 = vadd.f32 %v884_v49, %v796_v48  ;;  %834 = vmatmul.bf16.gmra.mxu0 %v2737_v41 }
 0x13f   : > { %923 = vmatmul.bf16.gmra.mxu1 %v2741_v47 }
 0x140   : > { %v1135_v54 = vmax.f32 %v1060_v51, 0.0  ;;  %1012 = vmatmul.bf16.gmra.mxu2 %v2737_v41  ;;  %v1136_v14 = vmax.f32 %v885_v52, 0.0 }
 0x141   : > { %1101 = vmatmul.bf16.gmra.mxu3 %v2741_v47 }
 0x142   : > { %v3892_v61 = vpack.c.bf16 %v1135_v54, %v1133_v53 }
 0x143   : > { %v973_v62 = vpop.f32.mrf.mxu2  ;;  %v797_v3 = vpop.f32.mrf.mxu0 }
 0x144   : > { %v974_v1 = vadd.f32 %v973_v62, %v3820_v24  ;;  %v1062_v2 = vpop.f32.mrf.mxu3  ;;  %v798_v4 = vadd.f32 %v797_v3, %v3815_v15  ;;  %v886_v5 = vpop.f32.mrf.mxu1 }
 0x146   : > { %v1063_v6 = vadd.f32 %v1062_v2, %v974_v1  ;;  %v887_v7 = vadd.f32 %v886_v5, %v798_v4  ;;  %v3250_v5 = vld [vmem:[#allocation10 + $0x64] sm:$0xf] }
 0x148   : > { %v1138_v16 = vmax.f32 %v887_v7, 0.0  ;;  %v1137_v39 = vmax.f32 %v1063_v6, 0.0  ;;  %v3058_v6 = vld [vmem:[#allocation10 + $0x68] sm:$0xf0] }
 0x149   : > { %v3061_v7 = vor.u32 %v3250_v5, %v3058_v6 }
 0x14a   : > { %v3900_v29 = vpack.c.bf16 %v1138_v16, %v1136_v14  ;;  %v3125_v14 = vor.u32 %v3266_v10, %v3122_v11 }
 0x14b   : > { %v975_v25 = vpop.f32.mrf.mxu2  ;;  %v800_v32 = vpop.f32.mrf.mxu0  ;;  %2235 = vmatpush.bf16.msra.mxu2 %v3061_v7 }
 0x14c   : > { %v976_v30 = vadd.f32 %v975_v25, %v3820_v24  ;;  %v1064_v31 = vpop.f32.mrf.mxu3  ;;  %v801_v34 = vadd.f32 %v800_v32, %v3815_v15  ;;  %v889_v36 = vpop.f32.mrf.mxu1  ;;  %2324 = vmatpush.bf16.msra.mxu3 %v3125_v14  ;;  %v3267_v32 = vld [vmem:[#allocation10 + $0xe4] sm:$0xf0]  ;;  %v3050_v14 = vld [vmem:[#allocation10 + $0x58] sm:$0xf0] }
 0x14e   : > { %v1065_v37 = vadd.f32 %v1064_v31, %v976_v30  ;;  %v890_v38 = vadd.f32 %v889_v36, %v801_v34  ;;  %839 = vmatmul.bf16.gmra.mxu0 %v2745_v26  ;;  %v3120_v31 = vld [vmem:[#allocation10 + $0xe0] sm:$0xf] }
 0x14f   : > { %928 = vmatmul.bf16.gmra.mxu1 %v2749_v33  ;;  %v3121_v34 = vor.u32 %v3267_v32, %v3120_v31  ;;  %v3048_v32 = vld [vmem:[#allocation10 + $0x50] sm:$0xf] }
 0x150   : > { %v1139_v40 = vmax.f32 %v1065_v37, 0.0  ;;  %1017 = vmatmul.bf16.gmra.mxu2 %v2745_v26  ;;  %v1140_v53 = vmax.f32 %v890_v38, 0.0  ;;  %v3056_v26 = vld [vmem:[#allocation10 + $0x60] sm:$0xf] }
 0x151   : > { %1106 = vmatmul.bf16.gmra.mxu3 %v2749_v33  ;;  %v3057_v30 = vor.u32 %v3251_v27, %v3056_v26  ;;  %2146 = vmatpush.bf16.msra.mxu1 %v3121_v34 }
 0x152   : > { %v3904_v41 = vpack.c.bf16 %v1139_v40, %v1137_v39 }
 0x153   : > { %v978_v43 = vpop.f32.mrf.mxu2  ;;  %v802_v47 = vpop.f32.mrf.mxu0  ;;  %2057 = vmatpush.bf16.msra.mxu0 %v3057_v30 }
 0x154   : > { %v979_v44 = vadd.f32 %v978_v43, %v3820_v24  ;;  %v1067_v46 = vpop.f32.mrf.mxu3  ;;  %v803_v48 = vadd.f32 %v802_v47, %v3815_v15  ;;  %v891_v49 = vpop.f32.mrf.mxu1 }
 0x156   : > { %v1068_v51 = vadd.f32 %v1067_v46, %v979_v44  ;;  %v892_v52 = vadd.f32 %v891_v49, %v803_v48 }
 0x158   : > { %v1142_v54 = vmax.f32 %v892_v52, 0.0  ;;  %v1141_v3 = vmax.f32 %v1068_v51, 0.0 }
 0x15a   : > { %v3908_v56 = vpack.c.bf16 %v1142_v54, %v1140_v53 }
 0x15b   : > { %v980_v55 = vpop.f32.mrf.mxu2  ;;  %v805_v59 = vpop.f32.mrf.mxu0 }
 0x15c   : > { %v981_v57 = vadd.f32 %v980_v55, %v3820_v24  ;;  %v1069_v58 = vpop.f32.mrf.mxu3  ;;  %v806_v62 = vadd.f32 %v805_v59, %v3815_v15  ;;  %v894_v63 = vpop.f32.mrf.mxu1 }
 0x15e   : > { %v1070_v1 = vadd.f32 %v1069_v58, %v981_v57  ;;  %v895_v2 = vadd.f32 %v894_v63, %v806_v62  ;;  %1414 = vmatmul.bf16.vlgmr.msrb.gmra.mxu0 %v3828_v50 }
 0x15f   : > { %1503 = vmatmul.bf16.vlgmr.msrb.gmra.mxu1 %v3832_v0 }
 0x160   : > { %v1143_v4 = vmax.f32 %v1070_v1, 0.0  ;;  %1592 = vmatmul.bf16.vlgmr.msrb.gmra.mxu2 %v3828_v50  ;;  %v1144_v23 = vmax.f32 %v895_v2, 0.0 }
 0x161   : > { %1681 = vmatmul.bf16.vlgmr.msrb.gmra.mxu3 %v3832_v0 }
 0x162   : > { %v3916_v12 = vpack.c.bf16 %v1143_v4, %v1141_v3 }
 0x163   : > { %v983_v13 = vpop.f32.mrf.mxu2  ;;  %v807_v19 = vpop.f32.mrf.mxu0 }
 0x164   : > { %v984_v16 = vadd.f32 %v983_v13, %v3820_v24  ;;  %v1072_v17 = vpop.f32.mrf.mxu3  ;;  %v808_v20 = vadd.f32 %v807_v19, %v3815_v15  ;;  %v896_v21 = vpop.f32.mrf.mxu1  ;;  %v3248_v13 = vld [vmem:[#allocation10 + $0x54] sm:$0xf]  ;;  %v3114_v19 = vld [vmem:[#allocation10 + $0xd8] sm:$0xf0] }
 0x166   : > { %v1073_v50 = vadd.f32 %v1072_v17, %v984_v16  ;;  %v897_v0 = vadd.f32 %v896_v21, %v808_v20  ;;  %v3053_v16 = vor.u32 %v3248_v13, %v3050_v14  ;;  %v3264_v17 = vld [vmem:[#allocation10 + $0xd4] sm:$0xf] }
 0x168   : > { %v1146_v25 = vmax.f32 %v897_v0, 0.0  ;;  %v1145_v47 = vmax.f32 %v1073_v50, 0.0  ;;  %v3117_v50 = vor.u32 %v3264_v17, %v3114_v19  ;;  %2236 = vmatpush.bf16.msra.mxu2 %v3053_v16 }
 0x16a   : > { %v3920_v36 = vpack.c.bf16 %v1146_v25, %v1144_v23  ;;  %2325 = vmatpush.bf16.msra.mxu3 %v3117_v50  ;;  %v3042_v50 = vld [vmem:[#allocation10 + $0x48] sm:$0xf0] }
 0x16b   : > { %v985_v33 = vpop.f32.mrf.mxu2  ;;  %v810_v39 = vpop.f32.mrf.mxu0 }
 0x16c   : > { %v986_v37 = vadd.f32 %v985_v33, %v3820_v24  ;;  %v1074_v38 = vpop.f32.mrf.mxu3  ;;  %v811_v40 = vadd.f32 %v810_v39, %v3815_v15  ;;  %v899_v43 = vpop.f32.mrf.mxu1  ;;  %v3249_v33 = vld [vmem:[#allocation10 + $0x54] sm:$0xf0] }
 0x16d   : > { %v3049_v34 = vor.u32 %v3249_v33, %v3048_v32 }
 0x16e   : > { %v1075_v44 = vadd.f32 %v1074_v38, %v986_v37  ;;  %v900_v46 = vadd.f32 %v899_v43, %v811_v40  ;;  %1419 = vmatmul.bf16.gmra.mxu0 %v3840_v18  ;;  %v3112_v37 = vld [vmem:[#allocation10 + $0xd0] sm:$0xf]  ;;  %v3265_v38 = vld [vmem:[#allocation10 + $0xd4] sm:$0xf0] }
 0x16f   : > { %1508 = vmatmul.bf16.gmra.mxu1 %v3844_v35  ;;  %v3113_v40 = vor.u32 %v3265_v38, %v3112_v37  ;;  %2058 = vmatpush.bf16.msra.mxu0 %v3049_v34  ;;  %v3040_v38 = vld [vmem:[#allocation10 + $0x40] sm:$0xf] }
 0x170   : > { %v1147_v48 = vmax.f32 %v1075_v44, 0.0  ;;  %1597 = vmatmul.bf16.gmra.mxu2 %v3840_v18  ;;  %v1148_v62 = vmax.f32 %v900_v46, 0.0 }
 0x171   : > { %1686 = vmatmul.bf16.gmra.mxu3 %v3844_v35  ;;  %2147 = vmatpush.bf16.msra.mxu1 %v3113_v40 }
 0x172   : > { %v3928_v49 = vpack.c.bf16 %v1147_v48, %v1145_v47 }
 0x173   : > { %v988_v51 = vpop.f32.mrf.mxu2  ;;  %v812_v54 = vpop.f32.mrf.mxu0 }
 0x174   : > { %v989_v52 = vadd.f32 %v988_v51, %v3820_v24  ;;  %v1077_v53 = vpop.f32.mrf.mxu3  ;;  %v813_v55 = vadd.f32 %v812_v54, %v3815_v15  ;;  %v901_v57 = vpop.f32.mrf.mxu1 }
 0x176   : > { %v1078_v58 = vadd.f32 %v1077_v53, %v989_v52  ;;  %v902_v59 = vadd.f32 %v901_v57, %v813_v55 }
 0x178   : > { %v1150_v63 = vmax.f32 %v902_v59, 0.0  ;;  %v1149_v10 = vmax.f32 %v1078_v58, 0.0 }
 0x17a   : > { %v3932_v2 = vpack.c.bf16 %v1150_v63, %v1148_v62 }
 0x17b   : > { %v990_v1 = vpop.f32.mrf.mxu2  ;;  %v815_v3 = vpop.f32.mrf.mxu0 }
 0x17c   : > { %v991_v18 = vadd.f32 %v990_v1, %v3820_v24  ;;  %v1079_v35 = vpop.f32.mrf.mxu3  ;;  %v816_v4 = vadd.f32 %v815_v3, %v3815_v15  ;;  %v904_v5 = vpop.f32.mrf.mxu1 }
 0x17e   : > { %v1080_v6 = vadd.f32 %v1079_v35, %v991_v18  ;;  %v905_v7 = vadd.f32 %v904_v5, %v816_v4  ;;  %1424 = vmatmul.bf16.gmra.mxu0 %v3852_v60 }
 0x17f   : > { %1513 = vmatmul.bf16.gmra.mxu1 %v3856_v8 }
 0x180   : > { %v1151_v11 = vmax.f32 %v1080_v6, 0.0  ;;  %1602 = vmatmul.bf16.gmra.mxu2 %v3852_v60  ;;  %v1152_v30 = vmax.f32 %v905_v7, 0.0 }
 0x181   : > { %1691 = vmatmul.bf16.gmra.mxu3 %v3856_v8 }
 0x182   : > { %v3940_v20 = vpack.c.bf16 %v1151_v11, %v1149_v10 }
 0x183   : > { %v993_v21 = vpop.f32.mrf.mxu2  ;;  %v817_v25 = vpop.f32.mrf.mxu0 }
 0x184   : > { %v994_v0 = vadd.f32 %v993_v21, %v3820_v24  ;;  %v1082_v23 = vpop.f32.mrf.mxu3  ;;  %v818_v26 = vadd.f32 %v817_v25, %v3815_v15  ;;  %v906_v27 = vpop.f32.mrf.mxu1  ;;  %v3246_v21 = vld [vmem:[#allocation10 + $0x44] sm:$0xf]  ;;  %v3106_v25 = vld [vmem:[#allocation10 + $0xc8] sm:$0xf0] }
 0x186   : > { %v1083_v60 = vadd.f32 %v1082_v23, %v994_v0  ;;  %v907_v8 = vadd.f32 %v906_v27, %v818_v26  ;;  %v3045_v0 = vor.u32 %v3246_v21, %v3042_v50  ;;  %v3262_v23 = vld [vmem:[#allocation10 + $0xc4] sm:$0xf] }
 0x188   : > { %v1154_v31 = vmax.f32 %v907_v8, 0.0  ;;  %v1153_v54 = vmax.f32 %v1083_v60, 0.0  ;;  %v3109_v60 = vor.u32 %v3262_v23, %v3106_v25  ;;  %2237 = vmatpush.bf16.msra.mxu2 %v3045_v0 }
 0x18a   : > { %v3944_v43 = vpack.c.bf16 %v1154_v31, %v1152_v30  ;;  %2326 = vmatpush.bf16.msra.mxu3 %v3109_v60  ;;  %v3034_v60 = vld [vmem:[#allocation10 + $0x38] sm:$0xf0] }
 0x18b   : > { %v995_v39 = vpop.f32.mrf.mxu2  ;;  %v820_v47 = vpop.f32.mrf.mxu0 }
 0x18c   : > { %v996_v44 = vadd.f32 %v995_v39, %v3820_v24  ;;  %v1084_v46 = vpop.f32.mrf.mxu3  ;;  %v821_v48 = vadd.f32 %v820_v47, %v3815_v15  ;;  %v909_v51 = vpop.f32.mrf.mxu1  ;;  %v3247_v39 = vld [vmem:[#allocation10 + $0x44] sm:$0xf0] }
 0x18d   : > { %v3041_v40 = vor.u32 %v3247_v39, %v3040_v38 }
 0x18e   : > { %v1085_v52 = vadd.f32 %v1084_v46, %v996_v44  ;;  %v910_v53 = vadd.f32 %v909_v51, %v821_v48  ;;  %1429 = vmatmul.bf16.gmra.mxu0 %v3864_v28  ;;  %v3104_v44 = vld [vmem:[#allocation10 + $0xc0] sm:$0xf]  ;;  %v3263_v46 = vld [vmem:[#allocation10 + $0xc4] sm:$0xf0] }
 0x18f   : > { %1518 = vmatmul.bf16.gmra.mxu1 %v3868_v45  ;;  %v3105_v48 = vor.u32 %v3263_v46, %v3104_v44  ;;  %2059 = vmatpush.bf16.msra.mxu0 %v3041_v40 }
 0x190   : > { %v1155_v55 = vmax.f32 %v1085_v52, 0.0  ;;  %1607 = vmatmul.bf16.gmra.mxu2 %v3864_v28  ;;  %v1156_v4 = vmax.f32 %v910_v53, 0.0 }
 0x191   : > { %1696 = vmatmul.bf16.gmra.mxu3 %v3868_v45  ;;  %2148 = vmatpush.bf16.msra.mxu1 %v3105_v48  ;;  %v3245_v48 = vld [vmem:[#allocation10 + $0x34] sm:$0xf0] }
 0x192   : > { %v3952_v57 = vpack.c.bf16 %v1155_v55, %v1153_v54 }
 0x193   : > { %v998_v58 = vpop.f32.mrf.mxu2  ;;  %v822_v63 = vpop.f32.mrf.mxu0 }
 0x194   : > { %v999_v59 = vadd.f32 %v998_v58, %v3820_v24  ;;  %v1087_v62 = vpop.f32.mrf.mxu3  ;;  %v823_v1 = vadd.f32 %v822_v63, %v3815_v15  ;;  %v911_v18 = vpop.f32.mrf.mxu1 }
 0x196   : > { %v1088_v35 = vadd.f32 %v1087_v62, %v999_v59  ;;  %v912_v3 = vadd.f32 %v911_v18, %v823_v1 }
 0x198   : > { %v1158_v5 = vmax.f32 %v912_v3, 0.0  ;;  %v1157_v17 = vmax.f32 %v1088_v35, 0.0 }
 0x19a   : > { %v3956_v7 = vpack.c.bf16 %v1158_v5, %v1156_v4 }
 0x19b   : > { %v1000_v6 = vpop.f32.mrf.mxu2  ;;  %v825_v10 = vpop.f32.mrf.mxu0 }
 0x19c   : > { %v1001_v28 = vadd.f32 %v1000_v6, %v3820_v24  ;;  %v1089_v45 = vpop.f32.mrf.mxu3  ;;  %v826_v11 = vadd.f32 %v825_v10, %v3815_v15  ;;  %v914_v13 = vpop.f32.mrf.mxu1 }
 0x19e   : > { %v1090_v14 = vadd.f32 %v1089_v45, %v1001_v28  ;;  %v915_v16 = vadd.f32 %v914_v13, %v826_v11  ;;  %1434 = vmatmul.bf16.gmra.mxu0 %v3876_v9 }
 0x19f   : > { %1523 = vmatmul.bf16.gmra.mxu1 %v3880_v22 }
 0x1a0   : > { %v1159_v19 = vmax.f32 %v1090_v14, 0.0  ;;  %1612 = vmatmul.bf16.gmra.mxu2 %v3876_v9  ;;  %v1160_v34 = vmax.f32 %v915_v16, 0.0 }
 0x1a1   : > { %1701 = vmatmul.bf16.gmra.mxu3 %v3880_v22 }
 0x1a2   : > { %v3964_v26 = vpack.c.bf16 %v1159_v19, %v1157_v17 }
 0x1a3   : > { %v1003_v27 = vpop.f32.mrf.mxu2  ;;  %v827_v31 = vpop.f32.mrf.mxu0 }
 0x1a4   : > { %v1004_v8 = vadd.f32 %v1003_v27, %v3820_v24  ;;  %v1092_v30 = vpop.f32.mrf.mxu3  ;;  %v828_v32 = vadd.f32 %v827_v31, %v3815_v15  ;;  %v916_v33 = vpop.f32.mrf.mxu1  ;;  %v3244_v27 = vld [vmem:[#allocation10 + $0x34] sm:$0xf]  ;;  %v3098_v31 = vld [vmem:[#allocation10 + $0xb8] sm:$0xf0] }
 0x1a6   : > { %v1093_v9 = vadd.f32 %v1092_v30, %v1004_v8  ;;  %v917_v22 = vadd.f32 %v916_v33, %v828_v32  ;;  %v3037_v8 = vor.u32 %v3244_v27, %v3034_v60  ;;  %v3260_v30 = vld [vmem:[#allocation10 + $0xb4] sm:$0xf] }
 0x1a8   : > { %v1162_v37 = vmax.f32 %v917_v22, 0.0  ;;  %v1161_v63 = vmax.f32 %v1093_v9, 0.0  ;;  %v3101_v9 = vor.u32 %v3260_v30, %v3098_v31  ;;  %2238 = vmatpush.bf16.msra.mxu2 %v3037_v8 }
 0x1aa   : > { %v3968_v51 = vpack.c.bf16 %v1162_v37, %v1160_v34  ;;  %2327 = vmatpush.bf16.msra.mxu3 %v3101_v9 }
 0x1ab   : > { %v1005_v47 = vpop.f32.mrf.mxu2  ;;  %v830_v54 = vpop.f32.mrf.mxu0 }
 0x1ac   : > { %v1006_v52 = vadd.f32 %v1005_v47, %v3820_v24  ;;  %v1094_v53 = vpop.f32.mrf.mxu3  ;;  %v831_v55 = vadd.f32 %v830_v54, %v3815_v15  ;;  %v919_v58 = vpop.f32.mrf.mxu1  ;;  %v3032_v47 = vld [vmem:[#allocation10 + $0x30] sm:$0xf] }
 0x1ae   : > { %v1095_v59 = vadd.f32 %v1094_v53, %v1006_v52  ;;  %v920_v62 = vadd.f32 %v919_v58, %v831_v55  ;;  %1439 = vmatmul.bf16.gmra.mxu0 %v3888_v42  ;;  %v3096_v52 = vld [vmem:[#allocation10 + $0xb0] sm:$0xf] }
 0x1af   : > { %1528 = vmatmul.bf16.gmra.mxu1 %v3892_v61 }
 0x1b0   : > { %v1163_v1 = vmax.f32 %v1095_v59, 0.0  ;;  %1617 = vmatmul.bf16.gmra.mxu2 %v3888_v42  ;;  %v1164_v11 = vmax.f32 %v920_v62, 0.0  ;;  %v3033_v59 = vor.u32 %v3245_v48, %v3032_v47  ;;  %v3261_v62 = vld [vmem:[#allocation10 + $0xb4] sm:$0xf0] }
 0x1b1   : > { %1706 = vmatmul.bf16.gmra.mxu3 %v3892_v61 }
 0x1b2   : > { %v3976_v18 = vpack.c.bf16 %v1163_v1, %v1161_v63  ;;  %2060 = vmatpush.bf16.msra.mxu0 %v3033_v59 }
 0x1b3   : > { %v1008_v35 = vpop.f32.mrf.mxu2  ;;  %v832_v5 = vpop.f32.mrf.mxu0 }
 0x1b4   : > { %v1009_v3 = vadd.f32 %v1008_v35, %v3820_v24  ;;  %v1097_v4 = vpop.f32.mrf.mxu3  ;;  %v833_v6 = vadd.f32 %v832_v5, %v3815_v15  ;;  %v921_v28 = vpop.f32.mrf.mxu1  ;;  %v3097_v35 = vor.u32 %v3261_v62, %v3096_v52  ;;  %v3088_v62 = vld [vmem:[#allocation10 + $0xa0] sm:$0xf] }
 0x1b6   : > { %v1098_v45 = vadd.f32 %v1097_v4, %v1009_v3  ;;  %v922_v10 = vadd.f32 %v921_v28, %v833_v6  ;;  %2149 = vmatpush.bf16.msra.mxu1 %v3097_v35 }
 0x1b8   : > { %v1166_v13 = vmax.f32 %v922_v10, 0.0  ;;  %v1165_v23 = vmax.f32 %v1098_v45, 0.0 }
 0x1ba   : > { %v3980_v16 = vpack.c.bf16 %v1166_v13, %v1164_v11 }
 0x1bb   : > { %v1010_v14 = vpop.f32.mrf.mxu2  ;;  %v835_v17 = vpop.f32.mrf.mxu0 }
 0x1bc   : > { %v1011_v42 = vadd.f32 %v1010_v14, %v3820_v24  ;;  %v1099_v61 = vpop.f32.mrf.mxu3  ;;  %v836_v19 = vadd.f32 %v835_v17, %v3815_v15  ;;  %v924_v21 = vpop.f32.mrf.mxu1  ;;  %v1240_v17 = vld [vmem:[%s4416_s4] sm:$0x3] }
 0x1bd   : > { %v4016_v9 = vperm.slane %v1240_v17, 1 }
 0x1be   : > { %v1100_v50 = vadd.f32 %v1099_v61, %v1011_v42  ;;  %v925_v0 = vadd.f32 %v924_v21, %v836_v19  ;;  %1444 = vmatmul.bf16.gmra.mxu0 %v3900_v29 }
 0x1bf   : > { %1533 = vmatmul.bf16.gmra.mxu1 %v3904_v41 }
 0x1c0   : > { %v1167_v25 = vmax.f32 %v1100_v50, 0.0  ;;  %1622 = vmatmul.bf16.gmra.mxu2 %v3900_v29  ;;  %v1168_v40 = vmax.f32 %v925_v0, 0.0  ;;  %v4007_v50 = vperm.slane %v1240_v17, 0 }
 0x1c1   : > { %1711 = vmatmul.bf16.gmra.mxu3 %v3904_v41 }
 0x1c2   : > { %v3988_v32 = vpack.c.bf16 %v1167_v25, %v1165_v23 }
 0x1c3   : > { %v1013_v33 = vpop.f32.mrf.mxu2  ;;  %v837_v37 = vpop.f32.mrf.mxu0 }
 0x1c4   : > { %v1014_v22 = vadd.f32 %v1013_v33, %v3820_v24  ;;  %v1102_v34 = vpop.f32.mrf.mxu3  ;;  %v838_v38 = vadd.f32 %v837_v37, %v3815_v15  ;;  %v926_v39 = vpop.f32.mrf.mxu1  ;;  %v3258_v37 = vld [vmem:[#allocation10 + $0xa4] sm:$0xf] }
 0x1c6   : > { %v1103_v29 = vadd.f32 %v1102_v34, %v1014_v22  ;;  %v927_v41 = vadd.f32 %v926_v39, %v838_v38  ;;  %v3026_v22 = vld [vmem:[#allocation10 + $0x28] sm:$0xf0] }
 0x1c7   : > { %v3090_v38 = vld [vmem:[#allocation10 + $0xa8] sm:$0xf0] }
 0x1c8   : > { %v1170_v44 = vmax.f32 %v927_v41, 0.0  ;;  %v1169_v5 = vmax.f32 %v1103_v29, 0.0  ;;  %v3093_v41 = vor.u32 %v3258_v37, %v3090_v38 }
 0x1ca   : > { %v3992_v53 = vpack.c.bf16 %v1170_v44, %v1168_v40  ;;  %2328 = vmatpush.bf16.msra.mxu3 %v3093_v41  ;;  %v3018_v41 = vld [vmem:[#allocation10 + $0x18] sm:$0xf0] }
 0x1cb   : > { %v1015_v46 = vpop.f32.mrf.mxu2  ;;  %v840_v58 = vpop.f32.mrf.mxu0 }
 0x1cc   : > { %v1016_v54 = vadd.f32 %v1015_v46, %v3820_v24  ;;  %v1104_v55 = vpop.f32.mrf.mxu3  ;;  %v841_v63 = vadd.f32 %v840_v58, %v3815_v15  ;;  %v929_v1 = vpop.f32.mrf.mxu1  ;;  %v3243_v58 = vld [vmem:[#allocation10 + $0x24] sm:$0xf0] }
 0x1ce   : > { %v1105_v3 = vadd.f32 %v1104_v55, %v1016_v54  ;;  %v930_v4 = vadd.f32 %v929_v1, %v841_v63  ;;  %1449 = vmatmul.bf16.gmra.mxu0 %v3908_v56  ;;  %v3024_v55 = vld [vmem:[#allocation10 + $0x20] sm:$0xf]  ;;  %v3259_v63 = vld [vmem:[#allocation10 + $0xa4] sm:$0xf0] }
 0x1cf   : > { %1538 = vmatmul.bf16.gmra.mxu1 %v3916_v12  ;;  %v3025_v59 = vor.u32 %v3243_v58, %v3024_v55 }
 0x1d0   : > { %v1171_v6 = vmax.f32 %v1105_v3, 0.0  ;;  %1627 = vmatmul.bf16.gmra.mxu2 %v3908_v56  ;;  %v1172_v21 = vmax.f32 %v930_v4, 0.0  ;;  %v3089_v3 = vor.u32 %v3259_v63, %v3088_v62  ;;  %v3016_v63 = vld [vmem:[#allocation10 + $0x10] sm:$0xf] }
 0x1d1   : > { %1716 = vmatmul.bf16.gmra.mxu3 %v3916_v12  ;;  %2061 = vmatpush.bf16.msra.mxu0 %v3025_v59 }
 0x1d2   : > { %v4000_v28 = vpack.c.bf16 %v1171_v6, %v1169_v5  ;;  %2150 = vmatpush.bf16.msra.mxu1 %v3089_v3 }
 0x1d3   : > { %v1018_v45 = vpop.f32.mrf.mxu2  ;;  %v842_v13 = vpop.f32.mrf.mxu0 }
 0x1d4   : > { %v1019_v10 = vadd.f32 %v1018_v45, %v3820_v24  ;;  %v1107_v11 = vpop.f32.mrf.mxu3  ;;  %v843_v14 = vadd.f32 %v842_v13, %v3815_v15  ;;  %v931_v42 = vpop.f32.mrf.mxu1 }
 0x1d6   : > { %v1108_v61 = vadd.f32 %v1107_v11, %v1019_v10  ;;  %v932_v19 = vadd.f32 %v931_v42, %v843_v14 }
 0x1d8   : > { %v1174_v56 = vmax.f32 %v932_v19, 0.0  ;;  %v1173_v31 = vmax.f32 %v1108_v61, 0.0 }
 0x1da   : > { %v4009_v0 = vpack.c.bf16 %v1174_v56, %v1172_v21 }
 0x1db   : > { %v1020_v12 = vpop.f32.mrf.mxu2  ;;  %v1415_v27 = vpop.f32.mrf.mxu0 }
 0x1dc   : > { %v1021_v23 = vadd.f32 %v1020_v12, %v3820_v24  ;;  %v1109_v25 = vpop.f32.mrf.mxu3  ;;  %v1416_v15 = vadd.f32 %v1415_v27, %v4007_v50  ;;  %v1504_v60 = vpop.f32.mrf.mxu1  ;;  %v3242_v24 = vld [vmem:[#allocation10 + $0x24] sm:$0xf] }
 0x1dd   : > { %v3029_v34 = vor.u32 %v3242_v24, %v3026_v22 }
 0x1de   : > { %v1110_v8 = vadd.f32 %v1109_v25, %v1021_v23  ;;  %v1505_v30 = vadd.f32 %v1504_v60, %v1416_v15  ;;  %1454 = vmatmul.bf16.gmra.mxu0 %v3920_v36 }
 0x1df   : > { %1543 = vmatmul.bf16.gmra.mxu1 %v3928_v49  ;;  %2239 = vmatpush.bf16.msra.mxu2 %v3029_v34 }
 0x1e0   : > { %v1175_v33 = vmax.f32 %v1110_v8, 0.0  ;;  %1632 = vmatmul.bf16.gmra.mxu2 %v3920_v36  ;;  %v1762_v52 = vmax.f32 %v1505_v30, 0.0 }
 0x1e1   : > { %1721 = vmatmul.bf16.gmra.mxu3 %v3928_v49 }
 0x1e2   : > { %v4019_v39 = vpack.c.bf16 %v1175_v33, %v1173_v31 }
 0x1e3   : > { %v1593_v29 = vpop.f32.mrf.mxu2  ;;  %v1417_v46 = vpop.f32.mrf.mxu0 }
 0x1e4   : > { %v1594_v40 = vadd.f32 %v1593_v29, %v4016_v9  ;;  %v1682_v44 = vpop.f32.mrf.mxu3  ;;  %v1418_v36 = vadd.f32 %v1417_v46, %v4007_v50  ;;  %v1506_v47 = vpop.f32.mrf.mxu1  ;;  %v3240_v29 = vld [vmem:[#allocation10 + $0x14] sm:$0xf]  ;;  %v3082_v46 = vld [vmem:[#allocation10 + $0x98] sm:$0xf0] }
 0x1e6   : > { %v1683_v48 = vadd.f32 %v1682_v44, %v1594_v40  ;;  %v1507_v49 = vadd.f32 %v1506_v47, %v1418_v36  ;;  %v3021_v40 = vor.u32 %v3240_v29, %v3018_v41  ;;  %v3256_v44 = vld [vmem:[#allocation10 + $0x94] sm:$0xf] }
 0x1e8   : > { %v1764_v54 = vmax.f32 %v1507_v49, 0.0  ;;  %v1763_v14 = vmax.f32 %v1683_v48, 0.0  ;;  %v3085_v48 = vor.u32 %v3256_v44, %v3082_v46  ;;  %2240 = vmatpush.bf16.msra.mxu2 %v3021_v40 }
 0x1ea   : > { %v4023_v1 = vpack.c.bf16 %v1764_v54, %v1762_v52  ;;  %2329 = vmatpush.bf16.msra.mxu3 %v3085_v48  ;;  %v3010_v48 = vld [vmem:[#allocation10 + $0x8] sm:$0xf0] }
 0x1eb   : > { %v1595_v35 = vpop.f32.mrf.mxu2  ;;  %v1420_v6 = vpop.f32.mrf.mxu0 }
 0x1ec   : > { %v1596_v4 = vadd.f32 %v1595_v35, %v4016_v9  ;;  %v1684_v5 = vpop.f32.mrf.mxu3  ;;  %v1421_v45 = vadd.f32 %v1420_v6, %v4007_v50  ;;  %v1509_v10 = vpop.f32.mrf.mxu1  ;;  %v3241_v35 = vld [vmem:[#allocation10 + $0x14] sm:$0xf0] }
 0x1ed   : > { %v3017_v3 = vor.u32 %v3241_v35, %v3016_v63 }
 0x1ee   : > { %v1685_v11 = vadd.f32 %v1684_v5, %v1596_v4  ;;  %v1510_v13 = vadd.f32 %v1509_v10, %v1421_v45  ;;  %1459 = vmatmul.bf16.gmra.mxu0 %v3932_v2  ;;  %v3080_v4 = vld [vmem:[#allocation10 + $0x90] sm:$0xf]  ;;  %v3257_v5 = vld [vmem:[#allocation10 + $0x94] sm:$0xf0] }
 0x1ef   : > { %1548 = vmatmul.bf16.gmra.mxu1 %v3940_v20  ;;  %v3081_v45 = vor.u32 %v3257_v5, %v3080_v4  ;;  %2062 = vmatpush.bf16.msra.mxu0 %v3017_v3  ;;  %v3008_v5 = vld [vmem:[#allocation10] sm:$0xf] }
 0x1f0   : > { %v1765_v42 = vmax.f32 %v1685_v11, 0.0  ;;  %1637 = vmatmul.bf16.gmra.mxu2 %v3932_v2  ;;  %v1766_v15 = vmax.f32 %v1510_v13, 0.0 }
 0x1f1   : > { %1726 = vmatmul.bf16.gmra.mxu3 %v3940_v20  ;;  %2151 = vmatpush.bf16.msra.mxu1 %v3081_v45 }
 0x1f2   : > { %v4031_v61 = vpack.c.bf16 %v1765_v42, %v1763_v14 }
 0x1f3   : > { %v1598_v17 = vpop.f32.mrf.mxu2  ;;  %v1422_v56 = vpop.f32.mrf.mxu0 }
 0x1f4   : > { %v1599_v19 = vadd.f32 %v1598_v17, %v4016_v9  ;;  %v1687_v21 = vpop.f32.mrf.mxu3  ;;  %v1423_v12 = vadd.f32 %v1422_v56, %v4007_v50  ;;  %v1511_v23 = vpop.f32.mrf.mxu1 }
 0x1f6   : > { %v1688_v25 = vadd.f32 %v1687_v21, %v1599_v19  ;;  %v1512_v27 = vadd.f32 %v1511_v23, %v1423_v12 }
 0x1f8   : > { %v1768_v60 = vmax.f32 %v1512_v27, 0.0  ;;  %v1767_v37 = vmax.f32 %v1688_v25, 0.0 }
 0x1fa   : > { %v4035_v30 = vpack.c.bf16 %v1768_v60, %v1766_v15 }
 0x1fb   : > { %v1600_v8 = vpop.f32.mrf.mxu2  ;;  %v1425_v31 = vpop.f32.mrf.mxu0 }
 0x1fc   : > { %v1601_v2 = vadd.f32 %v1600_v8, %v4016_v9  ;;  %v1689_v20 = vpop.f32.mrf.mxu3  ;;  %v1426_v33 = vadd.f32 %v1425_v31, %v4007_v50  ;;  %v1514_v24 = vpop.f32.mrf.mxu1 }
 0x1fe   : > { %v1690_v22 = vadd.f32 %v1689_v20, %v1601_v2  ;;  %v1515_v34 = vadd.f32 %v1514_v24, %v1426_v33  ;;  %1464 = vmatmul.bf16.gmra.mxu0 %v3944_v43 }
 0x1ff   : > { %1553 = vmatmul.bf16.gmra.mxu1 %v3952_v57 }
 0x200   : > { %v1769_v38 = vmax.f32 %v1690_v22, 0.0  ;;  %1642 = vmatmul.bf16.gmra.mxu2 %v3944_v43  ;;  %v1770_v59 = vmax.f32 %v1515_v34, 0.0 }
 0x201   : > { %1731 = vmatmul.bf16.gmra.mxu3 %v3952_v57 }
 0x202   : > { %v4043_v36 = vpack.c.bf16 %v1769_v38, %v1767_v37 }
 0x203   : > { %v1603_v47 = vpop.f32.mrf.mxu2  ;;  %v1427_v54 = vpop.f32.mrf.mxu0 }
 0x204   : > { %v1604_v49 = vadd.f32 %v1603_v47, %v4016_v9  ;;  %v1692_v52 = vpop.f32.mrf.mxu3  ;;  %v1428_v55 = vadd.f32 %v1427_v54, %v4007_v50  ;;  %v1516_v58 = vpop.f32.mrf.mxu1  ;;  %v3238_v47 = vld [vmem:[#allocation10 + $0x4] sm:$0xf]  ;;  %v3074_v54 = vld [vmem:[#allocation10 + $0x88] sm:$0xf0] }
 0x206   : > { %v1693_v43 = vadd.f32 %v1692_v52, %v1604_v49  ;;  %v1517_v57 = vadd.f32 %v1516_v58, %v1428_v55  ;;  %v3013_v49 = vor.u32 %v3238_v47, %v3010_v48  ;;  %v3254_v52 = vld [vmem:[#allocation10 + $0x84] sm:$0xf] }
 0x208   : > { %v1772_v62 = vmax.f32 %v1517_v57, 0.0  ;;  %v1771_v56 = vmax.f32 %v1693_v43, 0.0  ;;  %v3077_v43 = vor.u32 %v3254_v52, %v3074_v54  ;;  %2241 = vmatpush.bf16.msra.mxu2 %v3013_v49 }
 0x20a   : > { %v4047_v10 = vpack.c.bf16 %v1772_v62, %v1770_v59  ;;  %2330 = vmatpush.bf16.msra.mxu3 %v3077_v43 }
 0x20b   : > { %v1605_v6 = vpop.f32.mrf.mxu2  ;;  %v1430_v14 = vpop.f32.mrf.mxu0 }
 0x20c   : > { %v1606_v11 = vadd.f32 %v1605_v6, %v4016_v9  ;;  %v1694_v13 = vpop.f32.mrf.mxu3  ;;  %v1431_v42 = vadd.f32 %v1430_v14, %v4007_v50  ;;  %v1519_v17 = vpop.f32.mrf.mxu1  ;;  %v3239_v6 = vld [vmem:[#allocation10 + $0x4] sm:$0xf0] }
 0x20d   : > { %v3009_v45 = vor.u32 %v3239_v6, %v3008_v5 }
 0x20e   : > { %v1695_v19 = vadd.f32 %v1694_v13, %v1606_v11  ;;  %v1520_v21 = vadd.f32 %v1519_v17, %v1431_v42  ;;  %1469 = vmatmul.bf16.gmra.mxu0 %v3956_v7  ;;  %v3072_v11 = vld [vmem:[#allocation10 + $0x80] sm:$0xf]  ;;  %v3255_v13 = vld [vmem:[#allocation10 + $0x84] sm:$0xf0] }
 0x20f   : > { %1558 = vmatmul.bf16.gmra.mxu1 %v3964_v26  ;;  %v3073_v42 = vor.u32 %v3255_v13, %v3072_v11  ;;  %2063 = vmatpush.bf16.msra.mxu0 %v3009_v45 }
 0x210   : > { %v1773_v12 = vmax.f32 %v1695_v19, 0.0  ;;  %1647 = vmatmul.bf16.gmra.mxu2 %v3956_v7  ;;  %v1774_v33 = vmax.f32 %v1520_v21, 0.0 }
 0x211   : > { %1736 = vmatmul.bf16.gmra.mxu3 %v3964_v26  ;;  %2152 = vmatpush.bf16.msra.mxu1 %v3073_v42 }
 0x212   : > { %v4055_v23 = vpack.c.bf16 %v1773_v12, %v1771_v56 }
 0x213   : > { %v1608_v25 = vpop.f32.mrf.mxu2  ;;  %v1432_v60 = vpop.f32.mrf.mxu0 }
 0x214   : > { %v1609_v27 = vadd.f32 %v1608_v25, %v4016_v9  ;;  %v1697_v15 = vpop.f32.mrf.mxu3  ;;  %v1433_v8 = vadd.f32 %v1432_v60, %v4007_v50  ;;  %v1521_v2 = vpop.f32.mrf.mxu1 }
 0x216   : > { %v1698_v20 = vadd.f32 %v1697_v15, %v1609_v27  ;;  %v1522_v31 = vadd.f32 %v1521_v2, %v1433_v8 }
 0x218   : > { %v1776_v24 = vmax.f32 %v1522_v31, 0.0  ;;  %v1775_v44 = vmax.f32 %v1698_v20, 0.0 }
 0x21a   : > { %v4059_v34 = vpack.c.bf16 %v1776_v24, %v1774_v33 }
 0x21b   : > { %v1610_v22 = vpop.f32.mrf.mxu2  ;;  %v1435_v37 = vpop.f32.mrf.mxu0 }
 0x21c   : > { %v1611_v7 = vadd.f32 %v1610_v22, %v4016_v9  ;;  %v1699_v26 = vpop.f32.mrf.mxu3  ;;  %v1436_v38 = vadd.f32 %v1435_v37, %v4007_v50  ;;  %v1524_v29 = vpop.f32.mrf.mxu1 }
 0x21e   : > { %v1700_v41 = vadd.f32 %v1699_v26, %v1611_v7  ;;  %v1525_v40 = vadd.f32 %v1524_v29, %v1436_v38  ;;  %1474 = vmatmul.bf16.gmra.mxu0 %v3968_v51 }
 0x21f   : > { %1563 = vmatmul.bf16.gmra.mxu1 %v3976_v18 }
 0x220   : > { %v1777_v46 = vmax.f32 %v1700_v41, 0.0  ;;  %1652 = vmatmul.bf16.gmra.mxu2 %v3968_v51  ;;  %v1778_v3 = vmax.f32 %v1525_v40, 0.0 }
 0x221   : > { %1741 = vmatmul.bf16.gmra.mxu3 %v3976_v18 }
 0x222   : > { %v4067_v55 = vpack.c.bf16 %v1777_v46, %v1775_v44 }
 0x223   : > { %v1613_v58 = vpop.f32.mrf.mxu2  ;;  %v1437_v62 = vpop.f32.mrf.mxu0 }
 0x224   : > { %v1614_v57 = vadd.f32 %v1613_v58, %v4016_v9  ;;  %v1702_v59 = vpop.f32.mrf.mxu3  ;;  %v1438_v63 = vadd.f32 %v1437_v62, %v4007_v50  ;;  %v1526_v35 = vpop.f32.mrf.mxu1 }
 0x226   : > { %v1703_v51 = vadd.f32 %v1702_v59, %v1614_v57  ;;  %v1527_v18 = vadd.f32 %v1526_v35, %v1438_v63 }
 0x228   : > { %v1780_v4 = vmax.f32 %v1527_v18, 0.0  ;;  %v1779_v60 = vmax.f32 %v1703_v51, 0.0 }
 0x22a   : > { %v4071_v17 = vpack.c.bf16 %v1780_v4, %v1778_v3 }
 0x22b   : > { %v1615_v14 = vpop.f32.mrf.mxu2  ;;  %v1440_v56 = vpop.f32.mrf.mxu0 }
 0x22c   : > { %v1616_v19 = vadd.f32 %v1615_v14, %v4016_v9  ;;  %v1704_v21 = vpop.f32.mrf.mxu3  ;;  %v1441_v12 = vadd.f32 %v1440_v56, %v4007_v50  ;;  %v1529_v25 = vpop.f32.mrf.mxu1 }
 0x22e   : > { %v1705_v27 = vadd.f32 %v1704_v21, %v1616_v19  ;;  %v1530_v15 = vadd.f32 %v1529_v25, %v1441_v12  ;;  %1479 = vmatmul.bf16.gmra.mxu0 %v3980_v16 }
 0x22f   : > { %1568 = vmatmul.bf16.gmra.mxu1 %v3988_v32 }
 0x230   : > { %v1781_v8 = vmax.f32 %v1705_v27, 0.0  ;;  %1657 = vmatmul.bf16.gmra.mxu2 %v3980_v16  ;;  %v1782_v38 = vmax.f32 %v1530_v15, 0.0 }
 0x231   : > { %1746 = vmatmul.bf16.gmra.mxu3 %v3988_v32 }
 0x232   : > { %v4079_v2 = vpack.c.bf16 %v1781_v8, %v1779_v60 }
 0x233   : > { %v1618_v20 = vpop.f32.mrf.mxu2  ;;  %v1442_v24 = vpop.f32.mrf.mxu0 }
 0x234   : > { %v1619_v31 = vadd.f32 %v1618_v20, %v4016_v9  ;;  %v1707_v33 = vpop.f32.mrf.mxu3  ;;  %v1443_v22 = vadd.f32 %v1442_v24, %v4007_v50  ;;  %v1531_v7 = vpop.f32.mrf.mxu1 }
 0x236   : > { %v1708_v26 = vadd.f32 %v1707_v33, %v1619_v31  ;;  %v1532_v37 = vadd.f32 %v1531_v7, %v1443_v22 }
 0x238   : > { %v1784_v29 = vmax.f32 %v1532_v37, 0.0  ;;  %v1783_v52 = vmax.f32 %v1708_v26, 0.0 }
 0x23a   : > { %v4083_v40 = vpack.c.bf16 %v1784_v29, %v1782_v38 }
 0x23b   : > { %v1620_v41 = vpop.f32.mrf.mxu2  ;;  %v1445_v44 = vpop.f32.mrf.mxu0 }
 0x23c   : > { %v1621_v16 = vadd.f32 %v1620_v41, %v4016_v9  ;;  %v1709_v32 = vpop.f32.mrf.mxu3  ;;  %v1446_v46 = vadd.f32 %v1445_v44, %v4007_v50  ;;  %v1534_v47 = vpop.f32.mrf.mxu1 }
 0x23e   : > { %v1710_v48 = vadd.f32 %v1709_v32, %v1621_v16  ;;  %v1535_v49 = vadd.f32 %v1534_v47, %v1446_v46  ;;  %1484 = vmatmul.bf16.gmra.mxu0 %v3992_v53 }
 0x23f   : > { %1573 = vmatmul.bf16.gmra.mxu1 %v4000_v28 }
 0x240   : > { %v1785_v54 = vmax.f32 %v1710_v48, 0.0  ;;  %1662 = vmatmul.bf16.gmra.mxu2 %v3992_v53  ;;  %v1786_v3 = vmax.f32 %v1535_v49, 0.0 }
 0x241   : > { %1751 = vmatmul.bf16.gmra.mxu3 %v4000_v28 }
 0x242   : > { %v4091_v58 = vpack.c.bf16 %v1785_v54, %v1783_v52 }
 0x243   : > { %v1623_v43 = vpop.f32.mrf.mxu2  ;;  %v1447_v62 = vpop.f32.mrf.mxu0 }
 0x244   : > { %v1624_v57 = vadd.f32 %v1623_v43, %v4016_v9  ;;  %v1712_v59 = vpop.f32.mrf.mxu3  ;;  %v1448_v63 = vadd.f32 %v1447_v62, %v4007_v50  ;;  %v1536_v35 = vpop.f32.mrf.mxu1 }
 0x246   : > { %v1713_v51 = vadd.f32 %v1712_v59, %v1624_v57  ;;  %v1537_v18 = vadd.f32 %v1536_v35, %v1448_v63 }
 0x248   : > { %v1788_v4 = vmax.f32 %v1537_v18, 0.0  ;;  %v1787_v19 = vmax.f32 %v1713_v51, 0.0 }
 0x24a   : > { %v4095_v6 = vpack.c.bf16 %v1788_v4, %v1786_v3 }
 0x24b   : > { %v1625_v5 = vpop.f32.mrf.mxu2  ;;  %v1450_v45 = vpop.f32.mrf.mxu0 }
 0x24c   : > { %v1626_v53 = vadd.f32 %v1625_v5, %v4016_v9  ;;  %v1714_v28 = vpop.f32.mrf.mxu3  ;;  %v1451_v11 = vadd.f32 %v1450_v45, %v4007_v50  ;;  %v1539_v13 = vpop.f32.mrf.mxu1 }
 0x24e   : > { %v1715_v14 = vadd.f32 %v1714_v28, %v1626_v53  ;;  %v1540_v42 = vadd.f32 %v1539_v13, %v1451_v11  ;;  %1489 = vmatmul.bf16.gmra.mxu0 %v4009_v0 }
 0x24f   : > { %1578 = vmatmul.bf16.gmra.mxu1 %v4019_v39 }
 0x250   : > { %v1789_v21 = vmax.f32 %v1715_v14, 0.0  ;;  %1667 = vmatmul.bf16.gmra.mxu2 %v4009_v0  ;;  %v1790_v33 = vmax.f32 %v1540_v42, 0.0 }
 0x251   : > { %1756 = vmatmul.bf16.gmra.mxu3 %v4019_v39 }
 0x252   : > { %v4103_v56 = vpack.c.bf16 %v1789_v21, %v1787_v19 }
 0x253   : > { %v1628_v12 = vpop.f32.mrf.mxu2  ;;  %v1452_v15 = vpop.f32.mrf.mxu0 }
 0x254   : > { %v1629_v25 = vadd.f32 %v1628_v12, %v4016_v9  ;;  %v1717_v27 = vpop.f32.mrf.mxu3  ;;  %v1453_v60 = vadd.f32 %v1452_v15, %v4007_v50  ;;  %v1541_v8 = vpop.f32.mrf.mxu1 }
 0x256   : > { %v1718_v20 = vadd.f32 %v1717_v27, %v1629_v25  ;;  %v1542_v31 = vadd.f32 %v1541_v8, %v1453_v60 }
 0x258   : > { %v1792_v24 = vmax.f32 %v1542_v31, 0.0  ;;  %v1791_v16 = vmax.f32 %v1718_v20, 0.0 }
 0x25a   : > { %v4107_v7 = vpack.c.bf16 %v1792_v24, %v1790_v33 }
 0x25b   : > { %v1630_v22 = vpop.f32.mrf.mxu2  ;;  %v1455_v26 = vpop.f32.mrf.mxu0 }
 0x25c   : > { %v1631_v0 = vadd.f32 %v1630_v22, %v4016_v9  ;;  %v1719_v39 = vpop.f32.mrf.mxu3  ;;  %v1456_v37 = vadd.f32 %v1455_v26, %v4007_v50  ;;  %v1544_v38 = vpop.f32.mrf.mxu1 }
 0x25e   : > { %v1720_v29 = vadd.f32 %v1719_v39, %v1631_v0  ;;  %v1545_v41 = vadd.f32 %v1544_v38, %v1456_v37  ;;  %2064 = vmatmul.bf16.vlgmr.msra.gmra.mxu0 %v4023_v1 }
 0x25f   : > { %2153 = vmatmul.bf16.vlgmr.msra.gmra.mxu1 %v4031_v61 }
 0x260   : > { %v1793_v32 = vmax.f32 %v1720_v29, 0.0  ;;  %2242 = vmatmul.bf16.vlgmr.msra.gmra.mxu2 %v4023_v1  ;;  %v1794_v59 = vmax.f32 %v1545_v41, 0.0 }
 0x261   : > { %2331 = vmatmul.bf16.vlgmr.msra.gmra.mxu3 %v4031_v61 }
 0x262   : > { %v4115_v44 = vpack.c.bf16 %v1793_v32, %v1791_v16 }
 0x263   : > { %v1633_v46 = vpop.f32.mrf.mxu2  ;;  %v1457_v49 = vpop.f32.mrf.mxu0 }
 0x264   : > { %v1634_v47 = vadd.f32 %v1633_v46, %v4016_v9  ;;  %v1722_v48 = vpop.f32.mrf.mxu3  ;;  %v1458_v52 = vadd.f32 %v1457_v49, %v4007_v50  ;;  %v1546_v54 = vpop.f32.mrf.mxu1 }
 0x266   : > { %v1723_v43 = vadd.f32 %v1722_v48, %v1634_v47  ;;  %v1547_v57 = vadd.f32 %v1546_v54, %v1458_v52 }
 0x268   : > { %v1796_v62 = vmax.f32 %v1547_v57, 0.0  ;;  %v1795_v53 = vmax.f32 %v1723_v43, 0.0 }
 0x26a   : > { %v4119_v35 = vpack.c.bf16 %v1796_v62, %v1794_v59 }
 0x26b   : > { %v1635_v63 = vpop.f32.mrf.mxu2  ;;  %v1460_v51 = vpop.f32.mrf.mxu0 }
 0x26c   : > { %v1636_v1 = vadd.f32 %v1635_v63, %v4016_v9  ;;  %v1724_v61 = vpop.f32.mrf.mxu3  ;;  %v1461_v18 = vadd.f32 %v1460_v51, %v4007_v50  ;;  %v1549_v3 = vpop.f32.mrf.mxu1 }
 0x26e   : > { %v1725_v4 = vadd.f32 %v1724_v61, %v1636_v1  ;;  %v1550_v5 = vadd.f32 %v1549_v3, %v1461_v18  ;;  %2069 = vmatmul.bf16.gmra.mxu0 %v4035_v30 }
 0x26f   : > { %2158 = vmatmul.bf16.gmra.mxu1 %v4043_v36 }
 0x270   : > { %v1797_v28 = vmax.f32 %v1725_v4, 0.0  ;;  %2247 = vmatmul.bf16.gmra.mxu2 %v4035_v30  ;;  %v1798_v27 = vmax.f32 %v1550_v5, 0.0 }
 0x271   : > { %2336 = vmatmul.bf16.gmra.mxu3 %v4043_v36 }
 0x272   : > { %v4127_v45 = vpack.c.bf16 %v1797_v28, %v1795_v53 }
 0x273   : > { %v1638_v11 = vpop.f32.mrf.mxu2  ;;  %v1462_v42 = vpop.f32.mrf.mxu0 }
 0x274   : > { %v1639_v13 = vadd.f32 %v1638_v11, %v4016_v9  ;;  %v1727_v14 = vpop.f32.mrf.mxu3  ;;  %v1463_v19 = vadd.f32 %v1462_v42, %v4007_v50  ;;  %v1551_v21 = vpop.f32.mrf.mxu1 }
 0x276   : > { %v1728_v12 = vadd.f32 %v1727_v14, %v1639_v13  ;;  %v1552_v25 = vadd.f32 %v1551_v21, %v1463_v19 }
 0x278   : > { %v1800_v15 = vmax.f32 %v1552_v25, 0.0  ;;  %v1799_v0 = vmax.f32 %v1728_v12, 0.0 }
 0x27a   : > { %v4131_v8 = vpack.c.bf16 %v1800_v15, %v1798_v27 }
 0x27b   : > { %v1640_v60 = vpop.f32.mrf.mxu2  ;;  %v1465_v20 = vpop.f32.mrf.mxu0 }
 0x27c   : > { %v1641_v30 = vadd.f32 %v1640_v60, %v4016_v9  ;;  %v1729_v36 = vpop.f32.mrf.mxu3  ;;  %v1466_v31 = vadd.f32 %v1465_v20, %v4007_v50  ;;  %v1554_v33 = vpop.f32.mrf.mxu1 }
 0x27e   : > { %v1730_v24 = vadd.f32 %v1729_v36, %v1641_v30  ;;  %v1555_v22 = vadd.f32 %v1554_v33, %v1466_v31  ;;  %2074 = vmatmul.bf16.gmra.mxu0 %v4047_v10 }
 0x27f   : > { %2163 = vmatmul.bf16.gmra.mxu1 %v4055_v23 }
 0x280   : > { %v1801_v39 = vmax.f32 %v1730_v24, 0.0  ;;  %2252 = vmatmul.bf16.gmra.mxu2 %v4047_v10  ;;  %v1802_v48 = vmax.f32 %v1555_v22, 0.0 }
 0x281   : > { %2341 = vmatmul.bf16.gmra.mxu3 %v4055_v23 }
 0x282   : > { %v4139_v26 = vpack.c.bf16 %v1801_v39, %v1799_v0 }
 0x283   : > { %v1643_v37 = vpop.f32.mrf.mxu2  ;;  %v1467_v41 = vpop.f32.mrf.mxu0 }
 0x284   : > { %v1644_v38 = vadd.f32 %v1643_v37, %v4016_v9  ;;  %v1732_v29 = vpop.f32.mrf.mxu3  ;;  %v1468_v16 = vadd.f32 %v1467_v41, %v4007_v50  ;;  %v1556_v32 = vpop.f32.mrf.mxu1 }
 0x286   : > { %v1733_v46 = vadd.f32 %v1732_v29, %v1644_v38  ;;  %v1557_v47 = vadd.f32 %v1556_v32, %v1468_v16 }
 0x288   : > { %v1804_v49 = vmax.f32 %v1557_v47, 0.0  ;;  %v1803_v1 = vmax.f32 %v1733_v46, 0.0 }
 0x28a   : > { %v4143_v54 = vpack.c.bf16 %v1804_v49, %v1802_v48 }
 0x28b   : > { %v1645_v52 = vpop.f32.mrf.mxu2  ;;  %v1470_v43 = vpop.f32.mrf.mxu0 }
 0x28c   : > { %v1646_v10 = vadd.f32 %v1645_v52, %v4016_v9  ;;  %v1734_v23 = vpop.f32.mrf.mxu3  ;;  %v1471_v57 = vadd.f32 %v1470_v43, %v4007_v50  ;;  %v1559_v59 = vpop.f32.mrf.mxu1 }
 0x28e   : > { %v1735_v62 = vadd.f32 %v1734_v23, %v1646_v10  ;;  %v1560_v63 = vadd.f32 %v1559_v59, %v1471_v57  ;;  %2079 = vmatmul.bf16.gmra.mxu0 %v4059_v34 }
 0x28f   : > { %2168 = vmatmul.bf16.gmra.mxu1 %v4067_v55 }
 0x290   : > { %v1805_v61 = vmax.f32 %v1735_v62, 0.0  ;;  %2257 = vmatmul.bf16.gmra.mxu2 %v4059_v34  ;;  %v1806_v14 = vmax.f32 %v1560_v63, 0.0 }
 0x291   : > { %2346 = vmatmul.bf16.gmra.mxu3 %v4067_v55 }
 0x292   : > { %v4151_v51 = vpack.c.bf16 %v1805_v61, %v1803_v1 }
 0x293   : > { %v1648_v18 = vpop.f32.mrf.mxu2  ;;  %v1472_v5 = vpop.f32.mrf.mxu0 }
 0x294   : > { %v1649_v3 = vadd.f32 %v1648_v18, %v4016_v9  ;;  %v1737_v4 = vpop.f32.mrf.mxu3  ;;  %v1473_v53 = vadd.f32 %v1472_v5, %v4007_v50  ;;  %v1561_v28 = vpop.f32.mrf.mxu1 }
 0x296   : > { %v1738_v11 = vadd.f32 %v1737_v4, %v1649_v3  ;;  %v1562_v13 = vadd.f32 %v1561_v28, %v1473_v53 }
 0x298   : > { %v1808_v42 = vmax.f32 %v1562_v13, 0.0  ;;  %v1807_v30 = vmax.f32 %v1738_v11, 0.0 }
 0x29a   : > { %v4155_v21 = vpack.c.bf16 %v1808_v42, %v1806_v14 }
 0x29b   : > { %v1650_v19 = vpop.f32.mrf.mxu2  ;;  %v1475_v12 = vpop.f32.mrf.mxu0 }
 0x29c   : > { %v1651_v34 = vadd.f32 %v1650_v19, %v4016_v9  ;;  %v1739_v55 = vpop.f32.mrf.mxu3  ;;  %v1476_v25 = vadd.f32 %v1475_v12, %v4007_v50  ;;  %v1564_v27 = vpop.f32.mrf.mxu1 }
 0x29e   : > { %v1740_v15 = vadd.f32 %v1739_v55, %v1651_v34  ;;  %v1565_v60 = vadd.f32 %v1564_v27, %v1476_v25  ;;  %2084 = vmatmul.bf16.gmra.mxu0 %v4071_v17 }
 0x29f   : > { %2173 = vmatmul.bf16.gmra.mxu1 %v4079_v2 }
 0x2a0   : > { %v1809_v36 = vmax.f32 %v1740_v15, 0.0  ;;  %2262 = vmatmul.bf16.gmra.mxu2 %v4071_v17  ;;  %v1810_v29 = vmax.f32 %v1565_v60, 0.0 }
 0x2a1   : > { %2351 = vmatmul.bf16.gmra.mxu3 %v4079_v2 }
 0x2a2   : > { %v4163_v20 = vpack.c.bf16 %v1809_v36, %v1807_v30 }
 0x2a3   : > { %v1653_v31 = vpop.f32.mrf.mxu2  ;;  %v1477_v22 = vpop.f32.mrf.mxu0 }
 0x2a4   : > { %v1654_v33 = vadd.f32 %v1653_v31, %v4016_v9  ;;  %v1742_v24 = vpop.f32.mrf.mxu3  ;;  %v1478_v0 = vadd.f32 %v1477_v22, %v4007_v50  ;;  %v1566_v39 = vpop.f32.mrf.mxu1 }
 0x2a6   : > { %v1743_v37 = vadd.f32 %v1742_v24, %v1654_v33  ;;  %v1567_v38 = vadd.f32 %v1566_v39, %v1478_v0 }
 0x2a8   : > { %v1812_v41 = vmax.f32 %v1567_v38, 0.0  ;;  %v1811_v10 = vmax.f32 %v1743_v37, 0.0 }
 0x2aa   : > { %v4167_v32 = vpack.c.bf16 %v1812_v41, %v1810_v29 }
 0x2ab   : > { %v1655_v16 = vpop.f32.mrf.mxu2  ;;  %v1480_v46 = vpop.f32.mrf.mxu0 }
 0x2ac   : > { %v1656_v17 = vadd.f32 %v1655_v16, %v4016_v9  ;;  %v1744_v2 = vpop.f32.mrf.mxu3  ;;  %v1481_v47 = vadd.f32 %v1480_v46, %v4007_v50  ;;  %v1569_v48 = vpop.f32.mrf.mxu1 }
 0x2ae   : > { %v1745_v49 = vadd.f32 %v1744_v2, %v1656_v17  ;;  %v1570_v52 = vadd.f32 %v1569_v48, %v1481_v47  ;;  %2089 = vmatmul.bf16.gmra.mxu0 %v4083_v40 }
 0x2af   : > { %2178 = vmatmul.bf16.gmra.mxu1 %v4091_v58 }
 0x2b0   : > { %v1813_v23 = vmax.f32 %v1745_v49, 0.0  ;;  %2267 = vmatmul.bf16.gmra.mxu2 %v4083_v40  ;;  %v1814_v4 = vmax.f32 %v1570_v52, 0.0 }
 0x2b1   : > { %2356 = vmatmul.bf16.gmra.mxu3 %v4091_v58 }
 0x2b2   : > { %v4175_v43 = vpack.c.bf16 %v1813_v23, %v1811_v10 }
 0x2b3   : > { %v1658_v57 = vpop.f32.mrf.mxu2  ;;  %v1482_v63 = vpop.f32.mrf.mxu0 }
 0x2b4   : > { %v1659_v59 = vadd.f32 %v1658_v57, %v4016_v9  ;;  %v1747_v62 = vpop.f32.mrf.mxu3  ;;  %v1483_v1 = vadd.f32 %v1482_v63, %v4007_v50  ;;  %v1571_v61 = vpop.f32.mrf.mxu1 }
 0x2b6   : > { %v1748_v18 = vadd.f32 %v1747_v62, %v1659_v59  ;;  %v1572_v3 = vadd.f32 %v1571_v61, %v1483_v1  ;;  %v1890_v59 = vld [vmem:[%s4418_s6] sm:$0x3] }
 0x2b7   : > { %v4206_v1 = vperm.slane %v1890_v59, 0 }
 0x2b8   : > { %v1816_v5 = vmax.f32 %v1572_v3, 0.0  ;;  %v1815_v34 = vmax.f32 %v1748_v18, 0.0 }
 0x2ba   : > { %v4179_v28 = vpack.c.bf16 %v1816_v5, %v1814_v4 }
 0x2bb   : > { %v1660_v53 = vpop.f32.mrf.mxu2  ;;  %v1485_v11 = vpop.f32.mrf.mxu0 }
 0x2bc   : > { %v1661_v40 = vadd.f32 %v1660_v53, %v4016_v9  ;;  %v1749_v58 = vpop.f32.mrf.mxu3  ;;  %v1486_v13 = vadd.f32 %v1485_v11, %v4007_v50  ;;  %v1574_v14 = vpop.f32.mrf.mxu1 }
 0x2be   : > { %v1750_v42 = vadd.f32 %v1749_v58, %v1661_v40  ;;  %v1575_v19 = vadd.f32 %v1574_v14, %v1486_v13  ;;  %2094 = vmatmul.bf16.gmra.mxu0 %v4095_v6  ;;  %v4216_v13 = vperm.slane %v1890_v59, 1 }
 0x2bf   : > { %2183 = vmatmul.bf16.gmra.mxu1 %v4103_v56 }
 0x2c0   : > { %v1817_v55 = vmax.f32 %v1750_v42, 0.0  ;;  %2272 = vmatmul.bf16.gmra.mxu2 %v4095_v6  ;;  %v1818_v24 = vmax.f32 %v1575_v19, 0.0 }
 0x2c1   : > { %2361 = vmatmul.bf16.gmra.mxu3 %v4103_v56 }
 0x2c2   : > { %v4187_v12 = vpack.c.bf16 %v1817_v55, %v1815_v34 }
 0x2c3   : > { %v1663_v25 = vpop.f32.mrf.mxu2  ;;  %v1487_v60 = vpop.f32.mrf.mxu0 }
 0x2c4   : > { %v1664_v27 = vadd.f32 %v1663_v25, %v4016_v9  ;;  %v1752_v15 = vpop.f32.mrf.mxu3  ;;  %v1488_v30 = vadd.f32 %v1487_v60, %v4007_v50  ;;  %v1576_v36 = vpop.f32.mrf.mxu1 }
 0x2c6   : > { %v1753_v31 = vadd.f32 %v1752_v15, %v1664_v27  ;;  %v1577_v33 = vadd.f32 %v1576_v36, %v1488_v30 }
 0x2c8   : > { %v1820_v22 = vmax.f32 %v1577_v33, 0.0  ;;  %v1819_v17 = vmax.f32 %v1753_v31, 0.0 }
 0x2ca   : > { %v4191_v39 = vpack.c.bf16 %v1820_v22, %v1818_v24 }
 0x2cb   : > { %v1665_v0 = vpop.f32.mrf.mxu2  ;;  %v1490_v37 = vpop.f32.mrf.mxu0 }
 0x2cc   : > { %v1666_v6 = vadd.f32 %v1665_v0, %v4016_v9  ;;  %v1754_v56 = vpop.f32.mrf.mxu3  ;;  %v1491_v38 = vadd.f32 %v1490_v37, %v4007_v50  ;;  %v1579_v29 = vpop.f32.mrf.mxu1 }
 0x2ce   : > { %v1755_v41 = vadd.f32 %v1754_v56, %v1666_v6  ;;  %v1580_v16 = vadd.f32 %v1579_v29, %v1491_v38  ;;  %2099 = vmatmul.bf16.gmra.mxu0 %v4107_v7 }
 0x2cf   : > { %2188 = vmatmul.bf16.gmra.mxu1 %v4115_v44 }
 0x2d0   : > { %v1821_v2 = vmax.f32 %v1755_v41, 0.0  ;;  %2277 = vmatmul.bf16.gmra.mxu2 %v4107_v7  ;;  %v1822_v7 = vmax.f32 %v1580_v16, 0.0 }
 0x2d1   : > { %2366 = vmatmul.bf16.gmra.mxu3 %v4115_v44 }
 0x2d2   : > { %v4199_v46 = vpack.c.bf16 %v1821_v2, %v1819_v17 }
 0x2d3   : > { %v1668_v47 = vpop.f32.mrf.mxu2  ;;  %v1492_v52 = vpop.f32.mrf.mxu0 }
 0x2d4   : > { %v1669_v48 = vadd.f32 %v1668_v47, %v4016_v9  ;;  %v1757_v49 = vpop.f32.mrf.mxu3  ;;  %v1493_v10 = vadd.f32 %v1492_v52, %v4007_v50  ;;  %v1581_v23 = vpop.f32.mrf.mxu1 }
 0x2d6   : > { %v1758_v57 = vadd.f32 %v1757_v49, %v1669_v48  ;;  %v1582_v62 = vadd.f32 %v1581_v23, %v1493_v10 }
 0x2d8   : > { %v1824_v63 = vmax.f32 %v1582_v62, 0.0  ;;  %v1823_v58 = vmax.f32 %v1758_v57, 0.0 }
 0x2da   : > { %v4209_v61 = vpack.c.bf16 %v1824_v63, %v1822_v7 }
 0x2db   : > { %v1670_v44 = vpop.f32.mrf.mxu2  ;;  %v2065_v4 = vpop.f32.mrf.mxu0 }
 0x2dc   : > { %v1671_v18 = vadd.f32 %v1670_v44, %v4016_v9  ;;  %v1759_v3 = vpop.f32.mrf.mxu3  ;;  %v2066_v50 = vadd.f32 %v2065_v4, %v4206_v1  ;;  %v2154_v5 = vpop.f32.mrf.mxu1 }
 0x2de   : > { %v1760_v53 = vadd.f32 %v1759_v3, %v1671_v18  ;;  %v2155_v40 = vadd.f32 %v2154_v5, %v2066_v50  ;;  %2104 = vmatmul.bf16.gmra.mxu0 %v4119_v35 }
 0x2df   : > { %2193 = vmatmul.bf16.gmra.mxu1 %v4127_v45 }
 0x2e0   : > { %v1825_v11 = vmax.f32 %v1760_v53, 0.0  ;;  %2282 = vmatmul.bf16.gmra.mxu2 %v4119_v35  ;;  %2412 = vst [vmem:[%s4218_s22] sm:$0xff] %v2155_v40 }
 0x2e1   : > { %2371 = vmatmul.bf16.gmra.mxu3 %v4127_v45 }
 0x2e2   : > { %v4222_v9 = vpack.c.bf16 %v1825_v11, %v1823_v58 }
 0x2e3   : > { %v2243_v14 = vpop.f32.mrf.mxu2  ;;  %v2067_v34 = vpop.f32.mrf.mxu0 }
 0x2e4   : > { %v2244_v42 = vadd.f32 %v2243_v14, %v4216_v13  ;;  %v2332_v19 = vpop.f32.mrf.mxu3  ;;  %v2068_v35 = vadd.f32 %v2067_v34, %v4206_v1  ;;  %v2156_v55 = vpop.f32.mrf.mxu1 }
 0x2e6   : > { %v2333_v25 = vadd.f32 %v2332_v19, %v2244_v42  ;;  %v2157_v27 = vadd.f32 %v2156_v55, %v2068_v35 }
 0x2e8   : > { %2413 = vst [vmem:[%s4218_s22 + $0x8] sm:$0xff] %v2333_v25 }
 0x2e9   : > { %2414 = vst [vmem:[%s4218_s22 + $0x10] sm:$0xff] %v2157_v27 }
 0x2eb   : > { %v2245_v15 = vpop.f32.mrf.mxu2  ;;  %v2070_v30 = vpop.f32.mrf.mxu0 }
 0x2ec   : > { %v2246_v60 = vadd.f32 %v2245_v15, %v4216_v13  ;;  %v2334_v45 = vpop.f32.mrf.mxu3  ;;  %v2071_v36 = vadd.f32 %v2070_v30, %v4206_v1  ;;  %v2159_v31 = vpop.f32.mrf.mxu1 }
 0x2ee   : > { %v2335_v33 = vadd.f32 %v2334_v45, %v2246_v60  ;;  %v2160_v24 = vadd.f32 %v2159_v31, %v2071_v36  ;;  %2109 = vmatmul.bf16.gmra.mxu0 %v4131_v8 }
 0x2ef   : > { %2198 = vmatmul.bf16.gmra.mxu1 %v4139_v26 }
 0x2f0   : > { %2415 = vst [vmem:[%s4218_s22 + $0x18] sm:$0xff] %v2335_v33  ;;  %2287 = vmatmul.bf16.gmra.mxu2 %v4131_v8 }
 0x2f1   : > { %2416 = vst [vmem:[%s4218_s22 + $0x20] sm:$0xff] %v2160_v24  ;;  %2376 = vmatmul.bf16.gmra.mxu3 %v4139_v26 }
 0x2f3   : > { %v2248_v22 = vpop.f32.mrf.mxu2  ;;  %v2072_v56 = vpop.f32.mrf.mxu0 }
 0x2f4   : > { %v2249_v0 = vadd.f32 %v2248_v22, %v4216_v13  ;;  %v2337_v6 = vpop.f32.mrf.mxu3  ;;  %v2073_v37 = vadd.f32 %v2072_v56, %v4206_v1  ;;  %v2161_v38 = vpop.f32.mrf.mxu1 }
 0x2f6   : > { %v2338_v29 = vadd.f32 %v2337_v6, %v2249_v0  ;;  %v2162_v41 = vadd.f32 %v2161_v38, %v2073_v37 }
 0x2f8   : > { %2417 = vst [vmem:[%s4218_s22 + $0x28] sm:$0xff] %v2338_v29 }
 0x2f9   : > { %2418 = vst [vmem:[%s4218_s22 + $0x30] sm:$0xff] %v2162_v41 }
 0x2fb   : > { %v2250_v16 = vpop.f32.mrf.mxu2  ;;  %v2075_v2 = vpop.f32.mrf.mxu0 }
 0x2fc   : > { %v2251_v8 = vadd.f32 %v2250_v16, %v4216_v13  ;;  %v2339_v17 = vpop.f32.mrf.mxu3  ;;  %v2076_v26 = vadd.f32 %v2075_v2, %v4206_v1  ;;  %v2164_v47 = vpop.f32.mrf.mxu1 }
 0x2fe   : > { %v2340_v48 = vadd.f32 %v2339_v17, %v2251_v8  ;;  %v2165_v49 = vadd.f32 %v2164_v47, %v2076_v26  ;;  %2114 = vmatmul.bf16.gmra.mxu0 %v4143_v54 }
 0x2ff   : > { %2203 = vmatmul.bf16.gmra.mxu1 %v4151_v51 }
 0x300   : > { %2419 = vst [vmem:[%s4218_s22 + $0x38] sm:$0xff] %v2340_v48  ;;  %2292 = vmatmul.bf16.gmra.mxu2 %v4143_v54 }
 0x301   : > { %2420 = vst [vmem:[%s4218_s22 + $0x40] sm:$0xff] %v2165_v49  ;;  %2381 = vmatmul.bf16.gmra.mxu3 %v4151_v51 }
 0x303   : > { %v2253_v52 = vpop.f32.mrf.mxu2  ;;  %v2077_v57 = vpop.f32.mrf.mxu0 }
 0x304   : > { %v2254_v10 = vadd.f32 %v2253_v52, %v4216_v13  ;;  %v2342_v23 = vpop.f32.mrf.mxu3  ;;  %v2078_v59 = vadd.f32 %v2077_v57, %v4206_v1  ;;  %v2166_v62 = vpop.f32.mrf.mxu1 }
 0x306   : > { %v2343_v7 = vadd.f32 %v2342_v23, %v2254_v10  ;;  %v2167_v63 = vadd.f32 %v2166_v62, %v2078_v59 }
 0x308   : > { %2421 = vst [vmem:[%s4218_s22 + $0x48] sm:$0xff] %v2343_v7 }
 0x309   : > { %2422 = vst [vmem:[%s4218_s22 + $0x50] sm:$0xff] %v2167_v63 }
 0x30b   : > { %v2255_v44 = vpop.f32.mrf.mxu2  ;;  %v2080_v3 = vpop.f32.mrf.mxu0 }
 0x30c   : > { %v2256_v54 = vadd.f32 %v2255_v44, %v4216_v13  ;;  %v2344_v18 = vpop.f32.mrf.mxu3  ;;  %v2081_v51 = vadd.f32 %v2080_v3, %v4206_v1  ;;  %v2169_v4 = vpop.f32.mrf.mxu1 }
 0x30e   : > { %v2345_v50 = vadd.f32 %v2344_v18, %v2256_v54  ;;  %v2170_v5 = vadd.f32 %v2169_v4, %v2081_v51  ;;  %2119 = vmatmul.bf16.gmra.mxu0 %v4155_v21 }
 0x30f   : > { %2208 = vmatmul.bf16.gmra.mxu1 %v4163_v20 }
 0x310   : > { %2423 = vst [vmem:[%s4218_s22 + $0x58] sm:$0xff] %v2345_v50  ;;  %2297 = vmatmul.bf16.gmra.mxu2 %v4155_v21 }
 0x311   : > { %2424 = vst [vmem:[%s4218_s22 + $0x60] sm:$0xff] %v2170_v5  ;;  %2386 = vmatmul.bf16.gmra.mxu3 %v4163_v20 }
 0x313   : > { %v2258_v53 = vpop.f32.mrf.mxu2  ;;  %v2082_v11 = vpop.f32.mrf.mxu0 }
 0x314   : > { %v2259_v40 = vadd.f32 %v2258_v53, %v4216_v13  ;;  %v2347_v58 = vpop.f32.mrf.mxu3  ;;  %v2083_v14 = vadd.f32 %v2082_v11, %v4206_v1  ;;  %v2171_v42 = vpop.f32.mrf.mxu1 }
 0x316   : > { %v2348_v19 = vadd.f32 %v2347_v58, %v2259_v40  ;;  %v2172_v34 = vadd.f32 %v2171_v42, %v2083_v14 }
 0x318   : > { %2425 = vst [vmem:[%s4218_s22 + $0x68] sm:$0xff] %v2348_v19 }
 0x319   : > { %2426 = vst [vmem:[%s4218_s22 + $0x70] sm:$0xff] %v2172_v34 }
 0x31b   : > { %v2260_v35 = vpop.f32.mrf.mxu2  ;;  %v2085_v25 = vpop.f32.mrf.mxu0 }
 0x31c   : > { %v2261_v21 = vadd.f32 %v2260_v35, %v4216_v13  ;;  %v2349_v55 = vpop.f32.mrf.mxu3  ;;  %v2086_v20 = vadd.f32 %v2085_v25, %v4206_v1  ;;  %v2174_v27 = vpop.f32.mrf.mxu1 }
 0x31e   : > { %v2350_v15 = vadd.f32 %v2349_v55, %v2261_v21  ;;  %v2175_v60 = vadd.f32 %v2174_v27, %v2086_v20  ;;  %2124 = vmatmul.bf16.gmra.mxu0 %v4167_v32 }
 0x31f   : > { %2213 = vmatmul.bf16.gmra.mxu1 %v4175_v43 }
 0x320   : > { %2427 = vst [vmem:[%s4218_s22 + $0x78] sm:$0xff] %v2350_v15  ;;  %2302 = vmatmul.bf16.gmra.mxu2 %v4167_v32 }
 0x321   : > { %2428 = vst [vmem:[%s4218_s22 + $0x80] sm:$0xff] %v2175_v60  ;;  %2391 = vmatmul.bf16.gmra.mxu3 %v4175_v43 }
 0x323   : > { %v2263_v45 = vpop.f32.mrf.mxu2  ;;  %v2087_v31 = vpop.f32.mrf.mxu0 }
 0x324   : > { %v2264_v30 = vadd.f32 %v2263_v45, %v4216_v13  ;;  %v2352_v36 = vpop.f32.mrf.mxu3  ;;  %v2088_v33 = vadd.f32 %v2087_v31, %v4206_v1  ;;  %v2176_v24 = vpop.f32.mrf.mxu1 }
 0x326   : > { %v2353_v22 = vadd.f32 %v2352_v36, %v2264_v30  ;;  %v2177_v0 = vadd.f32 %v2176_v24, %v2088_v33 }
 0x328   : > { %2429 = vst [vmem:[%s4218_s22 + $0x88] sm:$0xff] %v2353_v22 }
 0x329   : > { %2430 = vst [vmem:[%s4218_s22 + $0x90] sm:$0xff] %v2177_v0 }
 0x32b   : > { %v2265_v6 = vpop.f32.mrf.mxu2  ;;  %v2090_v37 = vpop.f32.mrf.mxu0 }
 0x32c   : > { %v2266_v32 = vadd.f32 %v2265_v6, %v4216_v13  ;;  %v2354_v56 = vpop.f32.mrf.mxu3  ;;  %v2091_v43 = vadd.f32 %v2090_v37, %v4206_v1  ;;  %v2179_v38 = vpop.f32.mrf.mxu1 }
 0x32e   : > { %v2355_v29 = vadd.f32 %v2354_v56, %v2266_v32  ;;  %v2180_v41 = vadd.f32 %v2179_v38, %v2091_v43  ;;  %2129 = vmatmul.bf16.gmra.mxu0 %v4179_v28 }
 0x32f   : > { %2218 = vmatmul.bf16.gmra.mxu1 %v4187_v12 }
 0x330   : > { %2431 = vst [vmem:[%s4218_s22 + $0x98] sm:$0xff] %v2355_v29  ;;  %2307 = vmatmul.bf16.gmra.mxu2 %v4179_v28 }
 0x331   : > { %2432 = vst [vmem:[%s4218_s22 + $0xa0] sm:$0xff] %v2180_v41  ;;  %2396 = vmatmul.bf16.gmra.mxu3 %v4187_v12 }
 0x333   : > { %v2268_v16 = vpop.f32.mrf.mxu2  ;;  %v2092_v2 = vpop.f32.mrf.mxu0 }
 0x334   : > { %v2269_v8 = vadd.f32 %v2268_v16, %v4216_v13  ;;  %v2357_v17 = vpop.f32.mrf.mxu3  ;;  %v2093_v26 = vadd.f32 %v2092_v2, %v4206_v1  ;;  %v2181_v47 = vpop.f32.mrf.mxu1 }
 0x336   : > { %v2358_v48 = vadd.f32 %v2357_v17, %v2269_v8  ;;  %v2182_v49 = vadd.f32 %v2181_v47, %v2093_v26 }
 0x338   : > { %2433 = vst [vmem:[%s4218_s22 + $0xa8] sm:$0xff] %v2358_v48 }
 0x339   : > { %2434 = vst [vmem:[%s4218_s22 + $0xb0] sm:$0xff] %v2182_v49 }
 0x33b   : > { %v2270_v52 = vpop.f32.mrf.mxu2  ;;  %v2095_v23 = vpop.f32.mrf.mxu0 }
 0x33c   : > { %v2271_v28 = vadd.f32 %v2270_v52, %v4216_v13  ;;  %v2359_v10 = vpop.f32.mrf.mxu3  ;;  %v2096_v12 = vadd.f32 %v2095_v23, %v4206_v1  ;;  %v2184_v57 = vpop.f32.mrf.mxu1 }
 0x33e   : > { %v2360_v59 = vadd.f32 %v2359_v10, %v2271_v28  ;;  %v2185_v62 = vadd.f32 %v2184_v57, %v2096_v12  ;;  %2134 = vmatmul.bf16.gmra.mxu0 %v4191_v39 }
 0x33f   : > { %2223 = vmatmul.bf16.gmra.mxu1 %v4199_v46 }
 0x340   : > { %2435 = vst [vmem:[%s4218_s22 + $0xb8] sm:$0xff] %v2360_v59  ;;  %2312 = vmatmul.bf16.gmra.mxu2 %v4191_v39 }
 0x341   : > { %2436 = vst [vmem:[%s4218_s22 + $0xc0] sm:$0xff] %v2185_v62  ;;  %2401 = vmatmul.bf16.gmra.mxu3 %v4199_v46 }
 0x343   : > { %v2273_v7 = vpop.f32.mrf.mxu2  ;;  %v2097_v54 = vpop.f32.mrf.mxu0 }
 0x344   : > { %v2274_v63 = vadd.f32 %v2273_v7, %v4216_v13  ;;  %v2362_v44 = vpop.f32.mrf.mxu3  ;;  %v2098_v18 = vadd.f32 %v2097_v54, %v4206_v1  ;;  %v2186_v3 = vpop.f32.mrf.mxu1 }
 0x346   : > { %v2363_v51 = vadd.f32 %v2362_v44, %v2274_v63  ;;  %v2187_v4 = vadd.f32 %v2186_v3, %v2098_v18 }
 0x348   : > { %2437 = vst [vmem:[%s4218_s22 + $0xc8] sm:$0xff] %v2363_v51 }
 0x349   : > { %2438 = vst [vmem:[%s4218_s22 + $0xd0] sm:$0xff] %v2187_v4 }
 0x34b   : > { %v2275_v50 = vpop.f32.mrf.mxu2  ;;  %v2100_v53 = vpop.f32.mrf.mxu0 }
 0x34c   : > { %v2276_v39 = vadd.f32 %v2275_v50, %v4216_v13  ;;  %v2364_v5 = vpop.f32.mrf.mxu3  ;;  %v2101_v46 = vadd.f32 %v2100_v53, %v4206_v1  ;;  %v2189_v40 = vpop.f32.mrf.mxu1 }
 0x34e   : > { %v2365_v58 = vadd.f32 %v2364_v5, %v2276_v39  ;;  %v2190_v11 = vadd.f32 %v2189_v40, %v2101_v46  ;;  %2139 = vmatmul.bf16.gmra.mxu0 %v4209_v61 }
 0x34f   : > { %2228 = vmatmul.bf16.gmra.mxu1 %v4222_v9 }
 0x350   : > { %2439 = vst [vmem:[%s4218_s22 + $0xd8] sm:$0xff] %v2365_v58  ;;  %2317 = vmatmul.bf16.gmra.mxu2 %v4209_v61 }
 0x351   : > { %2440 = vst [vmem:[%s4218_s22 + $0xe0] sm:$0xff] %v2190_v11  ;;  %2406 = vmatmul.bf16.gmra.mxu3 %v4222_v9 }
 0x353   : > { %v2278_v14 = vpop.f32.mrf.mxu2  ;;  %v2102_v34 = vpop.f32.mrf.mxu0 }
 0x354   : > { %v2279_v42 = vadd.f32 %v2278_v14, %v4216_v13  ;;  %v2367_v19 = vpop.f32.mrf.mxu3  ;;  %v2103_v35 = vadd.f32 %v2102_v34, %v4206_v1  ;;  %v2191_v21 = vpop.f32.mrf.mxu1 }
 0x356   : > { %v2368_v55 = vadd.f32 %v2367_v19, %v2279_v42  ;;  %v2192_v25 = vadd.f32 %v2191_v21, %v2103_v35 }
 0x358   : > { %2441 = vst [vmem:[%s4218_s22 + $0xe8] sm:$0xff] %v2368_v55 }
 0x359   : > { %2442 = vst [vmem:[%s4218_s22 + $0xf0] sm:$0xff] %v2192_v25 }
 0x35b   : > { %v2280_v20 = vpop.f32.mrf.mxu2  ;;  %v2105_v9 = vpop.f32.mrf.mxu0 }
 0x35c   : > { %v2281_v61 = vadd.f32 %v2280_v20, %v4216_v13  ;;  %v2369_v27 = vpop.f32.mrf.mxu3  ;;  %v2106_v15 = vadd.f32 %v2105_v9, %v4206_v1  ;;  %v2194_v60 = vpop.f32.mrf.mxu1 }
 0x35e   : > { %v2370_v45 = vadd.f32 %v2369_v27, %v2281_v61  ;;  %v2195_v30 = vadd.f32 %v2194_v60, %v2106_v15 }
 0x360   : > { %2443 = vst [vmem:[%s4218_s22 + $0xf8] sm:$0xff] %v2370_v45 }
 0x361   : > { %2444 = vst [vmem:[%s4218_s22 + $0x100] sm:$0xff] %v2195_v30 }
 0x363   : > { %v2283_v36 = vpop.f32.mrf.mxu2  ;;  %v2107_v24 = vpop.f32.mrf.mxu0 }
 0x364   : > { %v2284_v31 = vadd.f32 %v2283_v36, %v4216_v13  ;;  %v2372_v33 = vpop.f32.mrf.mxu3  ;;  %v2108_v22 = vadd.f32 %v2107_v24, %v4206_v1  ;;  %v2196_v0 = vpop.f32.mrf.mxu1 }
 0x366   : > { %v2373_v6 = vadd.f32 %v2372_v33, %v2284_v31  ;;  %v2197_v32 = vadd.f32 %v2196_v0, %v2108_v22 }
 0x368   : > { %2445 = vst [vmem:[%s4218_s22 + $0x108] sm:$0xff] %v2373_v6 }
 0x369   : > { %2446 = vst [vmem:[%s4218_s22 + $0x110] sm:$0xff] %v2197_v32 }
 0x36b   : > { %v2285_v56 = vpop.f32.mrf.mxu2  ;;  %v2110_v38 = vpop.f32.mrf.mxu0 }
 0x36c   : > { %v2286_v37 = vadd.f32 %v2285_v56, %v4216_v13  ;;  %v2374_v43 = vpop.f32.mrf.mxu3  ;;  %v2111_v29 = vadd.f32 %v2110_v38, %v4206_v1  ;;  %v2199_v41 = vpop.f32.mrf.mxu1 }
 0x36e   : > { %v2375_v16 = vadd.f32 %v2374_v43, %v2286_v37  ;;  %v2200_v8 = vadd.f32 %v2199_v41, %v2111_v29 }
 0x370   : > { %2447 = vst [vmem:[%s4218_s22 + $0x118] sm:$0xff] %v2375_v16 }
 0x371   : > { %2448 = vst [vmem:[%s4218_s22 + $0x120] sm:$0xff] %v2200_v8 }
 0x373   : > { %v2288_v17 = vpop.f32.mrf.mxu2  ;;  %v2112_v47 = vpop.f32.mrf.mxu0 }
 0x374   : > { %v2289_v2 = vadd.f32 %v2288_v17, %v4216_v13  ;;  %v2377_v26 = vpop.f32.mrf.mxu3  ;;  %v2113_v48 = vadd.f32 %v2112_v47, %v4206_v1  ;;  %v2201_v49 = vpop.f32.mrf.mxu1 }
 0x376   : > { %v2378_v52 = vadd.f32 %v2377_v26, %v2289_v2  ;;  %v2202_v28 = vadd.f32 %v2201_v49, %v2113_v48 }
 0x378   : > { %2449 = vst [vmem:[%s4218_s22 + $0x128] sm:$0xff] %v2378_v52 }
 0x379   : > { %2450 = vst [vmem:[%s4218_s22 + $0x130] sm:$0xff] %v2202_v28 }
 0x37b   : > { %v2290_v10 = vpop.f32.mrf.mxu2  ;;  %v2115_v57 = vpop.f32.mrf.mxu0 }
 0x37c   : > { %v2291_v23 = vadd.f32 %v2290_v10, %v4216_v13  ;;  %v2379_v12 = vpop.f32.mrf.mxu3  ;;  %v2116_v59 = vadd.f32 %v2115_v57, %v4206_v1  ;;  %v2204_v62 = vpop.f32.mrf.mxu1 }
 0x37e   : > { %v2380_v7 = vadd.f32 %v2379_v12, %v2291_v23  ;;  %v2205_v63 = vadd.f32 %v2204_v62, %v2116_v59 }
 0x380   : > { %2451 = vst [vmem:[%s4218_s22 + $0x138] sm:$0xff] %v2380_v7 }
 0x381   : > { %2452 = vst [vmem:[%s4218_s22 + $0x140] sm:$0xff] %v2205_v63 }
 0x383   : > { %v2293_v44 = vpop.f32.mrf.mxu2  ;;  %v2117_v3 = vpop.f32.mrf.mxu0 }
 0x384   : > { %v2294_v54 = vadd.f32 %v2293_v44, %v4216_v13  ;;  %v2382_v18 = vpop.f32.mrf.mxu3  ;;  %v2118_v51 = vadd.f32 %v2117_v3, %v4206_v1  ;;  %v2206_v4 = vpop.f32.mrf.mxu1 }
 0x386   : > { %v2383_v50 = vadd.f32 %v2382_v18, %v2294_v54  ;;  %v2207_v39 = vadd.f32 %v2206_v4, %v2118_v51 }
 0x388   : > { %2453 = vst [vmem:[%s4218_s22 + $0x148] sm:$0xff] %v2383_v50 }
 0x389   : > { %2454 = vst [vmem:[%s4218_s22 + $0x150] sm:$0xff] %v2207_v39 }
 0x38b   : > { %v2295_v5 = vpop.f32.mrf.mxu2  ;;  %v2120_v40 = vpop.f32.mrf.mxu0 }
 0x38c   : > { %v2296_v53 = vadd.f32 %v2295_v5, %v4216_v13  ;;  %v2384_v46 = vpop.f32.mrf.mxu3  ;;  %v2121_v58 = vadd.f32 %v2120_v40, %v4206_v1  ;;  %v2209_v11 = vpop.f32.mrf.mxu1 }
 0x38e   : > { %v2385_v14 = vadd.f32 %v2384_v46, %v2296_v53  ;;  %v2210_v42 = vadd.f32 %v2209_v11, %v2121_v58 }
 0x390   : > { %2455 = vst [vmem:[%s4218_s22 + $0x158] sm:$0xff] %v2385_v14 }
 0x391   : > { %2456 = vst [vmem:[%s4218_s22 + $0x160] sm:$0xff] %v2210_v42 }
 0x393   : > { %v2298_v19 = vpop.f32.mrf.mxu2  ;;  %v2122_v21 = vpop.f32.mrf.mxu0 }
 0x394   : > { %v2299_v34 = vadd.f32 %v2298_v19, %v4216_v13  ;;  %v2387_v35 = vpop.f32.mrf.mxu3  ;;  %v2123_v55 = vadd.f32 %v2122_v21, %v4206_v1  ;;  %v2211_v25 = vpop.f32.mrf.mxu1 }
 0x396   : > { %v2388_v20 = vadd.f32 %v2387_v35, %v2299_v34  ;;  %v2212_v61 = vadd.f32 %v2211_v25, %v2123_v55 }
 0x398   : > { %2457 = vst [vmem:[%s4218_s22 + $0x168] sm:$0xff] %v2388_v20 }
 0x399   : > { %2458 = vst [vmem:[%s4218_s22 + $0x170] sm:$0xff] %v2212_v61 }
 0x39b   : > { %v2300_v27 = vpop.f32.mrf.mxu2  ;;  %v2125_v60 = vpop.f32.mrf.mxu0 }
 0x39c   : > { %v2301_v9 = vadd.f32 %v2300_v27, %v4216_v13  ;;  %v2389_v15 = vpop.f32.mrf.mxu3  ;;  %v2126_v45 = vadd.f32 %v2125_v60, %v4206_v1  ;;  %v2214_v30 = vpop.f32.mrf.mxu1 }
 0x39e   : > { %v2390_v36 = vadd.f32 %v2389_v15, %v2301_v9  ;;  %v2215_v31 = vadd.f32 %v2214_v30, %v2126_v45 }
 0x3a0   : > { %2459 = vst [vmem:[%s4218_s22 + $0x178] sm:$0xff] %v2390_v36 }
 0x3a1   : > { %2460 = vst [vmem:[%s4218_s22 + $0x180] sm:$0xff] %v2215_v31 }
 0x3a3   : > { %v2303_v33 = vpop.f32.mrf.mxu2  ;;  %v2127_v0 = vpop.f32.mrf.mxu0 }
 0x3a4   : > { %v2304_v24 = vadd.f32 %v2303_v33, %v4216_v13  ;;  %v2392_v22 = vpop.f32.mrf.mxu3  ;;  %v2128_v6 = vadd.f32 %v2127_v0, %v4206_v1  ;;  %v2216_v32 = vpop.f32.mrf.mxu1 }
 0x3a6   : > { %v2393_v56 = vadd.f32 %v2392_v22, %v2304_v24  ;;  %v2217_v37 = vadd.f32 %v2216_v32, %v2128_v6 }
 0x3a8   : > { %2461 = vst [vmem:[%s4218_s22 + $0x188] sm:$0xff] %v2393_v56 }
 0x3a9   : > { %2462 = vst [vmem:[%s4218_s22 + $0x190] sm:$0xff] %v2217_v37 }
 0x3ab   : > { %v2305_v43 = vpop.f32.mrf.mxu2  ;;  %v2130_v41 = vpop.f32.mrf.mxu0 }
 0x3ac   : > { %v2306_v38 = vadd.f32 %v2305_v43, %v4216_v13  ;;  %v2394_v29 = vpop.f32.mrf.mxu3  ;;  %v2131_v16 = vadd.f32 %v2130_v41, %v4206_v1  ;;  %v2219_v8 = vpop.f32.mrf.mxu1 }
 0x3ae   : > { %v2395_v17 = vadd.f32 %v2394_v29, %v2306_v38  ;;  %v2220_v2 = vadd.f32 %v2219_v8, %v2131_v16 }
 0x3b0   : > { %2463 = vst [vmem:[%s4218_s22 + $0x198] sm:$0xff] %v2395_v17 }
 0x3b1   : > { %2464 = vst [vmem:[%s4218_s22 + $0x1a0] sm:$0xff] %v2220_v2 }
 0x3b3   : > { %v2308_v26 = vpop.f32.mrf.mxu2  ;;  %v2132_v49 = vpop.f32.mrf.mxu0 }
 0x3b4   : > { %v2309_v47 = vadd.f32 %v2308_v26, %v4216_v13  ;;  %v2397_v48 = vpop.f32.mrf.mxu3  ;;  %v2133_v52 = vadd.f32 %v2132_v49, %v4206_v1  ;;  %v2221_v28 = vpop.f32.mrf.mxu1 }
 0x3b6   : > { %v2398_v10 = vadd.f32 %v2397_v48, %v2309_v47  ;;  %v2222_v23 = vadd.f32 %v2221_v28, %v2133_v52 }
 0x3b8   : > { %2465 = vst [vmem:[%s4218_s22 + $0x1a8] sm:$0xff] %v2398_v10 }
 0x3b9   : > { %2466 = vst [vmem:[%s4218_s22 + $0x1b0] sm:$0xff] %v2222_v23 }
 0x3bb   : > { %v2310_v12 = vpop.f32.mrf.mxu2  ;;  %v2135_v62 = vpop.f32.mrf.mxu0 }
 0x3bc   : > { %v2311_v57 = vadd.f32 %v2310_v12, %v4216_v13  ;;  %v2399_v59 = vpop.f32.mrf.mxu3  ;;  %v2136_v7 = vadd.f32 %v2135_v62, %v4206_v1  ;;  %v2224_v63 = vpop.f32.mrf.mxu1 }
 0x3be   : > { %v2400_v44 = vadd.f32 %v2399_v59, %v2311_v57  ;;  %v2225_v54 = vadd.f32 %v2224_v63, %v2136_v7 }
 0x3c0   : > { %2467 = vst [vmem:[%s4218_s22 + $0x1b8] sm:$0xff] %v2400_v44 }
 0x3c1   : > { %2468 = vst [vmem:[%s4218_s22 + $0x1c0] sm:$0xff] %v2225_v54 }
 0x3c3   : > { %v2313_v18 = vpop.f32.mrf.mxu2  ;;  %v2137_v4 = vpop.f32.mrf.mxu0 }
 0x3c4   : > { %v2314_v3 = vadd.f32 %v2313_v18, %v4216_v13  ;;  %v2402_v51 = vpop.f32.mrf.mxu3  ;;  %v2138_v50 = vadd.f32 %v2137_v4, %v4206_v1  ;;  %v2226_v39 = vpop.f32.mrf.mxu1 }
 0x3c6   : > { %v2403_v5 = vadd.f32 %v2402_v51, %v2314_v3  ;;  %v2227_v53 = vadd.f32 %v2226_v39, %v2138_v50 }
 0x3c8   : > { %2469 = vst [vmem:[%s4218_s22 + $0x1c8] sm:$0xff] %v2403_v5 }
 0x3c9   : > { %2470 = vst [vmem:[%s4218_s22 + $0x1d0] sm:$0xff] %v2227_v53 }
 0x3cb   : > { %v2315_v46 = vpop.f32.mrf.mxu2  ;;  %v2140_v11 = vpop.f32.mrf.mxu0 }
 0x3cc   : > { %v2316_v40 = vadd.f32 %v2315_v46, %v4216_v13  ;;  %v2404_v58 = vpop.f32.mrf.mxu3  ;;  %v2141_v14 = vadd.f32 %v2140_v11, %v4206_v1  ;;  %v2229_v42 = vpop.f32.mrf.mxu1 }
 0x3ce   : > { %v2405_v19 = vadd.f32 %v2404_v58, %v2316_v40  ;;  %v2230_v34 = vadd.f32 %v2229_v42, %v2141_v14 }
 0x3d0   : > { %2471 = vst [vmem:[%s4218_s22 + $0x1d8] sm:$0xff] %v2405_v19 }
 0x3d1   : > { %2472 = vst [vmem:[%s4218_s22 + $0x1e0] sm:$0xff] %v2230_v34 }
 0x3d3   : > { %v2318_v35 = vpop.f32.mrf.mxu2  ;;  %v2142_v25 = vpop.f32.mrf.mxu0 }
 0x3d4   : > { %v2319_v21 = vadd.f32 %v2318_v35, %v4216_v13  ;;  %v2407_v55 = vpop.f32.mrf.mxu3  ;;  %v2143_v20 = vadd.f32 %v2142_v25, %v4206_v1  ;;  %v2231_v27 = vpop.f32.mrf.mxu1 }
 0x3d6   : > { %v2408_v61 = vadd.f32 %v2407_v55, %v2319_v21  ;;  %v2232_v9 = vadd.f32 %v2231_v27, %v2143_v20 }
 0x3d8   : > { %2473 = vst [vmem:[%s4218_s22 + $0x1e8] sm:$0xff] %v2408_v61 }
 0x3d9   : > { %2474 = vst [vmem:[%s4218_s22 + $0x1f0] sm:$0xff] %v2232_v9 }
 0x3db   : > { %v2320_v15 = vpop.f32.mrf.mxu2 }
 0x3dc   : > { %v2321_v60 = vadd.f32 %v2320_v15, %v4216_v13  ;;  %v2409_v45 = vpop.f32.mrf.mxu3 }
 0x3de   : > { %v2410_v1 = vadd.f32 %v2409_v45, %v2321_v60 }
 0x3e0   : > { %2475 = vst [vmem:[%s4218_s22 + $0x1f8] sm:$0xff] %v2410_v1 }
 0x3e1   : > { %3540 = shalt.err (!%p3537_p10)
}
 0x3e2   : > { %s3595_s11 = smov 256   ;;  %s3596_s22 = smov 16  }
 0x3e3   : > { %3290 = dma.vmem_to_hbm [thread:$0]  (%p3730_p3), %s2491_s17, 8192, %s2493_s20, %s2477_s28, %s3595_s11, %s3595_s11, %s3596_s22  }
 0x3e4 PF: > { %s2507_s13 = sand.u32 1, %s3575_s24   ;;  %p4432_p12 = scmp.ge.s32.totalorder %s3587_s27, 2 }
 0x3e5   : > { %s2508_s14 = scalar_lea.sflag [#allocation4], %s2507_s13 }
 0x3e6   : > { %p3310_p13 = pnand %p4432_p12, %p3672_p6 }
 0x3e8   : > { %p3311_p0 = pneg %p3310_p13 }
 0x3ea   : > { %3570 = dma.done.wait (%p3311_p0), %s2508_s14, 8192  }
 0x3eb   : > { %3572 = vsyncadd (%p3311_p0), %s2508_s14, 4294959104  ;;  %p22_p5 = scmp.ge.s32.totalorder %s3720_s18, 4   ;;  %s4433_s24 = smov %s3579_s25 }
 0x3ec   : > { %s4434_s25 = smov %s3583_s26  ;;  %s4435_s26 = smov %s3736_s9 }
 0x3ed   : > { %s4436_s27 = smov %s3720_s18  ;;  %24 = sbr.rel (!%p22_p5) target bundleno = 9 (0x9), region = 109 }
 0x3f2   :  { %2514 = vsyncpa [#allocation3], 1 }
 0x3f3   :  { %2516 = vsyncpa [#allocation3 + $0x1], 1 }
 0x3f4   :  { %2517 = vsyncpa [#allocation6], 1 }
 0x3f5   :  { %2518 = vsyncpa [#allocation9], 1 }
 0x3f6   :  { %2519 = vsyncpa [#allocation4], 1 }
 0x3f7   :  { %2521 = vsyncpa [#allocation4 + $0x1], 1 }

</bundles_post_ra>
